<compile_context>
chip_gen: v7x
topology: tpu7x:2x2x1
jax: 0.10.0
libtpu: 0.0.40
codegen_flags: <defaults>
</compile_context>

<pallas_src>
import functools

import jax
import jax.numpy as jnp
import numpy as np
from jax.experimental import pallas as pl
from jax.experimental.pallas import tpu as pltpu


# --------------------------------------------------------------------------
# Kernel
# --------------------------------------------------------------------------
def _encoder_kernel(
    x_ref,     # [TB, D_in]  f32   (one batch tile)
    w1_ref,    # [D_in, H]   bf16
    b1_ref,    # [1, H]      f32
    w_ref,     # [4, H, H]   bf16  (fc2..fc5, pre-transposed)
    b_ref,     # [4, H]      f32
    g_ref,     # [5, H]      f32   (ln1..ln5 gamma)
    be_ref,    # [5, H]      f32   (ln1..ln5 beta)
    wh_ref,    # [H, 2L]     bf16  (fused [wmu | wlogvar])
    bh_ref,    # [1, 2L]     f32   (fused [bmu | blogvar])
    out_ref,   # [TB, 2L]    f32   (fused [mu | logvar])
    *,
    eps,
):
    x = x_ref[...].astype(jnp.float32)

    # x = x / ||x||_2  (rsqrt -> EUP, no VPU divide)
    inv_norm = jax.lax.rsqrt(jnp.sum(x * x, axis=-1, keepdims=True))
    xn = (x * inv_norm).astype(jnp.bfloat16)
    # TODO(synk): training-mode dropout not implemented; eval semantics
    # (F.dropout with training=False is the identity), so xn passes through.

    def swish(v):
        return v * jax.nn.sigmoid(v)

    def layer_norm(v, i):
        # Two *independent* cross-lane reductions; var = E[v^2] - mean^2.
        inv_h = 1.0 / v.shape[-1]
        mean = jnp.sum(v, axis=-1, keepdims=True) * inv_h
        mean2 = jnp.sum(v * v, axis=-1, keepdims=True) * inv_h
        var = mean2 - mean * mean
        return (v - mean) * jax.lax.rsqrt(var + eps) * g_ref[i][None, :] + be_ref[i][None, :]

    # h1 = ln1(swish(fc1(x)))
    a1 = jnp.dot(xn, w1_ref[...], preferred_element_type=jnp.float32) + b1_ref[...]
    h1 = layer_norm(swish(a1), 0)

    # h_k = ln_k(swish(fc_k(h_{k-1}) + h1 + ... + h_{k-1}))   (static unroll)
    res_sum = h1
    prev = h1
    for i in range(4):  # fc2..fc5, ln2..ln5
        a = (
            jnp.dot(prev.astype(jnp.bfloat16), w_ref[i],
                    preferred_element_type=jnp.float32)
            + b_ref[i][None, :]
            + res_sum
        )
        h = layer_norm(swish(a), i + 1)
        res_sum = res_sum + h
        prev = h

    # Fused heads: one MXU pass, one lane-dense [TB, 2L] store.
    out = (
        jnp.dot(prev.astype(jnp.bfloat16), wh_ref[...],
                preferred_element_type=jnp.float32)
        + bh_ref[...]
    )
    out_ref[...] = out.astype(out_ref.dtype)


# --------------------------------------------------------------------------
# Wrapper
# --------------------------------------------------------------------------
def recvae_encoder(x, kparams, *, eps=0.1, batch_tile=128):
    """Pallas forward. `kparams` is the dict built by `pack_params`."""
    B, D_in = x.shape
    H = kparams["w1"].shape[1]
    L2 = kparams["w_head"].shape[1]       # 2 * latent_dim
    L = L2 // 2

    # Pad batch up to a multiple of the batch tile. Pad with 1.0 so the
    # L2-normalize of padded rows is finite (rows are discarded afterwards).
    B_pad = ((B + batch_tile - 1) // batch_tile) * batch_tile
    if B_pad != B:
        x = jnp.pad(x, ((0, B_pad - B), (0, 0)), constant_values=1.0)

    grid = (B_pad // batch_tile,)

    in_specs = [
        pl.BlockSpec((batch_tile, D_in), lambda i: (i, 0)),               # x
        pl.BlockSpec(kparams["w1"].shape, lambda i: (0, 0)),              # w1
        pl.BlockSpec(kparams["b1"].shape, lambda i: (0, 0)),              # b1
        pl.BlockSpec(kparams["w_stack"].shape, lambda i: (0, 0, 0)),      # w2..5
        pl.BlockSpec(kparams["b_stack"].shape, lambda i: (0, 0)),         # b2..5
        pl.BlockSpec(kparams["gamma"].shape, lambda i: (0, 0)),           # ln gamma
        pl.BlockSpec(kparams["beta"].shape, lambda i: (0, 0)),            # ln beta
        pl.BlockSpec(kparams["w_head"].shape, lambda i: (0, 0)),          # [wmu|wlv]
        pl.BlockSpec(kparams["b_head"].shape, lambda i: (0, 0)),          # [bmu|blv]
    ]
    out_specs = pl.BlockSpec((batch_tile, L2), lambda i: (i, 0))
    out_shape = jax.ShapeDtypeStruct((B_pad, L2), jnp.float32)

    operands = (
        x,
        kparams["w1"], kparams["b1"],
        kparams["w_stack"], kparams["b_stack"],
        kparams["gamma"], kparams["beta"],
        kparams["w_head"], kparams["b_head"],
    )

    flops = 2 * B_pad * (D_in * H + 4 * H * H + H * L2)
    transcendentals = 5 * B_pad * H                       # swish exps (dominant)
    bytes_accessed = int(
        sum(int(op.size) * op.dtype.itemsize for op in operands)
        + B_pad * L2 * 4
    )

    out = pl.pallas_call(
        functools.partial(_encoder_kernel, eps=eps),
        grid=grid,
        in_specs=in_specs,
        out_specs=out_specs,
        out_shape=out_shape,
        compiler_params=pltpu.CompilerParams(
            dimension_semantics=("parallel",),            # v7x: 2 TCs share batch
            vmem_limit_bytes=32 * 1024 * 1024,
        ),
        cost_estimate=pl.CostEstimate(
            flops=int(flops),
            transcendentals=int(transcendentals),
            bytes_accessed=bytes_accessed,
        ),
    )(*operands)

    mu = out[:B, :L]
    logvar = out[:B, L:]
    return mu, logvar


# --------------------------------------------------------------------------
# Params
# --------------------------------------------------------------------------
def init_params(key, input_dim, hidden_dim, latent_dim):
    """f32 parameters mimicking nn.Linear / nn.LayerNorm defaults."""
    def linear(k, fan_in, fan_out):
        kw, kb = jax.random.split(k)
        bound = 1.0 / np.sqrt(fan_in)
        w = jax.random.uniform(kw, (fan_in, fan_out), jnp.float32, -bound, bound)
        b = jax.random.uniform(kb, (1, fan_out), jnp.float32, -bound, bound)
        return w, b

    keys = jax.random.split(key, 8)
    w1, b1 = linear(keys[0], input_dim, hidden_dim)
    ws, bs = [], []
    for i in range(4):  # fc2..fc5
        w, b = linear(keys[1 + i], hidden_dim, hidden_dim)
        ws.append(w)
        bs.append(b[0])
    wmu, bmu = linear(keys[5], hidden_dim, latent_dim)
    wlv, blv = linear(keys[6], hidden_dim, latent_dim)

    return {
        "w1": w1, "b1": b1,
        "w_stack": jnp.stack(ws, axis=0),                 # [4, H, H]
        "b_stack": jnp.stack(bs, axis=0),                 # [4, H]
        "gamma": jnp.ones((5, hidden_dim), jnp.float32),
        "beta": jnp.zeros((5, hidden_dim), jnp.float32),
        "wmu": wmu, "bmu": bmu,
        "wlv": wlv, "blv": blv,
    }


def pack_params(p):
    """Kernel operand dict: bf16 weights, fused mu/logvar head."""
    return {
        "w1": p["w1"].astype(jnp.bfloat16),
        "b1": p["b1"],
        "w_stack": p["w_stack"].astype(jnp.bfloat16),
        "b_stack": p["b_stack"],
        "gamma": p["gamma"],
        "beta": p["beta"],
        "w_head": jnp.concatenate([p["wmu"], p["wlv"]], axis=1).astype(jnp.bfloat16),
        "b_head": jnp.concatenate([p["bmu"], p["blv"]], axis=1),
    }


# --------------------------------------------------------------------------
# Pure-JAX reference (mirrors the PyTorch forward in eval mode, with the
# same bf16-at-the-dot-boundary precision as the kernel).
# --------------------------------------------------------------------------
def reference_encoder(x, params, *, eps=0.1):
    def dot(a, w):
        return jnp.dot(a.astype(jnp.bfloat16), w.astype(jnp.bfloat16),
                       preferred_element_type=jnp.float32)

    def swish(v):
        return v * jax.nn.sigmoid(v)

    def ln(v, g, b):
        mean = jnp.mean(v, axis=-1, keepdims=True)
        mean2 = jnp.mean(v * v, axis=-1, keepdims=True)
        var = mean2 - mean * mean
        return (v - mean) * jax.lax.rsqrt(var + eps) * g + b

    x = x * jax.lax.rsqrt(jnp.sum(x * x, axis=-1, keepdims=True))

    h1 = ln(swish(dot(x, params["w1"]) + params["b1"]),
            params["gamma"][0], params["beta"][0])
    res, prev = h1, h1
    for i in range(4):
        a = dot(prev, params["w_stack"][i]) + params["b_stack"][i] + res
        h = ln(swish(a), params["gamma"][i + 1], params["beta"][i + 1])
        res = res + h
        prev = h
    mu = dot(prev, params["wmu"]) + params["bmu"]
    logvar = dot(prev, params["wlv"]) + params["blv"]
    return mu, logvar


# --------------------------------------------------------------------------
if __name__ == "__main__":
    # Small, TPU-friendly shapes consistent with the module's forward.
    batch, input_dim, hidden_dim, latent_dim = 200, 300, 128, 64

    key = jax.random.PRNGKey(0)
    k_params, k_x = jax.random.split(key)
    params = init_params(k_params, input_dim, hidden_dim, latent_dim)
    # Non-negative "interaction count"-like input, strictly positive norm.
    x = jax.random.uniform(k_x, (batch, input_dim), jnp.float32, 0.0, 1.0) + 0.01

    kparams = pack_params(params)
    mu, logvar = recvae_encoder(x, kparams, eps=0.1, batch_tile=128)
    jax.block_until_ready((mu, logvar))

    mu_ref, lv_ref = reference_encoder(x, params, eps=0.1)
    np.testing.assert_allclose(np.asarray(mu), np.asarray(mu_ref), rtol=1e-2, atol=1e-2)
    np.testing.assert_allclose(np.asarray(logvar), np.asarray(lv_ref), rtol=1e-2, atol=1e-2)

    print("KERNEL_OK")
</pallas_src>

<mosaic_0001>
module attributes {stable_mosaic.version = 11 : i64} {
  func.func @_encoder_kernel(%arg0: i32, %arg1: memref<128x300xf32, #tpu.memory_space<vmem>>, %arg2: memref<300x128xbf16, #tpu.memory_space<vmem>>, %arg3: memref<1x128xf32, #tpu.memory_space<vmem>>, %arg4: memref<4x128x128xbf16, #tpu.memory_space<vmem>>, %arg5: memref<4x128xf32, #tpu.memory_space<vmem>>, %arg6: memref<5x128xf32, #tpu.memory_space<vmem>>, %arg7: memref<5x128xf32, #tpu.memory_space<vmem>>, %arg8: memref<128x128xbf16, #tpu.memory_space<vmem>>, %arg9: memref<1x128xf32, #tpu.memory_space<vmem>>, %arg10: memref<128x128xf32, #tpu.memory_space<vmem>>) attributes {dimension_semantics = [#tpu.dimension_semantics<parallel>], iteration_bounds = array<i64: 2>, scalar_prefetch = 0 : i64, scratch_operands = 0 : i64, tpu.core_type = #tpu.core_type<tc>, window_params = [{transform_indices = @transform_0, window_bounds = array<i64: 128, 300>}, {pipeline_mode = #tpu.pipeline_mode<synchronous>, transform_indices = @transform_1, window_bounds = array<i64: 300, 128>}, {pipeline_mode = #tpu.pipeline_mode<synchronous>, transform_indices = @transform_2, window_bounds = array<i64: 1, 128>}, {pipeline_mode = #tpu.pipeline_mode<synchronous>, transform_indices = @transform_3, window_bounds = array<i64: 4, 128, 128>}, {pipeline_mode = #tpu.pipeline_mode<synchronous>, transform_indices = @transform_4, window_bounds = array<i64: 4, 128>}, {pipeline_mode = #tpu.pipeline_mode<synchronous>, transform_indices = @transform_5, window_bounds = array<i64: 5, 128>}, {pipeline_mode = #tpu.pipeline_mode<synchronous>, transform_indices = @transform_6, window_bounds = array<i64: 5, 128>}, {pipeline_mode = #tpu.pipeline_mode<synchronous>, transform_indices = @transform_7, window_bounds = array<i64: 128, 128>}, {pipeline_mode = #tpu.pipeline_mode<synchronous>, transform_indices = @transform_8, window_bounds = array<i64: 1, 128>}, {transform_indices = @transform_9, window_bounds = array<i64: 128, 128>}]} {
    %c0 = arith.constant 0 : index
    %c0_0 = arith.constant 0 : index
    %0 = vector.load %arg1[%c0, %c0_0] : memref<128x300xf32, #tpu.memory_space<vmem>>, vector<128x300xf32>
    %1 = arith.mulf %0, %0 : vector<128x300xf32>
    %cst = arith.constant dense<0.000000e+00> : vector<128xf32>
    %2 = vector.multi_reduction <add>, %1, %cst [1] : vector<128x300xf32> to vector<128xf32>
    %3 = vector.shape_cast %2 : vector<128xf32> to vector<128x1xf32>
    %4 = math.rsqrt %3 : vector<128x1xf32>
    %5 = vector.broadcast %4 : vector<128x1xf32> to vector<128x300xf32>
    %6 = arith.mulf %0, %5 : vector<128x300xf32>
    %7 = arith.truncf %6 : vector<128x300xf32> to vector<128x300xbf16>
    %c0_1 = arith.constant 0 : index
    %c0_2 = arith.constant 0 : index
    %8 = vector.load %arg2[%c0_1, %c0_2] : memref<300x128xbf16, #tpu.memory_space<vmem>>, vector<300x128xbf16>
    %cst_3 = arith.constant dense<0.000000e+00> : vector<128x128xf32>
    %9 = tpu.matmul %7, %8, %cst_3 {dimension_numbers = #tpu.dot_dimension_numbers<[1], [0], [0], [1], [0, 0, 1, 1], [], []>} : vector<128x300xbf16>, vector<300x128xbf16>, vector<128x128xf32> -> vector<128x128xf32>
    %c0_4 = arith.constant 0 : index
    %c0_5 = arith.constant 0 : index
    %10 = vector.load %arg3[%c0_4, %c0_5] : memref<1x128xf32, #tpu.memory_space<vmem>>, vector<1x128xf32>
    %11 = vector.broadcast %10 : vector<1x128xf32> to vector<128x128xf32>
    %12 = arith.addf %9, %11 : vector<128x128xf32>
    %13 = arith.negf %12 : vector<128x128xf32>
    %14 = math.exp %13 : vector<128x128xf32>
    %cst_6 = arith.constant 1.000000e+00 : f32
    %15 = vector.broadcast %cst_6 : f32 to vector<128x128xf32>
    %16 = arith.addf %15, %14 : vector<128x128xf32>
    %17 = arith.divf %15, %16 : vector<128x128xf32>
    %18 = arith.mulf %12, %17 : vector<128x128xf32>
    %cst_7 = arith.constant dense<0.000000e+00> : vector<128xf32>
    %19 = vector.multi_reduction <add>, %18, %cst_7 [1] : vector<128x128xf32> to vector<128xf32>
    %20 = vector.shape_cast %19 : vector<128xf32> to vector<128x1xf32>
    %cst_8 = arith.constant 7.812500e-03 : f32
    %21 = vector.broadcast %cst_8 : f32 to vector<128x1xf32>
    %22 = arith.mulf %20, %21 : vector<128x1xf32>
    %23 = arith.mulf %18, %18 : vector<128x128xf32>
    %cst_9 = arith.constant dense<0.000000e+00> : vector<128xf32>
    %24 = vector.multi_reduction <add>, %23, %cst_9 [1] : vector<128x128xf32> to vector<128xf32>
    %25 = vector.shape_cast %24 : vector<128xf32> to vector<128x1xf32>
    %cst_10 = arith.constant 7.812500e-03 : f32
    %26 = vector.broadcast %cst_10 : f32 to vector<128x1xf32>
    %27 = arith.mulf %25, %26 : vector<128x1xf32>
    %28 = arith.mulf %22, %22 : vector<128x1xf32>
    %29 = arith.subf %27, %28 : vector<128x1xf32>
    %30 = vector.broadcast %22 : vector<128x1xf32> to vector<128x128xf32>
    %31 = arith.subf %18, %30 : vector<128x128xf32>
    %cst_11 = arith.constant 1.000000e-01 : f32
    %32 = vector.broadcast %cst_11 : f32 to vector<128x1xf32>
    %33 = arith.addf %29, %32 : vector<128x1xf32>
    %34 = math.rsqrt %33 : vector<128x1xf32>
    %35 = vector.broadcast %34 : vector<128x1xf32> to vector<128x128xf32>
    %36 = arith.mulf %31, %35 : vector<128x128xf32>
    %c0_12 = arith.constant 0 : index
    %c0_13 = arith.constant 0 : index
    %37 = vector.load %arg6[%c0_12, %c0_13] : memref<5x128xf32, #tpu.memory_space<vmem>>, vector<1x128xf32>
    %38 = vector.shape_cast %37 : vector<1x128xf32> to vector<128xf32>
    %39 = vector.shape_cast %38 : vector<128xf32> to vector<1x128xf32>
    %40 = vector.broadcast %39 : vector<1x128xf32> to vector<128x128xf32>
    %41 = arith.mulf %36, %40 : vector<128x128xf32>
    %c0_14 = arith.constant 0 : index
    %c0_15 = arith.constant 0 : index
    %42 = vector.load %arg7[%c0_14, %c0_15] : memref<5x128xf32, #tpu.memory_space<vmem>>, vector<1x128xf32>
    %43 = vector.shape_cast %42 : vector<1x128xf32> to vector<128xf32>
    %44 = vector.shape_cast %43 : vector<128xf32> to vector<1x128xf32>
    %45 = vector.broadcast %44 : vector<1x128xf32> to vector<128x128xf32>
    %46 = arith.addf %41, %45 : vector<128x128xf32>
    %47 = arith.truncf %46 : vector<128x128xf32> to vector<128x128xbf16>
    %c0_16 = arith.constant 0 : index
    %c0_17 = arith.constant 0 : index
    %c0_18 = arith.constant 0 : index
    %48 = vector.load %arg4[%c0_16, %c0_17, %c0_18] : memref<4x128x128xbf16, #tpu.memory_space<vmem>>, vector<1x128x128xbf16>
    %49 = vector.shape_cast %48 : vector<1x128x128xbf16> to vector<128x128xbf16>
    %cst_19 = arith.constant dense<0.000000e+00> : vector<128x128xf32>
    %50 = tpu.matmul %47, %49, %cst_19 {dimension_numbers = #tpu.dot_dimension_numbers<[1], [0], [0], [1], [0, 0, 1, 1], [], []>} : vector<128x128xbf16>, vector<128x128xbf16>, vector<128x128xf32> -> vector<128x128xf32>
    %c0_20 = arith.constant 0 : index
    %c0_21 = arith.constant 0 : index
    %51 = vector.load %arg5[%c0_20, %c0_21] : memref<4x128xf32, #tpu.memory_space<vmem>>, vector<1x128xf32>
    %52 = vector.shape_cast %51 : vector<1x128xf32> to vector<128xf32>
    %53 = vector.shape_cast %52 : vector<128xf32> to vector<1x128xf32>
    %54 = vector.broadcast %53 : vector<1x128xf32> to vector<128x128xf32>
    %55 = arith.addf %50, %54 : vector<128x128xf32>
    %56 = arith.addf %55, %46 : vector<128x128xf32>
    %57 = arith.negf %56 : vector<128x128xf32>
    %58 = math.exp %57 : vector<128x128xf32>
    %cst_22 = arith.constant 1.000000e+00 : f32
    %59 = vector.broadcast %cst_22 : f32 to vector<128x128xf32>
    %60 = arith.addf %59, %58 : vector<128x128xf32>
    %61 = arith.divf %59, %60 : vector<128x128xf32>
    %62 = arith.mulf %56, %61 : vector<128x128xf32>
    %cst_23 = arith.constant dense<0.000000e+00> : vector<128xf32>
    %63 = vector.multi_reduction <add>, %62, %cst_23 [1] : vector<128x128xf32> to vector<128xf32>
    %64 = vector.shape_cast %63 : vector<128xf32> to vector<128x1xf32>
    %cst_24 = arith.constant 7.812500e-03 : f32
    %65 = vector.broadcast %cst_24 : f32 to vector<128x1xf32>
    %66 = arith.mulf %64, %65 : vector<128x1xf32>
    %67 = arith.mulf %62, %62 : vector<128x128xf32>
    %cst_25 = arith.constant dense<0.000000e+00> : vector<128xf32>
    %68 = vector.multi_reduction <add>, %67, %cst_25 [1] : vector<128x128xf32> to vector<128xf32>
    %69 = vector.shape_cast %68 : vector<128xf32> to vector<128x1xf32>
    %cst_26 = arith.constant 7.812500e-03 : f32
    %70 = vector.broadcast %cst_26 : f32 to vector<128x1xf32>
    %71 = arith.mulf %69, %70 : vector<128x1xf32>
    %72 = arith.mulf %66, %66 : vector<128x1xf32>
    %73 = arith.subf %71, %72 : vector<128x1xf32>
    %74 = vector.broadcast %66 : vector<128x1xf32> to vector<128x128xf32>
    %75 = arith.subf %62, %74 : vector<128x128xf32>
    %cst_27 = arith.constant 1.000000e-01 : f32
    %76 = vector.broadcast %cst_27 : f32 to vector<128x1xf32>
    %77 = arith.addf %73, %76 : vector<128x1xf32>
    %78 = math.rsqrt %77 : vector<128x1xf32>
    %79 = vector.broadcast %78 : vector<128x1xf32> to vector<128x128xf32>
    %80 = arith.mulf %75, %79 : vector<128x128xf32>
    %c1 = arith.constant 1 : index
    %c0_28 = arith.constant 0 : index
    %81 = vector.load %arg6[%c1, %c0_28] : memref<5x128xf32, #tpu.memory_space<vmem>>, vector<1x128xf32>
    %82 = vector.shape_cast %81 : vector<1x128xf32> to vector<128xf32>
    %83 = vector.shape_cast %82 : vector<128xf32> to vector<1x128xf32>
    %84 = vector.broadcast %83 : vector<1x128xf32> to vector<128x128xf32>
    %85 = arith.mulf %80, %84 : vector<128x128xf32>
    %c1_29 = arith.constant 1 : index
    %c0_30 = arith.constant 0 : index
    %86 = vector.load %arg7[%c1_29, %c0_30] : memref<5x128xf32, #tpu.memory_space<vmem>>, vector<1x128xf32>
    %87 = vector.shape_cast %86 : vector<1x128xf32> to vector<128xf32>
    %88 = vector.shape_cast %87 : vector<128xf32> to vector<1x128xf32>
    %89 = vector.broadcast %88 : vector<1x128xf32> to vector<128x128xf32>
    %90 = arith.addf %85, %89 : vector<128x128xf32>
    %91 = arith.addf %46, %90 : vector<128x128xf32>
    %92 = arith.truncf %90 : vector<128x128xf32> to vector<128x128xbf16>
    %c1_31 = arith.constant 1 : index
    %c0_32 = arith.constant 0 : index
    %c0_33 = arith.constant 0 : index
    %93 = vector.load %arg4[%c1_31, %c0_32, %c0_33] : memref<4x128x128xbf16, #tpu.memory_space<vmem>>, vector<1x128x128xbf16>
    %94 = vector.shape_cast %93 : vector<1x128x128xbf16> to vector<128x128xbf16>
    %cst_34 = arith.constant dense<0.000000e+00> : vector<128x128xf32>
    %95 = tpu.matmul %92, %94, %cst_34 {dimension_numbers = #tpu.dot_dimension_numbers<[1], [0], [0], [1], [0, 0, 1, 1], [], []>} : vector<128x128xbf16>, vector<128x128xbf16>, vector<128x128xf32> -> vector<128x128xf32>
    %c1_35 = arith.constant 1 : index
    %c0_36 = arith.constant 0 : index
    %96 = vector.load %arg5[%c1_35, %c0_36] : memref<4x128xf32, #tpu.memory_space<vmem>>, vector<1x128xf32>
    %97 = vector.shape_cast %96 : vector<1x128xf32> to vector<128xf32>
    %98 = vector.shape_cast %97 : vector<128xf32> to vector<1x128xf32>
    %99 = vector.broadcast %98 : vector<1x128xf32> to vector<128x128xf32>
    %100 = arith.addf %95, %99 : vector<128x128xf32>
    %101 = arith.addf %100, %91 : vector<128x128xf32>
    %102 = arith.negf %101 : vector<128x128xf32>
    %103 = math.exp %102 : vector<128x128xf32>
    %cst_37 = arith.constant 1.000000e+00 : f32
    %104 = vector.broadcast %cst_37 : f32 to vector<128x128xf32>
    %105 = arith.addf %104, %103 : vector<128x128xf32>
    %106 = arith.divf %104, %105 : vector<128x128xf32>
    %107 = arith.mulf %101, %106 : vector<128x128xf32>
    %cst_38 = arith.constant dense<0.000000e+00> : vector<128xf32>
    %108 = vector.multi_reduction <add>, %107, %cst_38 [1] : vector<128x128xf32> to vector<128xf32>
    %109 = vector.shape_cast %108 : vector<128xf32> to vector<128x1xf32>
    %cst_39 = arith.constant 7.812500e-03 : f32
    %110 = vector.broadcast %cst_39 : f32 to vector<128x1xf32>
    %111 = arith.mulf %109, %110 : vector<128x1xf32>
    %112 = arith.mulf %107, %107 : vector<128x128xf32>
    %cst_40 = arith.constant dense<0.000000e+00> : vector<128xf32>
    %113 = vector.multi_reduction <add>, %112, %cst_40 [1] : vector<128x128xf32> to vector<128xf32>
    %114 = vector.shape_cast %113 : vector<128xf32> to vector<128x1xf32>
    %cst_41 = arith.constant 7.812500e-03 : f32
    %115 = vector.broadcast %cst_41 : f32 to vector<128x1xf32>
    %116 = arith.mulf %114, %115 : vector<128x1xf32>
    %117 = arith.mulf %111, %111 : vector<128x1xf32>
    %118 = arith.subf %116, %117 : vector<128x1xf32>
    %119 = vector.broadcast %111 : vector<128x1xf32> to vector<128x128xf32>
    %120 = arith.subf %107, %119 : vector<128x128xf32>
    %cst_42 = arith.constant 1.000000e-01 : f32
    %121 = vector.broadcast %cst_42 : f32 to vector<128x1xf32>
    %122 = arith.addf %118, %121 : vector<128x1xf32>
    %123 = math.rsqrt %122 : vector<128x1xf32>
    %124 = vector.broadcast %123 : vector<128x1xf32> to vector<128x128xf32>
    %125 = arith.mulf %120, %124 : vector<128x128xf32>
    %c2 = arith.constant 2 : index
    %c0_43 = arith.constant 0 : index
    %126 = vector.load %arg6[%c2, %c0_43] : memref<5x128xf32, #tpu.memory_space<vmem>>, vector<1x128xf32>
    %127 = vector.shape_cast %126 : vector<1x128xf32> to vector<128xf32>
    %128 = vector.shape_cast %127 : vector<128xf32> to vector<1x128xf32>
    %129 = vector.broadcast %128 : vector<1x128xf32> to vector<128x128xf32>
    %130 = arith.mulf %125, %129 : vector<128x128xf32>
    %c2_44 = arith.constant 2 : index
    %c0_45 = arith.constant 0 : index
    %131 = vector.load %arg7[%c2_44, %c0_45] : memref<5x128xf32, #tpu.memory_space<vmem>>, vector<1x128xf32>
    %132 = vector.shape_cast %131 : vector<1x128xf32> to vector<128xf32>
    %133 = vector.shape_cast %132 : vector<128xf32> to vector<1x128xf32>
    %134 = vector.broadcast %133 : vector<1x128xf32> to vector<128x128xf32>
    %135 = arith.addf %130, %134 : vector<128x128xf32>
    %136 = arith.addf %91, %135 : vector<128x128xf32>
    %137 = arith.truncf %135 : vector<128x128xf32> to vector<128x128xbf16>
    %c2_46 = arith.constant 2 : index
    %c0_47 = arith.constant 0 : index
    %c0_48 = arith.constant 0 : index
    %138 = vector.load %arg4[%c2_46, %c0_47, %c0_48] : memref<4x128x128xbf16, #tpu.memory_space<vmem>>, vector<1x128x128xbf16>
    %139 = vector.shape_cast %138 : vector<1x128x128xbf16> to vector<128x128xbf16>
    %cst_49 = arith.constant dense<0.000000e+00> : vector<128x128xf32>
    %140 = tpu.matmul %137, %139, %cst_49 {dimension_numbers = #tpu.dot_dimension_numbers<[1], [0], [0], [1], [0, 0, 1, 1], [], []>} : vector<128x128xbf16>, vector<128x128xbf16>, vector<128x128xf32> -> vector<128x128xf32>
    %c2_50 = arith.constant 2 : index
    %c0_51 = arith.constant 0 : index
    %141 = vector.load %arg5[%c2_50, %c0_51] : memref<4x128xf32, #tpu.memory_space<vmem>>, vector<1x128xf32>
    %142 = vector.shape_cast %141 : vector<1x128xf32> to vector<128xf32>
    %143 = vector.shape_cast %142 : vector<128xf32> to vector<1x128xf32>
    %144 = vector.broadcast %143 : vector<1x128xf32> to vector<128x128xf32>
    %145 = arith.addf %140, %144 : vector<128x128xf32>
    %146 = arith.addf %145, %136 : vector<128x128xf32>
    %147 = arith.negf %146 : vector<128x128xf32>
    %148 = math.exp %147 : vector<128x128xf32>
    %cst_52 = arith.constant 1.000000e+00 : f32
    %149 = vector.broadcast %cst_52 : f32 to vector<128x128xf32>
    %150 = arith.addf %149, %148 : vector<128x128xf32>
    %151 = arith.divf %149, %150 : vector<128x128xf32>
    %152 = arith.mulf %146, %151 : vector<128x128xf32>
    %cst_53 = arith.constant dense<0.000000e+00> : vector<128xf32>
    %153 = vector.multi_reduction <add>, %152, %cst_53 [1] : vector<128x128xf32> to vector<128xf32>
    %154 = vector.shape_cast %153 : vector<128xf32> to vector<128x1xf32>
    %cst_54 = arith.constant 7.812500e-03 : f32
    %155 = vector.broadcast %cst_54 : f32 to vector<128x1xf32>
    %156 = arith.mulf %154, %155 : vector<128x1xf32>
    %157 = arith.mulf %152, %152 : vector<128x128xf32>
    %cst_55 = arith.constant dense<0.000000e+00> : vector<128xf32>
    %158 = vector.multi_reduction <add>, %157, %cst_55 [1] : vector<128x128xf32> to vector<128xf32>
    %159 = vector.shape_cast %158 : vector<128xf32> to vector<128x1xf32>
    %cst_56 = arith.constant 7.812500e-03 : f32
    %160 = vector.broadcast %cst_56 : f32 to vector<128x1xf32>
    %161 = arith.mulf %159, %160 : vector<128x1xf32>
    %162 = arith.mulf %156, %156 : vector<128x1xf32>
    %163 = arith.subf %161, %162 : vector<128x1xf32>
    %164 = vector.broadcast %156 : vector<128x1xf32> to vector<128x128xf32>
    %165 = arith.subf %152, %164 : vector<128x128xf32>
    %cst_57 = arith.constant 1.000000e-01 : f32
    %166 = vector.broadcast %cst_57 : f32 to vector<128x1xf32>
    %167 = arith.addf %163, %166 : vector<128x1xf32>
    %168 = math.rsqrt %167 : vector<128x1xf32>
    %169 = vector.broadcast %168 : vector<128x1xf32> to vector<128x128xf32>
    %170 = arith.mulf %165, %169 : vector<128x128xf32>
    %c3 = arith.constant 3 : index
    %c0_58 = arith.constant 0 : index
    %171 = vector.load %arg6[%c3, %c0_58] : memref<5x128xf32, #tpu.memory_space<vmem>>, vector<1x128xf32>
    %172 = vector.shape_cast %171 : vector<1x128xf32> to vector<128xf32>
    %173 = vector.shape_cast %172 : vector<128xf32> to vector<1x128xf32>
    %174 = vector.broadcast %173 : vector<1x128xf32> to vector<128x128xf32>
    %175 = arith.mulf %170, %174 : vector<128x128xf32>
    %c3_59 = arith.constant 3 : index
    %c0_60 = arith.constant 0 : index
    %176 = vector.load %arg7[%c3_59, %c0_60] : memref<5x128xf32, #tpu.memory_space<vmem>>, vector<1x128xf32>
    %177 = vector.shape_cast %176 : vector<1x128xf32> to vector<128xf32>
    %178 = vector.shape_cast %177 : vector<128xf32> to vector<1x128xf32>
    %179 = vector.broadcast %178 : vector<1x128xf32> to vector<128x128xf32>
    %180 = arith.addf %175, %179 : vector<128x128xf32>
    %181 = arith.addf %136, %180 : vector<128x128xf32>
    %182 = arith.truncf %180 : vector<128x128xf32> to vector<128x128xbf16>
    %c3_61 = arith.constant 3 : index
    %c0_62 = arith.constant 0 : index
    %c0_63 = arith.constant 0 : index
    %183 = vector.load %arg4[%c3_61, %c0_62, %c0_63] : memref<4x128x128xbf16, #tpu.memory_space<vmem>>, vector<1x128x128xbf16>
    %184 = vector.shape_cast %183 : vector<1x128x128xbf16> to vector<128x128xbf16>
    %cst_64 = arith.constant dense<0.000000e+00> : vector<128x128xf32>
    %185 = tpu.matmul %182, %184, %cst_64 {dimension_numbers = #tpu.dot_dimension_numbers<[1], [0], [0], [1], [0, 0, 1, 1], [], []>} : vector<128x128xbf16>, vector<128x128xbf16>, vector<128x128xf32> -> vector<128x128xf32>
    %c3_65 = arith.constant 3 : index
    %c0_66 = arith.constant 0 : index
    %186 = vector.load %arg5[%c3_65, %c0_66] : memref<4x128xf32, #tpu.memory_space<vmem>>, vector<1x128xf32>
    %187 = vector.shape_cast %186 : vector<1x128xf32> to vector<128xf32>
    %188 = vector.shape_cast %187 : vector<128xf32> to vector<1x128xf32>
    %189 = vector.broadcast %188 : vector<1x128xf32> to vector<128x128xf32>
    %190 = arith.addf %185, %189 : vector<128x128xf32>
    %191 = arith.addf %190, %181 : vector<128x128xf32>
    %192 = arith.negf %191 : vector<128x128xf32>
    %193 = math.exp %192 : vector<128x128xf32>
    %cst_67 = arith.constant 1.000000e+00 : f32
    %194 = vector.broadcast %cst_67 : f32 to vector<128x128xf32>
    %195 = arith.addf %194, %193 : vector<128x128xf32>
    %196 = arith.divf %194, %195 : vector<128x128xf32>
    %197 = arith.mulf %191, %196 : vector<128x128xf32>
    %cst_68 = arith.constant dense<0.000000e+00> : vector<128xf32>
    %198 = vector.multi_reduction <add>, %197, %cst_68 [1] : vector<128x128xf32> to vector<128xf32>
    %199 = vector.shape_cast %198 : vector<128xf32> to vector<128x1xf32>
    %cst_69 = arith.constant 7.812500e-03 : f32
    %200 = vector.broadcast %cst_69 : f32 to vector<128x1xf32>
    %201 = arith.mulf %199, %200 : vector<128x1xf32>
    %202 = arith.mulf %197, %197 : vector<128x128xf32>
    %cst_70 = arith.constant dense<0.000000e+00> : vector<128xf32>
    %203 = vector.multi_reduction <add>, %202, %cst_70 [1] : vector<128x128xf32> to vector<128xf32>
    %204 = vector.shape_cast %203 : vector<128xf32> to vector<128x1xf32>
    %cst_71 = arith.constant 7.812500e-03 : f32
    %205 = vector.broadcast %cst_71 : f32 to vector<128x1xf32>
    %206 = arith.mulf %204, %205 : vector<128x1xf32>
    %207 = arith.mulf %201, %201 : vector<128x1xf32>
    %208 = arith.subf %206, %207 : vector<128x1xf32>
    %209 = vector.broadcast %201 : vector<128x1xf32> to vector<128x128xf32>
    %210 = arith.subf %197, %209 : vector<128x128xf32>
    %cst_72 = arith.constant 1.000000e-01 : f32
    %211 = vector.broadcast %cst_72 : f32 to vector<128x1xf32>
    %212 = arith.addf %208, %211 : vector<128x1xf32>
    %213 = math.rsqrt %212 : vector<128x1xf32>
    %214 = vector.broadcast %213 : vector<128x1xf32> to vector<128x128xf32>
    %215 = arith.mulf %210, %214 : vector<128x128xf32>
    %c4 = arith.constant 4 : index
    %c0_73 = arith.constant 0 : index
    %216 = vector.load %arg6[%c4, %c0_73] : memref<5x128xf32, #tpu.memory_space<vmem>>, vector<1x128xf32>
    %217 = vector.shape_cast %216 : vector<1x128xf32> to vector<128xf32>
    %218 = vector.shape_cast %217 : vector<128xf32> to vector<1x128xf32>
    %219 = vector.broadcast %218 : vector<1x128xf32> to vector<128x128xf32>
    %220 = arith.mulf %215, %219 : vector<128x128xf32>
    %c4_74 = arith.constant 4 : index
    %c0_75 = arith.constant 0 : index
    %221 = vector.load %arg7[%c4_74, %c0_75] : memref<5x128xf32, #tpu.memory_space<vmem>>, vector<1x128xf32>
    %222 = vector.shape_cast %221 : vector<1x128xf32> to vector<128xf32>
    %223 = vector.shape_cast %222 : vector<128xf32> to vector<1x128xf32>
    %224 = vector.broadcast %223 : vector<1x128xf32> to vector<128x128xf32>
    %225 = arith.addf %220, %224 : vector<128x128xf32>
    %226 = arith.truncf %225 : vector<128x128xf32> to vector<128x128xbf16>
    %c0_76 = arith.constant 0 : index
    %c0_77 = arith.constant 0 : index
    %227 = vector.load %arg8[%c0_76, %c0_77] : memref<128x128xbf16, #tpu.memory_space<vmem>>, vector<128x128xbf16>
    %cst_78 = arith.constant dense<0.000000e+00> : vector<128x128xf32>
    %228 = tpu.matmul %226, %227, %cst_78 {dimension_numbers = #tpu.dot_dimension_numbers<[1], [0], [0], [1], [0, 0, 1, 1], [], []>} : vector<128x128xbf16>, vector<128x128xbf16>, vector<128x128xf32> -> vector<128x128xf32>
    %c0_79 = arith.constant 0 : index
    %c0_80 = arith.constant 0 : index
    %229 = vector.load %arg9[%c0_79, %c0_80] : memref<1x128xf32, #tpu.memory_space<vmem>>, vector<1x128xf32>
    %230 = vector.broadcast %229 : vector<1x128xf32> to vector<128x128xf32>
    %231 = arith.addf %228, %230 : vector<128x128xf32>
    %c0_81 = arith.constant 0 : index
    %c0_82 = arith.constant 0 : index
    %232 = vector.load %arg10[%c0_81, %c0_82] : memref<128x128xf32, #tpu.memory_space<vmem>>, vector<128x128xf32>
    tpu.vector_store %arg10[%c0_81, %c0_82], %231 {strides = array<i32>} : memref<128x128xf32, #tpu.memory_space<vmem>>, vector<128x128xf32>,
    return
  }
  func.func @transform_0(%arg0: i32) -> (i32, i32) {
    %c0_i32 = arith.constant 0 : i32
    %c0_i32_0 = arith.constant 0 : i32
    return %arg0, %c0_i32 : i32, i32
  }
  func.func @transform_1(%arg0: i32) -> (i32, i32) {
    %c0_i32 = arith.constant 0 : i32
    %c0_i32_0 = arith.constant 0 : i32
    %c0_i32_1 = arith.constant 0 : i32
    return %c0_i32, %c0_i32_0 : i32, i32
  }
  func.func @transform_2(%arg0: i32) -> (i32, i32) {
    %c0_i32 = arith.constant 0 : i32
    %c0_i32_0 = arith.constant 0 : i32
    %c0_i32_1 = arith.constant 0 : i32
    return %c0_i32, %c0_i32_0 : i32, i32
  }
  func.func @transform_3(%arg0: i32) -> (i32, i32, i32) {
    %c0_i32 = arith.constant 0 : i32
    %c0_i32_0 = arith.constant 0 : i32
    %c0_i32_1 = arith.constant 0 : i32
    %c0_i32_2 = arith.constant 0 : i32
    return %c0_i32, %c0_i32_0, %c0_i32_1 : i32, i32, i32
  }
  func.func @transform_4(%arg0: i32) -> (i32, i32) {
    %c0_i32 = arith.constant 0 : i32
    %c0_i32_0 = arith.constant 0 : i32
    %c0_i32_1 = arith.constant 0 : i32
    return %c0_i32, %c0_i32_0 : i32, i32
  }
  func.func @transform_5(%arg0: i32) -> (i32, i32) {
    %c0_i32 = arith.constant 0 : i32
    %c0_i32_0 = arith.constant 0 : i32
    %c0_i32_1 = arith.constant 0 : i32
    return %c0_i32, %c0_i32_0 : i32, i32
  }
  func.func @transform_6(%arg0: i32) -> (i32, i32) {
    %c0_i32 = arith.constant 0 : i32
    %c0_i32_0 = arith.constant 0 : i32
    %c0_i32_1 = arith.constant 0 : i32
    return %c0_i32, %c0_i32_0 : i32, i32
  }
  func.func @transform_7(%arg0: i32) -> (i32, i32) {
    %c0_i32 = arith.constant 0 : i32
    %c0_i32_0 = arith.constant 0 : i32
    %c0_i32_1 = arith.constant 0 : i32
    return %c0_i32, %c0_i32_0 : i32, i32
  }
  func.func @transform_8(%arg0: i32) -> (i32, i32) {
    %c0_i32 = arith.constant 0 : i32
    %c0_i32_0 = arith.constant 0 : i32
    %c0_i32_1 = arith.constant 0 : i32
    return %c0_i32, %c0_i32_0 : i32, i32
  }
  func.func @transform_9(%arg0: i32) -> (i32, i32) {
    %c0_i32 = arith.constant 0 : i32
    %c0_i32_0 = arith.constant 0 : i32
    return %arg0, %c0_i32 : i32, i32
  }
}

</mosaic_0001>

<bundles_post_ra>
// kernel: tpu_custom_call.1
= control target key start
LH: loop header
LB: loop body
LE: loop exit
PB: predicated region body
PF: predicated region fallthrough
CT: control target
= control target key end

     0   :  { %14 = vsyncpa [#allocation3], 0  ;;  %s7533_s0 = inlined_call_operand.vmem [shape: f32[256,300], index: 0, kind: input, shape index: {}]   ;;  %s7534_s1 = inlined_call_operand.vmem [shape: bf16[300,128], index: 1, kind: input, shape index: {}]   ;;  %s7535_s2 = inlined_call_operand.vmem [shape: f32[1,128], index: 2, kind: input, shape index: {}]   ;;  %s7536_s3 = inlined_call_operand.vmem [shape: bf16[4,128,128], index: 3, kind: input, shape index: {}]   ;;  %s7537_s4 = inlined_call_operand.vmem [shape: f32[4,128], index: 4, kind: input, shape index: {}]   ;;  %s7538_s5 = inlined_call_operand.vmem [shape: f32[5,128], index: 5, kind: input, shape index: {}]   ;;  %s7539_s6 = inlined_call_operand.vmem [shape: f32[5,128], index: 6, kind: input, shape index: {}]   ;;  %s7540_s7 = inlined_call_operand.vmem [shape: bf16[128,128], index: 7, kind: input, shape index: {}]   ;;  %s7541_s8 = inlined_call_operand.vmem [shape: f32[1,128], index: 8, kind: input, shape index: {}]   ;;  %s7542_s9 = inlined_call_operand.hbm [shape: f32[256,128], index: 9, kind: output, shape index: {}]  }
   0x1   :  { %16 = vsyncpa [#allocation3 + $0x1], 0  ;;  %s5180_s30 = smov 0   ;;  %s5182_s10 = smov 0  }
   0x2   :  { %s5184_s11 = smov 0   ;;  %s5186_s12 = smov 0  }
   0x3 LB: > { %s5201_s13 = sadd.s32 4294967295, %s5125_s12   ;;  %s3872_s14 = sadd.s32 4294967294, %s5125_s12   ;;  %s5125_s12 = sphi %s5186_s12, %s7569_s12   ;;  %s5121_s11 = sphi %s5184_s11, %s7568_s11   ;;  %s5117_s10 = sphi %s5182_s10, %s7567_s10   ;;  %s5113_s30 = sphi %s5180_s30, %s7566_s30  }
   0x4   : > { %s5205_s15 = sadd.s32 1, %s5125_s12   ;;  %s223_s16 = sadd.s32 1, %s5121_s11 }
   0x5   : > { %s220_s17 = ssub.s32 %s5125_s12, %s5205_s15  ;;  %p233_p0 = scmp.ne.s32.totalorder %s5121_s11, %s5117_s10 }
   0x6   : > { %p221_p1 = scmp.eq.s32.totalorder %s220_s17, 0  ;;  %p234_p2 = scmp.eq.s32.totalorder %s5201_s13, 1 }
   0x7   : > { %p239_p3 = scmp.ne.s32.totalorder %s5117_s10, %s5113_s30  ;;  %p240_p4 = scmp.eq.s32.totalorder %s3872_s14, 1 }
   0x8   : > { %s5216_s18 = scalar_select %p221_p1, %s5121_s11, %s223_s16  }
   0x9   : > { %p5218_p5 = por %p234_p2, %p233_p0  ;;  %p5222_p6 = por %p240_p4, %p239_p3 }
   0xa   : > { %p3875_p7 = scmp.ge.s32.totalorder %s5125_s12, 1  ;;  %p292_p8 = scmp.lt.s32.totalorder %s5125_s12, 3 }
   0xc   : > { %p293_p9 = pnand %p3875_p7, %p292_p8 }
   0xe   : > { %296 = sbr.rel (%p293_p9) target bundleno = 2614 (0xa36), region = 56 }
  0x15   : > { %s3877_s21 = sshll.u32 %s5201_s13, 4  ;;  %v4492_v0 = vld [vmem:[%s7534_s1 + $0x40] sm:$0xff]   ;;  %v4494_v2 = vld [vmem:[%s7534_s1 + $0x48] sm:$0xff]   ;;  %v4496_v4 = vld [vmem:[%s7534_s1 + $0x50] sm:$0xff]   ;;  %vm435_vm0 = vcmask 359424   ;;  %vm785_vm1 = vcmask 1045504  }
  0x16   : > { %p330_p10 = scmp.lt.s32.totalorder %s3877_s21, 31  ;;  %v4493_v1 = vld [vmem:[%s7534_s1] sm:$0xff]   ;;  %4096 = vmatprep.subr.bf16.mxu0 %v4492_v0  ;;  %v4495_v3 = vld [vmem:[%s7534_s1 + $0x8] sm:$0xff]   ;;  %v4497_v5 = vld [vmem:[%s7534_s1 + $0x10] sm:$0xff]   ;;  %s4095_s24 = sshll.u32 %s5201_s13, 11 }
  0x17   : > { %4097 = vmatpush3.bf16.msra.mxu0 %v4493_v1  ;;  %s7483_s27 = scalar_lea.hbm %s7542_s9, %s4095_s24  ;;  %s5127_s29 = smov [#allocation2]  }
  0x18   : > { %s7571_s21 = smov (!%p330_p10, %s3877_s21), 31  ;;  %4098 = vmatprep.subr.bf16.mxu0 %v4494_v2 }
  0x19   : > { %s4450_s14 = smul.u32 24, %s7571_s21 }
  0x1b   : > { %s5250_s26 = scalar_lea.vmem %s7533_s0, %s4450_s14  ;;  %4099 = vmatpush3.bf16.msra.mxu0 %v4495_v3  ;;  %s326_s14 = sand.u32 1, %s5117_s10  }
  0x1c   : > { %v5253_v6 = vld [vmem:[%s5250_s26] sm:$0xff]  ;;  %v5256_v7 = vld [vmem:[%s5250_s26 + $0x8] sm:$0xff]  ;;  %v5259_v8 = vld [vmem:[%s5250_s26 + $0x10] sm:$0xff]  ;;  %4100 = vmatprep.subr.bf16.mxu0 %v4496_v4  ;;  %s3876_s16 = sshll.u32 %s326_s14, 7  ;;  %s7492_s13 = scalar_lea.sflag [#allocation3], %s326_s14 }
  0x1d   : > { %v386_v9 = vmul.f32 %v5253_v6, %v5253_v6  ;;  %v387_v10 = vmul.f32 %v5256_v7, %v5256_v7  ;;  %v388_v11 = vmul.f32 %v5259_v8, %v5259_v8  ;;  %v5268_v12 = vld [vmem:[%s5250_s26 + $0x30] sm:$0xff]  ;;  %v5271_v13 = vld [vmem:[%s5250_s26 + $0x38] sm:$0xff]  ;;  %v5274_v14 = vld [vmem:[%s5250_s26 + $0x40] sm:$0xff]  ;;  %s7463_s23 = scalar_lea.vmem [#allocation2], %s3876_s16  ;;  %s5067_s16 = sshll.u32 %s5127_s29, 4  ;;  %s5068_s16 = int_to_ptr.vmem [resolvable:$false] %s5067_s16 }
  0x1e   : > { %v392_v15 = vmul.f32 %v5268_v12, %v5268_v12  ;;  %v393_v16 = vmul.f32 %v5271_v13, %v5271_v13  ;;  %v394_v17 = vmul.f32 %v5274_v14, %v5274_v14  ;;  %v5283_v18 = vld [vmem:[%s5250_s26 + $0x18] sm:$0xff]  ;;  %v5286_v19 = vld [vmem:[%s5250_s26 + $0x20] sm:$0xff]  ;;  %v5289_v20 = vld [vmem:[%s5250_s26 + $0x28] sm:$0xff]  ;;  %s3810_s25 = sshll.u32 %s7463_s23, 4  ;;  %s5069_s17 = scalar_lea.vmem %s5068_s16, 4096  ;;  %s7485_s25 = int_to_ptr.vmem [resolvable:$true] %s3810_s25 }
  0x1f   : > { %v434_v21 = vadd.f32 %v387_v10, %v386_v9  ;;  %v436_v22 = vsel %vm435_vm0, %v388_v11, 0.0  ;;  %v389_v23 = vmul.f32 %v5283_v18, %v5283_v18  ;;  %v390_v24 = vmul.f32 %v5286_v19, %v5286_v19  ;;  %v5297_v25 = vld [vmem:[%s5250_s26 + $0x48] sm:$0xff]  ;;  %v5300_v26 = vld [vmem:[%s5250_s26 + $0x50] sm:$0xff]  ;;  %v5303_v27 = vld [vmem:[%s5250_s26 + $0x58] sm:$0xff]  ;;  %4101 = vmatpush3.bf16.msra.mxu0 %v4497_v5  ;;  %s5063_s28 = scalar_lea.vmem %s7485_s25, 2048  ;;  %p5070_p0 = scmp.lt.s32.totalorder %s7485_s25, %s5068_s16 }
  0x20   : > { %v445_v28 = vadd.f32 %v393_v16, %v392_v15  ;;  %v446_v29 = vsel %vm435_vm0, %v394_v17, 0.0  ;;  %v391_v30 = vmul.f32 %v5289_v20, %v5289_v20  ;;  %v395_v31 = vmul.f32 %v5297_v25, %v5297_v25  ;;  %v5311_v32 = vld [vmem:[%s5250_s26 + $0x78] sm:$0xff]  ;;  %v5314_v33 = vld [vmem:[%s5250_s26 + $0x80] sm:$0xff]  ;;  %v5317_v34 = vld [vmem:[%s5250_s26 + $0x88] sm:$0xff]  ;;  %p5064_p11 = scmp.ne.s32.totalorder %s7485_s25, %s5063_s28  ;;  %p5071_p1 = scmp.lt.s32.totalorder %s5069_s17, %s5063_s28 }
  0x21   : > { %v437_v35 = vadd.f32 %v436_v22, %v434_v21  ;;  %v440_v36 = vadd.f32 %v390_v24, %v389_v23  ;;  %v396_v37 = vmul.f32 %v5300_v26, %v5300_v26  ;;  %v397_v38 = vmul.f32 %v5303_v27, %v5303_v27  ;;  %v5324_v39 = vld [vmem:[%s5250_s26 + $0x60] sm:$0xff]  ;;  %v5327_v40 = vld [vmem:[%s5250_s26 + $0x68] sm:$0xff]  ;;  %v5330_v41 = vld [vmem:[%s5250_s26 + $0x70] sm:$0xff] }
  0x22   : > { %v447_v42 = vadd.f32 %v446_v29, %v445_v28  ;;  %v441_v43 = vsel %vm435_vm0, %v391_v30, 0.0  ;;  %v401_v44 = vmul.f32 %v5311_v32, %v5311_v32  ;;  %v402_v45 = vmul.f32 %v5314_v33, %v5314_v33  ;;  %v5338_v46 = vld [vmem:[%s5250_s26 + $0xa8] sm:$0xff]  ;;  %v5341_v47 = vld [vmem:[%s5250_s26 + $0xb0] sm:$0xff]  ;;  %v5347_v52 = vld [vmem:[%s5250_s26 + $0xb8] sm:$0xff]  ;;  %p5065_p12 = pnand %p5064_p11, %p5218_p5  ;;  %p5072_p2 = por %p5071_p1, %p5070_p0 }
  0x23   : > { %438 = vadd.xlane.f32.xlu0 %v437_v35  ;;  %v442_v48 = vadd.f32 %v441_v43, %v440_v36  ;;  %v450_v49 = vadd.f32 %v396_v37, %v395_v31  ;;  %v451_v50 = vsel %vm435_vm0, %v397_v38, 0.0  ;;  %v403_v51 = vmul.f32 %v5317_v34, %v5317_v34  ;;  %v5356_v57 = vld [vmem:[%s5250_s26 + $0x90] sm:$0xff]  ;;  %v5359_v58 = vld [vmem:[%s5250_s26 + $0x98] sm:$0xff]  ;;  %v5362_v59 = vld [vmem:[%s5250_s26 + $0xa0] sm:$0xff] }
  0x24   : > { %448 = vadd.xlane.f32.xlu1 %v447_v42  ;;  %v460_v53 = vadd.f32 %v402_v45, %v401_v44  ;;  %v398_v54 = vmul.f32 %v5324_v39, %v5324_v39  ;;  %v399_v55 = vmul.f32 %v5327_v40, %v5327_v40  ;;  %v400_v56 = vmul.f32 %v5330_v41, %v5330_v41  ;;  %v5370_v0 = vld [vmem:[%s5250_s26 + $0xd8] sm:$0xff]  ;;  %v5373_v1 = vld [vmem:[%s5250_s26 + $0xe0] sm:$0xff]  ;;  %v5379_v9 = vld [vmem:[%s5250_s26 + $0xe8] sm:$0xff]  ;;  %p5066_p13 = pneg %p5065_p12 }
  0x25   : > { %v452_v60 = vadd.f32 %v451_v50, %v450_v49  ;;  %v461_v61 = vsel %vm435_vm0, %v403_v51, 0.0  ;;  %v407_v62 = vmul.f32 %v5338_v46, %v5338_v46  ;;  %v408_v63 = vmul.f32 %v5341_v47, %v5341_v47  ;;  %v5388_v17 = vld [vmem:[%s5250_s26 + $0xc0] sm:$0xff]  ;;  %v5391_v21 = vld [vmem:[%s5250_s26 + $0xc8] sm:$0xff]  ;;  %v5394_v22 = vld [vmem:[%s5250_s26 + $0xd0] sm:$0xff] }
  0x26   : > { %v462_v2 = vadd.f32 %v461_v61, %v460_v53  ;;  %v455_v3 = vadd.f32 %v399_v55, %v398_v54  ;;  %v456_v4 = vsel %vm435_vm0, %v400_v56, 0.0  ;;  %v409_v5 = vmul.f32 %v5347_v52, %v5347_v52  ;;  %v5402_v30 = vld [vmem:[%s5250_s26 + $0x108] sm:$0xff]  ;;  %v5405_v31 = vld [vmem:[%s5250_s26 + $0x110] sm:$0xff]  ;;  %v5411_v38 = vld [vmem:[%s5250_s26 + $0x118] sm:$0xff]  ;;  %p5073_p3 = pnand %p5072_p2, %p5066_p13 }
  0x27   : > { %443 = vadd.xlane.f32.xlu0 %v442_v48  ;;  %v470_v10 = vadd.f32 %v408_v63, %v407_v62  ;;  %v404_v11 = vmul.f32 %v5356_v57, %v5356_v57  ;;  %v405_v15 = vmul.f32 %v5359_v58, %v5359_v58  ;;  %v406_v16 = vmul.f32 %v5362_v59, %v5362_v59  ;;  %v5414_v42 = vld [vmem:[%s5250_s26 + $0xf0] sm:$0xff]  ;;  %v5417_v43 = vld [vmem:[%s5250_s26 + $0xf8] sm:$0xff]  ;;  %v5426_v50 = vld [vmem:[%s5250_s26 + $0x100] sm:$0xff] }
  0x28   : > { %453 = vadd.xlane.f32.xlu1 %v452_v60  ;;  %v457_v23 = vadd.f32 %v456_v4, %v455_v3  ;;  %v471_v24 = vsel %vm435_vm0, %v409_v5, 0.0  ;;  %v413_v28 = vmul.f32 %v5370_v0, %v5370_v0  ;;  %v414_v29 = vmul.f32 %v5373_v1, %v5373_v1  ;;  %7552 = vst [vmem:[#allocation5_spill] sm:$0xff] %v5402_v30  ;;  %v5429_v51 = vld [vmem:[%s5250_s26 + $0x138] sm:$0xff]  ;;  %v5432_v53 = vld [vmem:[%s5250_s26 + $0x140] sm:$0xff]  ;;  %v5442_v62 = vld [vmem:[%s5250_s26 + $0x128] sm:$0xff] }
  0x29   : > { %v465_v35 = vadd.f32 %v405_v15, %v404_v11  ;;  %v466_v36 = vsel %vm435_vm0, %v406_v16, 0.0  ;;  %v415_v37 = vmul.f32 %v5379_v9, %v5379_v9  ;;  %7553 = vst [vmem:[#allocation6_spill] sm:$0xff] %v5414_v42  ;;  %v472_v44 = vadd.f32 %v471_v24, %v470_v10  ;;  %7554 = vst [vmem:[#allocation7_spill] sm:$0xff] %v5429_v51  ;;  %v5439_v61 = vld [vmem:[%s5250_s26 + $0x120] sm:$0xff]  ;;  %v5445_v63 = vld [vmem:[%s5250_s26 + $0x130] sm:$0xff] }
  0x2a   : > { %v410_v45 = vmul.f32 %v5388_v17, %v5388_v17  ;;  %v411_v48 = vmul.f32 %v5391_v21, %v5391_v21  ;;  %v412_v49 = vmul.f32 %v5394_v22, %v5394_v22  ;;  %7555 = vst [vmem:[#allocation8_spill] sm:$0xff] %v5432_v53  ;;  %v480_v55 = vadd.f32 %v414_v29, %v413_v28  ;;  %v5452_v11 = vld [vmem:[%s5250_s26 + $0x148] sm:$0xff] }
  0x2b   : > { %458 = vadd.xlane.f32.xlu0 %v457_v23  ;;  %v467_v54 = vadd.f32 %v466_v36, %v465_v35  ;;  %v419_v56 = vmul.f32 %v5402_v30, %v5402_v30  ;;  %v420_v60 = vmul.f32 %v5405_v31, %v5405_v31  ;;  %7556 = vst [vmem:[#allocation9_spill] sm:$0xff] %v5439_v61  ;;  %7557 = vst [vmem:[#allocation10_spill] sm:$0xff] %v5442_v62  ;;  %v5466_v35 = vld [vmem:[%s5250_s26 + $0x168] sm:$0xff]  ;;  %v5469_v36 = vld [vmem:[%s5250_s26 + $0x150] sm:$0xff] }
  0x2c   : > { %463 = vadd.xlane.f32.xlu1 %v462_v2  ;;  %v481_v3 = vsel %vm435_vm0, %v415_v37, 0.0  ;;  %v475_v4 = vadd.f32 %v411_v48, %v410_v45  ;;  %v476_v5 = vsel %vm435_vm0, %v412_v49, 0.0  ;;  %v421_v10 = vmul.f32 %v5411_v38, %v5411_v38  ;;  %7558 = vst [vmem:[#allocation11_spill] sm:$0xff] %v5466_v35  ;;  %v5472_v37 = vld [vmem:[%s5250_s26 + $0x158] sm:$0xff] }
  0x2d   : > { %v416_v15 = vmul.f32 %v5414_v42, %v5414_v42  ;;  %v417_v16 = vmul.f32 %v5417_v43, %v5417_v43  ;;  %v418_v2 = vmul.f32 %v5426_v50, %v5426_v50  ;;  %v490_v23 = vadd.f32 %v420_v60, %v419_v56  ;;  %v5476_v56 = vld [vmem:[%s5250_s26 + $0x170] sm:$0xff]  ;;  %v5479_v60 = vld [vmem:[%s5250_s26 + $0x178] sm:$0xff] }
  0x2e   : > { %v491_v24 = vsel %vm435_vm0, %v421_v10, 0.0  ;;  %v425_v28 = vmul.f32 %v5429_v51, %v5429_v51  ;;  %v426_v29 = vmul.f32 %v5432_v53, %v5432_v53  ;;  %v477_v45 = vadd.f32 %v476_v5, %v475_v4  ;;  %v4498_v10 = vld [vmem:[%s7534_s1 + $0x58] sm:$0xff]  }
  0x2f   : > { %468 = vadd.xlane.f32.xlu0 %v467_v54  ;;  %v485_v48 = vadd.f32 %v417_v16, %v416_v15  ;;  %v486_v49 = vsel %vm435_vm0, %v418_v2, 0.0  ;;  %v482_v51 = vadd.f32 %v481_v3, %v480_v55  ;;  %v422_v30 = vmul.f32 %v5439_v61, %v5439_v61  ;;  %v4499_v5 = vld [vmem:[%s7534_s1 + $0x18] sm:$0xff]   ;;  %v5496_v16 = vld [vmem:[%s5250_s26 + $0x160] sm:$0xff]  ;;  %4102 = vmatprep.subr.bf16.mxu0 %v4498_v10 }
  0x30   : > { %473 = vadd.xlane.f32.xlu1 %v472_v44  ;;  %v423_v54 = vmul.f32 %v5442_v62, %v5442_v62  ;;  %v424_v4 = vmul.f32 %v5445_v63, %v5445_v63  ;;  %v427_v15 = vmul.f32 %v5452_v11, %v5452_v11  ;;  %v492_v44 = vadd.f32 %v491_v24, %v490_v23  ;;  %v4500_v62 = vld [vmem:[%s7534_s1 + $0x60] sm:$0xff]  }
  0x31   : > { %v487_v55 = vadd.f32 %v486_v49, %v485_v48  ;;  %v500_v3 = vadd.f32 %v426_v29, %v425_v28  ;;  %4103 = vmatpush3.bf16.msra.mxu0 %v4499_v5  ;;  %v431_v61 = vmul.f32 %v5466_v35, %v5466_v35  ;;  %v428_v42 = vmul.f32 %v5469_v36, %v5469_v36  ;;  %v4501_v29 = vld [vmem:[%s7534_s1 + $0x20] sm:$0xff]   ;;  %v4504_v49 = vld [vmem:[%s7534_s1 + $0x28] sm:$0xff]  }
  0x32   : > { %v495_v2 = vadd.f32 %v423_v54, %v422_v30  ;;  %v429_v53 = vmul.f32 %v5472_v37, %v5472_v37  ;;  %v496_v23 = vsel %vm435_vm0, %v424_v4, 0.0  ;;  %v432_v24 = vmul.f32 %v5476_v56, %v5476_v56  ;;  %4104 = vmatprep.subr.bf16.mxu0 %v4500_v62  ;;  %v4503_v48 = vld [vmem:[%s7534_s1 + $0x80] sm:$0xff]   ;;  %v4505_v62 = vld [vmem:[%s7534_s1 + $0x70] sm:$0xff]   ;;  %v4506_v35 = vld [vmem:[%s7534_s1 + $0x88] sm:$0xff]  }
  0x33   : > { %478 = vadd.xlane.f32.xlu0 %v477_v45  ;;  %v433_v30 = vmul.f32 %v5479_v60, %v5479_v60  ;;  %v430_v28 = vmul.f32 %v5496_v16, %v5496_v16  ;;  %v501_v45 = vsel %vm435_vm0, %v427_v15, 0.0  ;;  %4251 = vmatprep.subr.bf16.mxu1 %v4503_v48 }
  0x34   : > { %483 = vadd.xlane.f32.xlu1 %v482_v51  ;;  %v4502_v51 = vld [vmem:[%s7534_s1 + $0x68] sm:$0xff]   ;;  %v497_v10 = vadd.f32 %v496_v23, %v495_v2  ;;  %v505_v54 = vadd.f32 %v429_v53, %v428_v42  ;;  %v502_v4 = vadd.f32 %v501_v45, %v500_v3  ;;  %v510_v5 = vadd.f32 %v432_v24, %v431_v61  ;;  %v4507_v42 = vld [vmem:[%s7534_s1 + $0x30] sm:$0xff]   ;;  %v4508_v61 = vld [vmem:[%s7534_s1 + $0x78] sm:$0xff]  }
  0x35   : > { %4105 = vmatpush3.bf16.msra.mxu0 %v4501_v29  ;;  %v511_v15 = vsel %vm435_vm0, %v433_v30, 0.0  ;;  %v506_v29 = vsel %vm435_vm0, %v430_v28, 0.0  ;;  %v4509_v53 = vld [vmem:[%s7534_s1 + $0x90] sm:$0x3f]   ;;  %4252 = vmatpush3.bf16.msra.mxu1 %v4503_v48  ;;  %v4510_v2 = vld [vmem:[%s7534_s1 + $0x38] sm:$0xff]  }
  0x36   : > { %4106 = vmatprep.subr.bf16.mxu0 %v4502_v51  ;;  %v512_v3 = vadd.f32 %v511_v15, %v510_v5  ;;  %4253 = vmatprep.subr.bf16.mxu1 %v4506_v35 }
  0x37   : > { %488 = vadd.xlane.f32.xlu0 %v487_v55  ;;  %v507_v55 = vadd.f32 %v506_v29, %v505_v54 }
  0x38   : > { %493 = vadd.xlane.f32.xlu1 %v492_v44  ;;  %v787_v44 = vsel %vm785_vm1, %v4509_v53, 0 }
  0x39   : > { %4107 = vmatpush3.bf16.msra.mxu0 %v4504_v49  ;;  %4254 = vmatpush3.bf16.msra.mxu1 %v4506_v35 }
  0x3a   : > { %4108 = vmatprep.subr.bf16.mxu0 %v4505_v62  ;;  %4449 = vmatprep.subr.msk.bf16.mxu1 %vm785_vm1, %v4509_v53 }
  0x3b   : > { %498 = vadd.xlane.f32.xlu0 %v497_v10 }
  0x3c   : > { %503 = vadd.xlane.f32.xlu1 %v502_v4 }
  0x3d   : > { %4109 = vmatpush3.bf16.msra.mxu0 %v4507_v42  ;;  %4256 = vmatpush3.bf16.msra.mxu1 %v787_v44 }
  0x3e   : > { %4110 = vmatprep.subr.bf16.mxu0 %v4508_v61 }
  0x3f   : > { %508 = vadd.xlane.f32.xlu0 %v507_v55 }
  0x40   : > { %513 = vadd.xlane.f32.xlu1 %v512_v3 }
  0x41   : > { %4111 = vmatpush3.bf16.msra.mxu0 %v4510_v2 }
  0xb0   : > { %v439_v23 = vpop.xlane.xlu0 %438 }
  0xb1   : > { %4551 = vrsqrt.f32 %v439_v23  ;;  %v449_v24 = vpop.xlane.xlu1 %448 }
  0xb2   : > { %4553 = vrsqrt.f32 %v449_v24 }
  0xb4   : > { %v444_v30 = vpop.xlane.xlu0 %443 }
  0xb5   : > { %4555 = vrsqrt.f32 %v444_v30  ;;  %v454_v28 = vpop.xlane.xlu1 %453 }
  0xb6   : > { %4557 = vrsqrt.f32 %v454_v28 }
  0xb8   : > { %v459_v45 = vpop.xlane.xlu0 %458 }
  0xb9   : > { %v464_v51 = vpop.xlane.xlu1 %463  ;;  %4559 = vrsqrt.f32 %v459_v45 }
  0xba   : > { %4561 = vrsqrt.f32 %v464_v51 }
  0xbb   : > { %v4552_v35 = vpop.eup %4551 }
  0xbc   : > { %v4554_v48 = vpop.eup %4553  ;;  %v469_v49 = vpop.xlane.xlu0 %468  ;;  %v532_v62 = vmul.f32 %v4552_v35, %v5256_v7  ;;  %v533_v4 = vmul.f32 %v4552_v35, %v5259_v8  ;;  %v531_v61 = vmul.f32 %v4552_v35, %v5253_v6 }
  0xbd   : > { %v474_v10 = vpop.xlane.xlu1 %473  ;;  %4563 = vrsqrt.f32 %v469_v49  ;;  %v539_v5 = vmul.f32 %v4554_v48, %v5274_v14  ;;  %v538_v15 = vmul.f32 %v4554_v48, %v5271_v13  ;;  %v537_v51 = vmul.f32 %v4554_v48, %v5268_v12 }
  0xbe   : > { %4565 = vrsqrt.f32 %v474_v10 }
  0xbf   : > { %v4556_v54 = vpop.eup %4555 }
  0xc0   : > { %v4558_v29 = vpop.eup %4557  ;;  %v535_v42 = vmul.f32 %v4556_v54, %v5286_v19  ;;  %v536_v53 = vmul.f32 %v4556_v54, %v5289_v20  ;;  %v534_v44 = vmul.f32 %v4556_v54, %v5283_v18  ;;  %v479_v55 = vpop.xlane.xlu0 %478 }
  0xc1   : > { %v542_v3 = vmul.f32 %v4558_v29, %v5303_v27  ;;  %v541_v7 = vmul.f32 %v4558_v29, %v5300_v26  ;;  %v484_v2 = vpop.xlane.xlu1 %483  ;;  %4567 = vrsqrt.f32 %v479_v55  ;;  %v540_v35 = vmul.f32 %v4558_v29, %v5297_v25 }
  0xc2   : > { %v580_v8 = vpack.c.bf16 %v535_v42, %v532_v62  ;;  %v581_v14 = vpack.c.bf16 %v536_v53, %v533_v4  ;;  %v579_v23 = vpack.c.bf16 %v534_v44, %v531_v61  ;;  %4569 = vrsqrt.f32 %v484_v2 }
  0xc3   : > { %v4560_v13 = vpop.eup %4559  ;;  %v584_v24 = vpack.c.bf16 %v542_v3, %v539_v5  ;;  %v583_v19 = vpack.c.bf16 %v541_v7, %v538_v15  ;;  %v582_v4 = vpack.c.bf16 %v540_v35, %v537_v51 }
  0xc4   : > { %v4562_v30 = vpop.eup %4561  ;;  %821 = vmatprep.mubr.bf16.mxu0 %v580_v8  ;;  %4257 = vmatprep.mubr.msk.bf16.mxu1 %vm435_vm0, %v581_v14  ;;  %v545_v6 = vmul.f32 %v4560_v13, %v5330_v41  ;;  %v489_v18 = vpop.xlane.xlu0 %488  ;;  %v544_v27 = vmul.f32 %v4560_v13, %v5327_v40  ;;  %v543_v48 = vmul.f32 %v4560_v13, %v5324_v39 }
  0xc5   : > { %822 = vmatmul.mubr.bf16.vlgmr.msra.gmra.mrb[0].mxu0 %v579_v23  ;;  %4258 = vmatmul.mubr.msk.bf16.vlgmr.msra.gmra.mrb[0].mxu1 %vm435_vm0, %v584_v24  ;;  %v548_v20 = vmul.f32 %v4562_v30, %v5317_v34  ;;  %v494_v26 = vpop.xlane.xlu1 %493  ;;  %4571 = vrsqrt.f32 %v489_v18  ;;  %v547_v28 = vmul.f32 %v4562_v30, %v5314_v33 }
  0xc6   : > { %829 = vmatprep.mubr.bf16.mxu0 %v583_v19  ;;  %4573 = vrsqrt.f32 %v494_v26  ;;  %v7560_v26 = vld [vmem:[#allocation8_spill] sm:$0xff] }
  0xc7   : > { %v4564_v45 = vpop.eup %4563  ;;  %v587_v41 = vpack.c.bf16 %v548_v20, %v545_v6  ;;  %v586_v40 = vpack.c.bf16 %v547_v28, %v544_v27  ;;  %v7561_v28 = vld [vmem:[#allocation6_spill] sm:$0xff] }
  0xc8   : > { %v4566_v49 = vpop.eup %4565  ;;  %v551_v10 = vmul.f32 %v4564_v45, %v5362_v59  ;;  %v499_v54 = vpop.xlane.xlu0 %498  ;;  %v546_v59 = vmul.f32 %v4562_v30, %v5311_v32  ;;  %v550_v42 = vmul.f32 %v4564_v45, %v5359_v58  ;;  %v549_v23 = vmul.f32 %v4564_v45, %v5356_v57 }
  0xc9   : > { %4261 = vmatprep.mubr.msk.bf16.mxu1 %vm435_vm0, %v587_v41  ;;  %v554_v34 = vmul.f32 %v4566_v49, %v5347_v52  ;;  %v504_v62 = vpop.xlane.xlu1 %503  ;;  %4575 = vrsqrt.f32 %v499_v54  ;;  %v553_v53 = vmul.f32 %v4566_v49, %v5341_v47  ;;  %v7563_v41 = vld [vmem:[#allocation9_spill] sm:$0xff] }
  0xca   : > { %4577 = vrsqrt.f32 %v504_v62  ;;  %v585_v39 = vpack.c.bf16 %v546_v59, %v543_v48  ;;  %v5608_v48 = vld [vmem:[%s7535_s2] ss:$0 sm:$0xff] }
  0xcb   : > { %v4568_v33 = vpop.eup %4567  ;;  %v590_v5 = vpack.c.bf16 %v554_v34, %v551_v10  ;;  %v589_v3 = vpack.c.bf16 %v553_v53, %v550_v42 }
  0xcc   : > { %v4570_v15 = vpop.eup %4569  ;;  %v557_v12 = vmul.f32 %v4568_v33, %v5394_v22  ;;  %v509_v25 = vpop.xlane.xlu0 %508  ;;  %v556_v58 = vmul.f32 %v4568_v33, %v5391_v21  ;;  %v555_v21 = vmul.f32 %v4568_v33, %v5388_v17  ;;  %v7562_v17 = vld [vmem:[#allocation5_spill] sm:$0xff]  ;;  %v7565_v33 = vld [vmem:[#allocation11_spill] sm:$0xff] }
  0xcd   : > { %830 = vmatmul.mubr.bf16.gmra.mrb[4].mxu0 %v582_v4  ;;  %4262 = vmatmul.mubr.msk.bf16.gmra.mrb[4].mxu1 %vm435_vm0, %v590_v5  ;;  %v560_v52 = vmul.f32 %v4570_v15, %v5379_v9  ;;  %v514_v29 = vpop.xlane.xlu1 %513  ;;  %4579 = vrsqrt.f32 %v509_v25 }
  0xce   : > { %837 = vmatprep.mubr.bf16.mxu0 %v586_v40  ;;  %4581 = vrsqrt.f32 %v514_v29 }
  0xcf   : > { %v4572_v61 = vpop.eup %4571  ;;  %v593_v22 = vpack.c.bf16 %v560_v52, %v557_v12 }
  0xd0   : > { %v4574_v44 = vpop.eup %4573  ;;  %v563_v55 = vmul.f32 %v4572_v61, %v5426_v50  ;;  %v559_v50 = vmul.f32 %v4570_v15, %v5373_v1  ;;  %v558_v1 = vmul.f32 %v4570_v15, %v5370_v0  ;;  %v561_v45 = vmul.f32 %v4572_v61, %v7561_v28 }
  0xd1   : > { %4265 = vmatprep.mubr.msk.bf16.mxu1 %vm435_vm0, %v593_v22  ;;  %v566_v32 = vmul.f32 %v4574_v44, %v5411_v38  ;;  %v552_v38 = vmul.f32 %v4566_v49, %v5338_v46  ;;  %v562_v46 = vmul.f32 %v4572_v61, %v5417_v43  ;;  %v565_v57 = vmul.f32 %v4574_v44, %v5405_v31  ;;  %v7564_v43 = vld [vmem:[#allocation7_spill] sm:$0xff] }
  0xd2   : > { %v592_v30 = vpack.c.bf16 %v559_v50, %v556_v58  ;;  %v564_v51 = vmul.f32 %v4574_v44, %v7562_v17 }
  0xd3   : > { %v4576_v9 = vpop.eup %4575  ;;  %v596_v7 = vpack.c.bf16 %v566_v32, %v563_v55  ;;  %v595_v18 = vpack.c.bf16 %v565_v57, %v562_v46 }
  0xd4   : > { %v4578_v2 = vpop.eup %4577  ;;  %v569_v8 = vmul.f32 %v4576_v9, %v5445_v63  ;;  %v594_v35 = vpack.c.bf16 %v564_v51, %v561_v45  ;;  %v567_v49 = vmul.f32 %v4576_v9, %v7563_v41 }
  0xd5   : > { %838 = vmatmul.mubr.bf16.gmra.mrb[8].mxu0 %v585_v39  ;;  %4266 = vmatmul.mubr.msk.bf16.gmra.mrb[8].mxu1 %vm435_vm0, %v596_v7  ;;  %v572_v47 = vmul.f32 %v4578_v2, %v5452_v11  ;;  %v588_v11 = vpack.c.bf16 %v552_v38, %v549_v23  ;;  %v571_v27 = vmul.f32 %v4578_v2, %v7560_v26 }
  0xd6   : > { %845 = vmatprep.mubr.bf16.mxu0 %v589_v3  ;;  %v570_v10 = vmul.f32 %v4578_v2, %v7564_v43 }
  0xd7   : > { %v4580_v14 = vpop.eup %4579  ;;  %v599_v13 = vpack.c.bf16 %v572_v47, %v569_v8 }
  0xd8   : > { %v4582_v24 = vpop.eup %4581  ;;  %v575_v19 = vmul.f32 %v4580_v14, %v5496_v16  ;;  %v591_v16 = vpack.c.bf16 %v558_v1, %v555_v21  ;;  %v574_v31 = vmul.f32 %v4580_v14, %v5472_v37  ;;  %v597_v34 = vpack.c.bf16 %v570_v10, %v567_v49 }
  0xd9   : > { %4269 = vmatprep.mubr.msk.bf16.mxu1 %vm435_vm0, %v599_v13  ;;  %v578_v63 = vmul.f32 %v4582_v24, %v5479_v60  ;;  %v7559_v60 = vld [vmem:[#allocation10_spill] sm:$0xff]  ;;  %v577_v54 = vmul.f32 %v4582_v24, %v5476_v56  ;;  %v573_v40 = vmul.f32 %v4580_v14, %v5469_v36  ;;  %v576_v4 = vmul.f32 %v4582_v24, %v7565_v33 }
  0xda   : > { %v568_v20 = vmul.f32 %v4576_v9, %v7559_v60 }
  0xdb   : > { %v602_v6 = vpack.c.bf16 %v578_v63, %v575_v19  ;;  %v601_v62 = vpack.c.bf16 %v577_v54, %v574_v31  ;;  %v600_v5 = vpack.c.bf16 %v576_v4, %v573_v40 }
  0xdc   : > { %v598_v0 = vpack.c.bf16 %v571_v27, %v568_v20 }
  0xdd   : > { %846 = vmatmul.mubr.bf16.gmra.mrb[12].mxu0 %v588_v11  ;;  %4270 = vmatmul.mubr.msk.bf16.gmra.mrb[12].mxu1 %vm435_vm0, %v602_v6 }
  0xde   : > { %853 = vmatprep.mubr.bf16.mxu0 %v592_v30 }
  0xe5   : > { %854 = vmatmul.mubr.bf16.gmra.mrb[16].mxu0 %v591_v16 }
  0xe6   : > { %861 = vmatprep.mubr.bf16.mxu0 %v595_v18 }
  0xed   : > { %862 = vmatmul.mubr.bf16.gmra.mrb[20].mxu0 %v594_v35 }
  0xee   : > { %869 = vmatprep.mubr.bf16.mxu0 %v598_v0 }
  0xf5   : > { %870 = vmatmul.mubr.bf16.gmra.mrb[24].mxu0 %v597_v34 }
  0xf6   : > { %877 = vmatprep.mubr.bf16.mxu0 %v601_v62 }
  0xfd   : > { %878 = vmatmul.mubr.bf16.gmra.mrb[28].mxu0 %v600_v5 }
 0x198   : > { %v4112_v15 = vpop.f32.mrb[0].mxu0  ;;  %v4259_v12 = vpop.f32.mrb[0].mxu1 }
 0x199   : > { %v4113_v25 = vpop.f32.mrb[1].mxu0  ;;  %v920_v37 = vpop.f32.mrb[1].mxu1 }
 0x19a   : > { %v4114_v56 = vadd.f32 %v4113_v25, %v4112_v15  ;;  %v4115_v59 = vpop.f32.mrb[2].mxu0  ;;  %v4260_v52 = vpop.f32.mrb[2].mxu1 }
 0x19b   : > { %v4116_v29 = vpop.f32.mrb[3].mxu0  ;;  %v923_v42 = vpop.f32.mrb[3].mxu1 }
 0x19c   : > { %v824_v36 = vadd.f32 %v4114_v56, %v5608_v48  ;;  %v4117_v53 = vadd.f32 %v4116_v29, %v4115_v59 }
 0x19e   : > { %v5611_v61 = vadd.f32 %v920_v37, %v824_v36  ;;  %v827_v22 = vadd.f32 %v4117_v53, %v5608_v48 }
 0x1a0   : > { %v3907_v44 = vmul.f32 -1.442695, %v5611_v61  ;;  %v5615_v55 = vadd.f32 %v923_v42, %v827_v22  ;;  %v4118_v39 = vpop.f32.mrb[4].mxu0  ;;  %v4263_v32 = vpop.f32.mrb[4].mxu1 }
 0x1a1   : > { %v4119_v3 = vpop.f32.mrb[5].mxu0  ;;  %v936_v9 = vpop.f32.mrb[5].mxu1 }
 0x1a2   : > { %4583 = vpow2.f32 %v3907_v44  ;;  %v3908_v7 = vmul.f32 -1.442695, %v5615_v55  ;;  %v4120_v2 = vadd.f32 %v4119_v3, %v4118_v39  ;;  %v4121_v8 = vpop.f32.mrb[6].mxu0  ;;  %v4264_v47 = vpop.f32.mrb[6].mxu1 }
 0x1a3   : > { %v4122_v58 = vpop.f32.mrb[7].mxu0  ;;  %v939_v50 = vpop.f32.mrb[7].mxu1 }
 0x1a4   : > { %4585 = vpow2.f32 %v3908_v7  ;;  %v832_v14 = vadd.f32 %v4120_v2, %v5608_v48  ;;  %v4123_v23 = vadd.f32 %v4122_v58, %v4121_v8 }
 0x1a6   : > { %v5619_v38 = vadd.f32 %v4259_v12, %v832_v14  ;;  %v835_v13 = vadd.f32 %v4123_v23, %v5608_v48 }
 0x1a8   : > { %v3909_v24 = vmul.f32 -1.442695, %v5619_v38  ;;  %v5623_v19 = vadd.f32 %v4260_v52, %v835_v13  ;;  %v4124_v63 = vpop.f32.mrb[8].mxu0  ;;  %v5625_v30 = vpop.f32.mrb[8].mxu1 }
 0x1a9   : > { %v4125_v11 = vpop.f32.mrb[9].mxu0  ;;  %v5627_v6 = vpop.f32.mrb[9].mxu1 }
 0x1aa   : > { %4587 = vpow2.f32 %v3909_v24  ;;  %v3910_v21 = vmul.f32 -1.442695, %v5623_v19  ;;  %v4126_v1 = vadd.f32 %v4125_v11, %v4124_v63  ;;  %v4127_v46 = vpop.f32.mrb[10].mxu0  ;;  %v5630_v57 = vpop.f32.mrb[10].mxu1 }
 0x1ab   : > { %v4128_v16 = vpop.f32.mrb[11].mxu0  ;;  %v5632_v18 = vpop.f32.mrb[11].mxu1 }
 0x1ac   : > { %v4584_v60 = vpop.eup %4583  ;;  %4589 = vpow2.f32 %v3910_v21  ;;  %v840_v20 = vadd.f32 %v4126_v1, %v5608_v48  ;;  %v4129_v26 = vadd.f32 %v4128_v16, %v4127_v46 }
 0x1ad   : > { %v1031_v27 = vadd.f32 1.0, %v4584_v60 }
 0x1ae   : > { %v4586_v28 = vpop.eup %4585  ;;  %v5635_v45 = vadd.f32 %v936_v9, %v840_v20  ;;  %v843_v17 = vadd.f32 %v4129_v26, %v5608_v48 }
 0x1af   : > { %4591 = vrcp.f32 %v1031_v27  ;;  %v1032_v51 = vadd.f32 1.0, %v4586_v28 }
 0x1b0   : > { %v3911_v0 = vmul.f32 -1.442695, %v5635_v45  ;;  %v5639_v35 = vadd.f32 %v939_v50, %v843_v17  ;;  %v4130_v41 = vpop.f32.mrb[12].mxu0  ;;  %v5641_v49 = vpop.f32.mrb[12].mxu1 }
 0x1b1   : > { %4593 = vrcp.f32 %v1032_v51  ;;  %v4131_v43 = vpop.f32.mrb[13].mxu0  ;;  %v5643_v10 = vpop.f32.mrb[13].mxu1 }
 0x1b2   : > { %4595 = vpow2.f32 %v3911_v0  ;;  %v3912_v31 = vmul.f32 -1.442695, %v5639_v35  ;;  %v4132_v54 = vadd.f32 %v4131_v43, %v4130_v41  ;;  %v4133_v34 = vpop.f32.mrb[14].mxu0  ;;  %v5646_v62 = vpop.f32.mrb[14].mxu1 }
 0x1b3   : > { %v4134_v40 = vpop.f32.mrb[15].mxu0  ;;  %v5648_v33 = vpop.f32.mrb[15].mxu1 }
 0x1b4   : > { %v4588_v4 = vpop.eup %4587  ;;  %4597 = vpow2.f32 %v3912_v31  ;;  %v848_v5 = vadd.f32 %v4132_v54, %v5608_v48  ;;  %v4135_v15 = vadd.f32 %v4134_v40, %v4133_v34 }
 0x1b5   : > { %v1033_v12 = vadd.f32 1.0, %v4588_v4 }
 0x1b6   : > { %v4590_v25 = vpop.eup %4589  ;;  %v5651_v37 = vadd.f32 %v4263_v32, %v848_v5  ;;  %v851_v56 = vadd.f32 %v4135_v15, %v5608_v48 }
 0x1b7   : > { %4599 = vrcp.f32 %v1033_v12  ;;  %v1034_v59 = vadd.f32 1.0, %v4590_v25 }
 0x1b8   : > { %v3913_v52 = vmul.f32 -1.442695, %v5651_v37  ;;  %v5655_v29 = vadd.f32 %v4264_v47, %v851_v56  ;;  %v4136_v42 = vpop.f32.mrb[16].mxu0 }
 0x1b9   : > { %v4592_v36 = vpop.eup %4591  ;;  %4601 = vrcp.f32 %v1034_v59  ;;  %v4137_v53 = vpop.f32.mrb[17].mxu0 }
 0x1ba   : > { %v5658_v22 = vmul.f32 %v4592_v36, %v5611_v61  ;;  %4603 = vpow2.f32 %v3913_v52  ;;  %v3914_v44 = vmul.f32 -1.442695, %v5655_v29  ;;  %v4138_v39 = vadd.f32 %v4137_v53, %v4136_v42  ;;  %v4139_v32 = vpop.f32.mrb[18].mxu0 }
 0x1bb   : > { %v4594_v3 = vpop.eup %4593  ;;  %v4140_v9 = vpop.f32.mrb[19].mxu0 }
 0x1bc   : > { %v4596_v7 = vpop.eup %4595  ;;  %v5662_v2 = vmul.f32 %v4594_v3, %v5615_v55  ;;  %4605 = vpow2.f32 %v3914_v44  ;;  %v856_v8 = vadd.f32 %v4138_v39, %v5608_v48  ;;  %v4141_v47 = vadd.f32 %v4140_v9, %v4139_v32  ;;  %1095 = vadd.xlane.f32.xlu0 %v5658_v22 }
 0x1bd   : > { %v1035_v58 = vadd.f32 1.0, %v4596_v7  ;;  %v1143_v23 = vmul.f32 %v5658_v22, %v5658_v22 }
 0x1be   : > { %v4598_v61 = vpop.eup %4597  ;;  %v5667_v50 = vadd.f32 %v5627_v6, %v856_v8  ;;  %v859_v14 = vadd.f32 %v4141_v47, %v5608_v48  ;;  %1097 = vadd.xlane.f32.xlu1 %v5662_v2  ;;  %v1144_v11 = vmul.f32 %v5662_v2, %v5662_v2  ;;  %v4511_v8 = vld [vmem:[%s7536_s3] sm:$0xff]  }
 0x1bf   : > { %4607 = vrcp.f32 %v1035_v58  ;;  %v1036_v55 = vadd.f32 1.0, %v4598_v61  ;;  %4273 = vmatprep.subr.bf16.mxu1 %v4511_v8 }
 0x1c0   : > { %v3915_v13 = vmul.f32 -1.442695, %v5667_v50  ;;  %v5675_v24 = vadd.f32 %v5632_v18, %v859_v14  ;;  %1159 = vadd.xlane.f32.xlu0 %v1143_v23  ;;  %v4142_v63 = vpop.f32.mrb[20].mxu0  ;;  %4274 = vmatpush3.bf16.msra.mxu1 %v4511_v8 }
 0x1c1   : > { %v4600_v6 = vpop.eup %4599  ;;  %4609 = vrcp.f32 %v1036_v55  ;;  %v4143_v21 = vpop.f32.mrb[21].mxu0 }
 0x1c2   : > { %4611 = vpow2.f32 %v3915_v13  ;;  %v3916_v1 = vmul.f32 -1.442695, %v5675_v24  ;;  %v4144_v46 = vadd.f32 %v4143_v21, %v4142_v63  ;;  %1161 = vadd.xlane.f32.xlu1 %v1144_v11  ;;  %v4145_v16 = vpop.f32.mrb[22].mxu0  ;;  %v5681_v60 = vmul.f32 %v4600_v6, %v5619_v38 }
 0x1c3   : > { %v4602_v20 = vpop.eup %4601  ;;  %v4146_v18 = vpop.f32.mrb[23].mxu0 }
 0x1c4   : > { %v4604_v26 = vpop.eup %4603  ;;  %4613 = vpow2.f32 %v3916_v1  ;;  %v864_v27 = vadd.f32 %v4144_v46, %v5608_v48  ;;  %v4147_v28 = vadd.f32 %v4146_v18, %v4145_v16  ;;  %1099 = vadd.xlane.f32.xlu0 %v5681_v60  ;;  %v5686_v17 = vmul.f32 %v4602_v20, %v5623_v19  ;;  %v4512_v1 = vld [vmem:[%s7536_s3 + $0x8] sm:$0xff]  }
 0x1c5   : > { %v1037_v51 = vadd.f32 1.0, %v4604_v26  ;;  %v1145_v43 = vmul.f32 %v5681_v60, %v5681_v60  ;;  %4275 = vmatprep.subr.bf16.mxu1 %v4512_v1 }
 0x1c6   : > { %v4606_v0 = vpop.eup %4605  ;;  %v5689_v41 = vadd.f32 %v5625_v30, %v864_v27  ;;  %v867_v38 = vadd.f32 %v4147_v28, %v5608_v48  ;;  %1101 = vadd.xlane.f32.xlu1 %v5686_v17  ;;  %v1146_v30 = vmul.f32 %v5686_v17, %v5686_v17  ;;  %4276 = vmatpush3.bf16.msra.mxu1 %v4512_v1 }
 0x1c7   : > { %4615 = vrcp.f32 %v1037_v51  ;;  %v1038_v31 = vadd.f32 1.0, %v4606_v0 }
 0x1c8   : > { %v3917_v54 = vmul.f32 -1.442695, %v5689_v41  ;;  %v5697_v34 = vadd.f32 %v5630_v57, %v867_v38  ;;  %1163 = vadd.xlane.f32.xlu0 %v1145_v43  ;;  %v4148_v19 = vpop.f32.mrb[24].mxu0 }
 0x1c9   : > { %v4608_v40 = vpop.eup %4607  ;;  %4617 = vrcp.f32 %v1038_v31  ;;  %v4149_v4 = vpop.f32.mrb[25].mxu0  ;;  %v4514_v31 = vld [vmem:[%s7536_s3 + $0x18] sm:$0xff]  }
 0x1ca   : > { %v5702_v5 = vmul.f32 %v4608_v40, %v5635_v45  ;;  %4619 = vpow2.f32 %v3917_v54  ;;  %v3918_v15 = vmul.f32 -1.442695, %v5697_v34  ;;  %v4150_v12 = vadd.f32 %v4149_v4, %v4148_v19  ;;  %1165 = vadd.xlane.f32.xlu1 %v1146_v30  ;;  %v4151_v25 = vpop.f32.mrb[26].mxu0  ;;  %v4515_v40 = vld [vmem:[%s7536_s3 + $0x20] sm:$0xff]  }
 0x1cb   : > { %v4610_v56 = vpop.eup %4609  ;;  %v4152_v57 = vpop.f32.mrb[27].mxu0 }
 0x1cc   : > { %v4612_v59 = vpop.eup %4611  ;;  %v5706_v52 = vmul.f32 %v4610_v56, %v5639_v35  ;;  %4621 = vpow2.f32 %v3918_v15  ;;  %v4153_v42 = vadd.f32 %v4152_v57, %v4151_v25  ;;  %1103 = vadd.xlane.f32.xlu0 %v5702_v5  ;;  %v872_v36 = vadd.f32 %v4150_v12, %v5608_v48  ;;  %v4516_v57 = vld [vmem:[%s7536_s3 + $0x28] sm:$0xff]  }
 0x1cd   : > { %v1039_v45 = vadd.f32 1.0, %v4612_v59  ;;  %v1147_v32 = vmul.f32 %v5702_v5, %v5702_v5 }
 0x1ce   : > { %v4614_v53 = vpop.eup %4613  ;;  %v5711_v44 = vadd.f32 %v5643_v10, %v872_v36  ;;  %1105 = vadd.xlane.f32.xlu1 %v5706_v52  ;;  %v875_v39 = vadd.f32 %v4153_v42, %v5608_v48  ;;  %v1148_v10 = vmul.f32 %v5706_v52, %v5706_v52 }
 0x1cf   : > { %4623 = vrcp.f32 %v1039_v45  ;;  %v1040_v35 = vadd.f32 1.0, %v4614_v53  ;;  %v4517_v45 = vld [vmem:[%s7536_s3 + $0x30] sm:$0xff]  }
 0x1d0   : > { %v3919_v3 = vmul.f32 -1.442695, %v5711_v44  ;;  %v5719_v9 = vadd.f32 %v5648_v33, %v875_v39  ;;  %1167 = vadd.xlane.f32.xlu0 %v1147_v32  ;;  %v4154_v7 = vpop.f32.mrb[28].mxu0 }
 0x1d1   : > { %v4616_v47 = vpop.eup %4615  ;;  %4625 = vrcp.f32 %v1040_v35  ;;  %v4155_v58 = vpop.f32.mrb[29].mxu0 }
 0x1d2   : > { %4627 = vpow2.f32 %v3919_v3  ;;  %v3920_v61 = vmul.f32 -1.442695, %v5719_v9  ;;  %v4156_v14 = vadd.f32 %v4155_v58, %v4154_v7  ;;  %1169 = vadd.xlane.f32.xlu1 %v1148_v10  ;;  %v4157_v23 = vpop.f32.mrb[30].mxu0  ;;  %v5728_v33 = vmul.f32 %v4616_v47, %v5651_v37  ;;  %v4518_v3 = vld [vmem:[%s7536_s3 + $0x38] sm:$0xff]  }
 0x1d3   : > { %v4618_v55 = vpop.eup %4617  ;;  %v4158_v13 = vpop.f32.mrb[31].mxu0 }
 0x1d4   : > { %v4620_v63 = vpop.eup %4619  ;;  %4629 = vpow2.f32 %v3920_v61  ;;  %v880_v11 = vadd.f32 %v4156_v14, %v5608_v48  ;;  %v4159_v6 = vadd.f32 %v4158_v13, %v4157_v23  ;;  %1107 = vadd.xlane.f32.xlu0 %v5728_v33  ;;  %v5733_v21 = vmul.f32 %v4618_v55, %v5655_v29 }
 0x1d5   : > { %v1041_v37 = vadd.f32 1.0, %v4620_v63  ;;  %v1149_v18 = vmul.f32 %v5728_v33, %v5728_v33 }
 0x1d6   : > { %v4622_v46 = vpop.eup %4621  ;;  %v5739_v16 = vadd.f32 %v5641_v49, %v880_v11  ;;  %v883_v20 = vadd.f32 %v4159_v6, %v5608_v48  ;;  %1109 = vadd.xlane.f32.xlu1 %v5733_v21  ;;  %v1150_v49 = vmul.f32 %v5733_v21, %v5733_v21  ;;  %v4513_v48 = vld [vmem:[%s7536_s3 + $0x10] sm:$0xff]  }
 0x1d7   : > { %4631 = vrcp.f32 %v1041_v37  ;;  %v1042_v29 = vadd.f32 1.0, %v4622_v46  ;;  %4277 = vmatprep.subr.bf16.mxu1 %v4513_v48 }
 0x1d8   : > { %v3921_v26 = vmul.f32 -1.442695, %v5739_v16  ;;  %v5747_v27 = vadd.f32 %v5646_v62, %v883_v20  ;;  %1171 = vadd.xlane.f32.xlu0 %v1149_v18  ;;  %4278 = vmatpush3.bf16.msra.mxu1 %v4513_v48 }
 0x1d9   : > { %v4624_v28 = vpop.eup %4623  ;;  %4633 = vrcp.f32 %v1042_v29  ;;  %4279 = vmatprep.subr.bf16.mxu1 %v4514_v31 }
 0x1da   : > { %v5755_v51 = vmul.f32 %v4624_v28, %v5667_v50  ;;  %4635 = vpow2.f32 %v3921_v26  ;;  %v3922_v0 = vmul.f32 -1.442695, %v5747_v27  ;;  %1173 = vadd.xlane.f32.xlu1 %v1150_v49 }
 0x1db   : > { %v4626_v62 = vpop.eup %4625 }
 0x1dc   : > { %v4628_v38 = vpop.eup %4627  ;;  %v5759_v43 = vmul.f32 %v4626_v62, %v5675_v24  ;;  %4637 = vpow2.f32 %v3922_v0  ;;  %1111 = vadd.xlane.f32.xlu0 %v5755_v51  ;;  %v1151_v19 = vmul.f32 %v5755_v51, %v5755_v51  ;;  %4280 = vmatpush3.bf16.msra.mxu1 %v4514_v31 }
 0x1dd   : > { %v1043_v50 = vadd.f32 1.0, %v4628_v38  ;;  %4281 = vmatprep.subr.bf16.mxu1 %v4515_v40 }
 0x1de   : > { %v4630_v54 = vpop.eup %4629  ;;  %1113 = vadd.xlane.f32.xlu1 %v5759_v43  ;;  %v1152_v24 = vmul.f32 %v5759_v43, %v5759_v43 }
 0x1df   : > { %4639 = vrcp.f32 %v1043_v50  ;;  %v1044_v30 = vadd.f32 1.0, %v4630_v54 }
 0x1e0   : > { %1175 = vadd.xlane.f32.xlu0 %v1151_v19  ;;  %4282 = vmatpush3.bf16.msra.mxu1 %v4515_v40 }
 0x1e1   : > { %v4632_v4 = vpop.eup %4631  ;;  %4641 = vrcp.f32 %v1044_v30  ;;  %4283 = vmatprep.subr.bf16.mxu1 %v4516_v57 }
 0x1e2   : > { %1177 = vadd.xlane.f32.xlu1 %v1152_v24  ;;  %v5774_v15 = vmul.f32 %v4632_v4, %v5689_v41 }
 0x1e3   : > { %v4634_v12 = vpop.eup %4633 }
 0x1e4   : > { %v4636_v25 = vpop.eup %4635  ;;  %1115 = vadd.xlane.f32.xlu0 %v5774_v15  ;;  %v5778_v56 = vmul.f32 %v4634_v12, %v5697_v34  ;;  %v1153_v41 = vmul.f32 %v5774_v15, %v5774_v15  ;;  %4284 = vmatpush3.bf16.msra.mxu1 %v4516_v57 }
 0x1e5   : > { %v1045_v59 = vadd.f32 1.0, %v4636_v25  ;;  %4285 = vmatprep.subr.bf16.mxu1 %v4517_v45 }
 0x1e6   : > { %v4638_v42 = vpop.eup %4637  ;;  %1117 = vadd.xlane.f32.xlu1 %v5778_v56  ;;  %v1154_v34 = vmul.f32 %v5778_v56, %v5778_v56 }
 0x1e7   : > { %4643 = vrcp.f32 %v1045_v59  ;;  %v1046_v36 = vadd.f32 1.0, %v4638_v42 }
 0x1e8   : > { %1179 = vadd.xlane.f32.xlu0 %v1153_v41  ;;  %4286 = vmatpush3.bf16.msra.mxu1 %v4517_v45  ;;  %v5826_v41 = vld [vmem:[%s7538_s5] ss:$0 sm:$0xff] }
 0x1e9   : > { %v4640_v53 = vpop.eup %4639  ;;  %4645 = vrcp.f32 %v1046_v36  ;;  %4287 = vmatprep.subr.bf16.mxu1 %v4518_v3 }
 0x1ea   : > { %v5792_v39 = vmul.f32 %v4640_v53, %v5711_v44  ;;  %1181 = vadd.xlane.f32.xlu1 %v1154_v34 }
 0x1eb   : > { %v4642_v32 = vpop.eup %4641 }
 0x1ec   : > { %v5795_v35 = vmul.f32 %v4642_v32, %v5719_v9  ;;  %1119 = vadd.xlane.f32.xlu0 %v5792_v39  ;;  %v1155_v7 = vmul.f32 %v5792_v39, %v5792_v39  ;;  %4288 = vmatpush3.bf16.msra.mxu1 %v4518_v3 }
 0x1ee   : > { %1121 = vadd.xlane.f32.xlu1 %v5795_v35  ;;  %v1156_v44 = vmul.f32 %v5795_v35, %v5795_v35 }
 0x1f0   : > { %1183 = vadd.xlane.f32.xlu0 %v1155_v7 }
 0x1f1   : > { %v4644_v10 = vpop.eup %4643 }
 0x1f2   : > { %1185 = vadd.xlane.f32.xlu1 %v1156_v44  ;;  %v5807_v9 = vmul.f32 %v4644_v10, %v5739_v16 }
 0x1f3   : > { %v4646_v8 = vpop.eup %4645 }
 0x1f4   : > { %1123 = vadd.xlane.f32.xlu0 %v5807_v9  ;;  %v5811_v47 = vmul.f32 %v4646_v8, %v5747_v27  ;;  %v1157_v58 = vmul.f32 %v5807_v9, %v5807_v9 }
 0x1f6   : > { %1125 = vadd.xlane.f32.xlu1 %v5811_v47  ;;  %v1158_v61 = vmul.f32 %v5811_v47, %v5811_v47 }
 0x1f8   : > { %1187 = vadd.xlane.f32.xlu0 %v1157_v58 }
 0x1fa   : > { %1189 = vadd.xlane.f32.xlu1 %v1158_v61 }
 0x249   : > { %v1096_v14 = vpop.xlane.xlu0 %1095 }
 0x24a   : > { %v1127_v23 = vmul.f32 0.0078125, %v1096_v14 }
 0x24b   : > { %v1098_v55 = vpop.xlane.xlu1 %1097 }
 0x24c   : > { %v1128_v13 = vmul.f32 0.0078125, %v1098_v55  ;;  %v1207_v11 = vmul.f32 %v1127_v23, %v1127_v23  ;;  %v1239_v25 = vsub.f32 %v5658_v22, %v1127_v23 }
 0x24d   : > { %v1160_v63 = vpop.xlane.xlu0 %1159 }
 0x24e   : > { %v1191_v6 = vmul.f32 0.0078125, %v1160_v63  ;;  %v1208_v37 = vmul.f32 %v1128_v13, %v1128_v13  ;;  %v1240_v45 = vsub.f32 %v5662_v2, %v1128_v13  ;;  %v5839_v2 = vld [vmem:[%s7539_s6] ss:$0 sm:$0xff] }
 0x24f   : > { %v1162_v1 = vpop.xlane.xlu1 %1161 }
 0x250   : > { %v1223_v46 = vsub.f32 %v1191_v6, %v1207_v11  ;;  %v1192_v16 = vmul.f32 0.0078125, %v1162_v1 }
 0x251   : > { %v1100_v20 = vpop.xlane.xlu0 %1099 }
 0x252   : > { %v1255_v18 = vadd.f32 0.1, %v1223_v46  ;;  %v1224_v29 = vsub.f32 %v1192_v16, %v1208_v37  ;;  %v1129_v26 = vmul.f32 0.0078125, %v1100_v20 }
 0x253   : > { %v1102_v27 = vpop.xlane.xlu1 %1101 }
 0x254   : > { %4647 = vrsqrt.f32 %v1255_v18  ;;  %v1256_v49 = vadd.f32 0.1, %v1224_v29  ;;  %v1130_v48 = vmul.f32 0.0078125, %v1102_v27  ;;  %v1209_v0 = vmul.f32 %v1129_v26, %v1129_v26 }
 0x255   : > { %v1164_v28 = vpop.xlane.xlu0 %1163  ;;  %v1241_v11 = vsub.f32 %v5681_v60, %v1129_v26 }
 0x256   : > { %4649 = vrsqrt.f32 %v1256_v49  ;;  %v1193_v62 = vmul.f32 0.0078125, %v1164_v28  ;;  %v1210_v31 = vmul.f32 %v1130_v48, %v1130_v48  ;;  %v1242_v29 = vsub.f32 %v5686_v17, %v1130_v48 }
 0x257   : > { %v1166_v38 = vpop.xlane.xlu1 %1165 }
 0x258   : > { %v1225_v50 = vsub.f32 %v1193_v62, %v1209_v0  ;;  %v1194_v54 = vmul.f32 0.0078125, %v1166_v38 }
 0x259   : > { %v1104_v19 = vpop.xlane.xlu0 %1103 }
 0x25a   : > { %v1257_v30 = vadd.f32 0.1, %v1225_v50  ;;  %v1226_v24 = vsub.f32 %v1194_v54, %v1210_v31  ;;  %v5818_v40 = vmul.f32 0.0078125, %v1104_v19 }
 0x25b   : > { %v1106_v4 = vpop.xlane.xlu1 %1105 }
 0x25c   : > { %4651 = vrsqrt.f32 %v1257_v30  ;;  %v1258_v12 = vadd.f32 0.1, %v1226_v24  ;;  %v5821_v57 = vmul.f32 0.0078125, %v1106_v4  ;;  %v1211_v36 = vmul.f32 %v5818_v40, %v5818_v40 }
 0x25d   : > { %v1168_v59 = vpop.xlane.xlu0 %1167  ;;  %v1243_v4 = vsub.f32 %v5702_v5, %v5818_v40 }
 0x25e   : > { %v4648_v42 = vpop.eup %4647  ;;  %4653 = vrsqrt.f32 %v1258_v12  ;;  %v1195_v34 = vmul.f32 0.0078125, %v1168_v59  ;;  %v1212_v22 = vmul.f32 %v5821_v57, %v5821_v57 }
 0x25f   : > { %v1170_v53 = vpop.xlane.xlu1 %1169  ;;  %v1287_v32 = vmul.f32 %v4648_v42, %v1239_v25 }
 0x260   : > { %v4650_v3 = vpop.eup %4649  ;;  %v1227_v7 = vsub.f32 %v1195_v34, %v1211_v36  ;;  %v1196_v44 = vmul.f32 0.0078125, %v1170_v53  ;;  %v1244_v53 = vsub.f32 %v5706_v52, %v5821_v57 }
 0x261   : > { %v1108_v10 = vpop.xlane.xlu0 %1107  ;;  %v1288_v8 = vmul.f32 %v4650_v3, %v1240_v45  ;;  %v1308_v58 = vmul.f32 %v5826_v41, %v1287_v32 }
 0x262   : > { %v1259_v61 = vadd.f32 0.1, %v1227_v7  ;;  %v1228_v14 = vsub.f32 %v1196_v44, %v1212_v22  ;;  %v5834_v23 = vmul.f32 0.0078125, %v1108_v10 }
 0x263   : > { %v1110_v55 = vpop.xlane.xlu1 %1109  ;;  %v1309_v13 = vmul.f32 %v5826_v41, %v1288_v8  ;;  %v5846_v37 = vadd.f32 %v5839_v2, %v1308_v58 }
 0x264   : > { %4655 = vrsqrt.f32 %v1259_v61  ;;  %v1260_v63 = vadd.f32 0.1, %v1228_v14  ;;  %v5843_v6 = vmul.f32 0.0078125, %v1110_v55  ;;  %v1213_v20 = vmul.f32 %v5834_v23, %v5834_v23 }
 0x265   : > { %v1172_v1 = vpop.xlane.xlu0 %1171  ;;  %v5849_v46 = vadd.f32 %v5839_v2, %v1309_v13 }
 0x266   : > { %v4652_v16 = vpop.eup %4651  ;;  %4657 = vrsqrt.f32 %v1260_v63  ;;  %v1197_v18 = vmul.f32 0.0078125, %v1172_v1  ;;  %v1214_v28 = vmul.f32 %v5843_v6, %v5843_v6  ;;  %v1245_v63 = vsub.f32 %v5728_v33, %v5834_v23 }
 0x267   : > { %v1289_v27 = vmul.f32 %v4652_v16, %v1241_v11  ;;  %v1174_v49 = vpop.xlane.xlu1 %1173  ;;  %v1345_v60 = vpack.c.bf16 %v5849_v46, %v5846_v37 }
 0x268   : > { %v4654_v26 = vpop.eup %4653  ;;  %v1229_v0 = vsub.f32 %v1197_v18, %v1213_v20  ;;  %v1198_v62 = vmul.f32 0.0078125, %v1174_v49  ;;  %v1246_v49 = vsub.f32 %v5733_v21, %v5843_v6 }
 0x269   : > { %v1310_v38 = vmul.f32 %v5826_v41, %v1289_v27  ;;  %v1290_v31 = vmul.f32 %v4654_v26, %v1242_v29  ;;  %4289 = vmatprep.mubr.bf16.mxu1 %v1345_v60  ;;  %v1112_v50 = vpop.xlane.xlu0 %1111 }
 0x26a   : > { %v1261_v54 = vadd.f32 0.1, %v1229_v0  ;;  %v1230_v19 = vsub.f32 %v1198_v62, %v1214_v28  ;;  %v5859_v30 = vmul.f32 0.0078125, %v1112_v50 }
 0x26b   : > { %v1311_v17 = vmul.f32 %v5826_v41, %v1290_v31  ;;  %v1114_v48 = vpop.xlane.xlu1 %1113  ;;  %v5867_v59 = vadd.f32 %v5839_v2, %v1310_v38 }
 0x26c   : > { %4659 = vrsqrt.f32 %v1261_v54  ;;  %v1262_v24 = vadd.f32 0.1, %v1230_v19  ;;  %v5864_v12 = vmul.f32 0.0078125, %v1114_v48  ;;  %v1215_v34 = vmul.f32 %v5859_v30, %v5859_v30 }
 0x26d   : > { %v1176_v25 = vpop.xlane.xlu0 %1175  ;;  %v5870_v42 = vadd.f32 %v5839_v2, %v1311_v17 }
 0x26e   : > { %v4656_v36 = vpop.eup %4655  ;;  %4661 = vrsqrt.f32 %v1262_v24  ;;  %v1199_v45 = vmul.f32 0.0078125, %v1176_v25  ;;  %v1216_v22 = vmul.f32 %v5864_v12, %v5864_v12  ;;  %v1247_v24 = vsub.f32 %v5755_v51, %v5859_v30 }
 0x26f   : > { %v1178_v32 = vpop.xlane.xlu1 %1177  ;;  %v1346_v5 = vpack.c.bf16 %v5870_v42, %v5867_v59  ;;  %v1291_v40 = vmul.f32 %v4656_v36, %v1243_v4 }
 0x270   : > { %v4658_v3 = vpop.eup %4657  ;;  %v1231_v7 = vsub.f32 %v1199_v45, %v1215_v34  ;;  %v1200_v44 = vmul.f32 0.0078125, %v1178_v32 }
 0x271   : > { %4290 = vmatmul.mubr.bf16.vlgmr.msra.gmra.mrb[16].mxu1 %v1346_v5  ;;  %v1116_v10 = vpop.xlane.xlu0 %1115  ;;  %v1292_v8 = vmul.f32 %v4658_v3, %v1244_v53  ;;  %v1312_v58 = vmul.f32 %v5826_v41, %v1291_v40  ;;  %v1248_v5 = vsub.f32 %v5759_v43, %v5864_v12 }
 0x272   : > { %v1263_v61 = vadd.f32 0.1, %v1231_v7  ;;  %v1232_v14 = vsub.f32 %v1200_v44, %v1216_v22  ;;  %v5881_v55 = vmul.f32 0.0078125, %v1116_v10 }
 0x273   : > { %v1118_v52 = vpop.xlane.xlu1 %1117  ;;  %v1313_v57 = vmul.f32 %v5826_v41, %v1292_v8  ;;  %v5889_v16 = vadd.f32 %v5839_v2, %v1312_v58 }
 0x274   : > { %4663 = vrsqrt.f32 %v1263_v61  ;;  %v1264_v13 = vadd.f32 0.1, %v1232_v14  ;;  %v5886_v11 = vmul.f32 0.0078125, %v1118_v52  ;;  %v1217_v29 = vmul.f32 %v5881_v55, %v5881_v55 }
 0x275   : > { %v1180_v1 = vpop.xlane.xlu0 %1179  ;;  %v5892_v20 = vadd.f32 %v5839_v2, %v1313_v57 }
 0x276   : > { %v4660_v18 = vpop.eup %4659  ;;  %4665 = vrsqrt.f32 %v1264_v13  ;;  %v1201_v27 = vmul.f32 0.0078125, %v1180_v1  ;;  %v1218_v28 = vmul.f32 %v5886_v11, %v5886_v11  ;;  %v1249_v13 = vsub.f32 %v5774_v15, %v5881_v55 }
 0x277   : > { %v1182_v60 = vpop.xlane.xlu1 %1181  ;;  %v1347_v33 = vpack.c.bf16 %v5892_v20, %v5889_v16  ;;  %v1293_v23 = vmul.f32 %v4660_v18, %v1245_v63 }
 0x278   : > { %v4662_v26 = vpop.eup %4661  ;;  %v1233_v0 = vsub.f32 %v1201_v27, %v1217_v29  ;;  %v1202_v62 = vmul.f32 0.0078125, %v1182_v60 }
 0x279   : > { %4293 = vmatprep.mubr.bf16.mxu1 %v1347_v33  ;;  %v1120_v38 = vpop.xlane.xlu0 %1119  ;;  %v1294_v31 = vmul.f32 %v4662_v26, %v1246_v49  ;;  %v1314_v50 = vmul.f32 %v5826_v41, %v1293_v23  ;;  %v1250_v33 = vsub.f32 %v5778_v56, %v5886_v11 }
 0x27a   : > { %v1265_v54 = vadd.f32 0.1, %v1233_v0  ;;  %v1234_v19 = vsub.f32 %v1202_v62, %v1218_v28  ;;  %v5903_v17 = vmul.f32 0.0078125, %v1120_v38 }
 0x27b   : > { %v1122_v21 = vpop.xlane.xlu1 %1121  ;;  %v1315_v6 = vmul.f32 %v5826_v41, %v1294_v31  ;;  %v5911_v36 = vadd.f32 %v5839_v2, %v1314_v50 }
 0x27c   : > { %4667 = vrsqrt.f32 %v1265_v54  ;;  %v1266_v48 = vadd.f32 0.1, %v1234_v19  ;;  %v5908_v4 = vmul.f32 0.0078125, %v1122_v21  ;;  %v1219_v53 = vmul.f32 %v5903_v17, %v5903_v17 }
 0x27d   : > { %v1184_v25 = vpop.xlane.xlu0 %1183  ;;  %v5914_v34 = vadd.f32 %v5839_v2, %v1315_v6  ;;  %v1251_v56 = vsub.f32 %v5792_v39, %v5903_v17 }
 0x27e   : > { %v4664_v45 = vpop.eup %4663  ;;  %4669 = vrsqrt.f32 %v1266_v48  ;;  %v1203_v32 = vmul.f32 0.0078125, %v1184_v25  ;;  %v1220_v22 = vmul.f32 %v5908_v4, %v5908_v4 }
 0x27f   : > { %v1186_v40 = vpop.xlane.xlu1 %1185  ;;  %v1348_v51 = vpack.c.bf16 %v5914_v34, %v5911_v36  ;;  %v1295_v30 = vmul.f32 %v4664_v45, %v1247_v24  ;;  %v1252_v24 = vsub.f32 %v5795_v35, %v5908_v4 }
 0x280   : > { %v4666_v3 = vpop.eup %4665  ;;  %v1235_v7 = vsub.f32 %v1203_v32, %v1219_v53  ;;  %v1204_v44 = vmul.f32 0.0078125, %v1186_v40 }
 0x281   : > { %4294 = vmatmul.mubr.bf16.gmra.mrb[20].mxu1 %v1348_v51  ;;  %v1124_v10 = vpop.xlane.xlu0 %1123  ;;  %v1296_v8 = vmul.f32 %v4666_v3, %v1248_v5  ;;  %v1316_v58 = vmul.f32 %v5826_v41, %v1295_v30 }
 0x282   : > { %v1267_v61 = vadd.f32 0.1, %v1235_v7  ;;  %v1236_v14 = vsub.f32 %v1204_v44, %v1220_v22  ;;  %v1141_v52 = vmul.f32 0.0078125, %v1124_v10 }
 0x283   : > { %v1126_v43 = vpop.xlane.xlu1 %1125  ;;  %v1317_v12 = vmul.f32 %v5826_v41, %v1296_v8  ;;  %v5929_v18 = vadd.f32 %v5839_v2, %v1316_v58  ;;  %v5977_v58 = vld [vmem:[%s7537_s4] ss:$0 sm:$0xff] }
 0x284   : > { %4671 = vrsqrt.f32 %v1267_v61  ;;  %v1268_v57 = vadd.f32 0.1, %v1236_v14  ;;  %v1142_v63 = vmul.f32 0.0078125, %v1126_v43  ;;  %v1221_v49 = vmul.f32 %v1141_v52, %v1141_v52 }
 0x285   : > { %v1188_v1 = vpop.xlane.xlu0 %1187  ;;  %v5932_v29 = vadd.f32 %v5839_v2, %v1317_v12  ;;  %v1253_v5 = vsub.f32 %v5807_v9, %v1141_v52 }
 0x286   : > { %v4668_v27 = vpop.eup %4667  ;;  %4673 = vrsqrt.f32 %v1268_v57  ;;  %v1205_v60 = vmul.f32 0.0078125, %v1188_v1  ;;  %v1222_v28 = vmul.f32 %v1142_v63, %v1142_v63  ;;  %v1254_v4 = vsub.f32 %v5811_v47, %v1142_v63 }
 0x287   : > { %v1190_v23 = vpop.xlane.xlu1 %1189  ;;  %v1349_v26 = vpack.c.bf16 %v5932_v29, %v5929_v18  ;;  %v1297_v15 = vmul.f32 %v4668_v27, %v1249_v13 }
 0x288   : > { %v4670_v55 = vpop.eup %4669  ;;  %v1237_v0 = vsub.f32 %v1205_v60, %v1221_v49  ;;  %v1206_v62 = vmul.f32 0.0078125, %v1190_v23 }
 0x289   : > { %4297 = vmatprep.mubr.bf16.mxu1 %v1349_v26  ;;  %v1298_v38 = vmul.f32 %v4670_v55, %v1250_v33  ;;  %v1318_v31 = vmul.f32 %v5826_v41, %v1297_v15 }
 0x28a   : > { %v1269_v50 = vadd.f32 0.1, %v1237_v0  ;;  %v1238_v54 = vsub.f32 %v1206_v62, %v1222_v28 }
 0x28b   : > { %v1319_v19 = vmul.f32 %v5826_v41, %v1298_v38  ;;  %v5943_v11 = vadd.f32 %v5839_v2, %v1318_v31 }
 0x28c   : > { %4675 = vrsqrt.f32 %v1269_v50  ;;  %v1270_v21 = vadd.f32 0.1, %v1238_v54 }
 0x28d   : > { %v5946_v6 = vadd.f32 %v5839_v2, %v1319_v19 }
 0x28e   : > { %v4672_v48 = vpop.eup %4671  ;;  %4677 = vrsqrt.f32 %v1270_v21 }
 0x28f   : > { %v1350_v25 = vpack.c.bf16 %v5946_v6, %v5943_v11  ;;  %v1299_v45 = vmul.f32 %v4672_v48, %v1251_v56 }
 0x290   : > { %v4674_v53 = vpop.eup %4673 }
 0x291   : > { %4298 = vmatmul.mubr.bf16.gmra.mrb[24].mxu1 %v1350_v25  ;;  %v1300_v32 = vmul.f32 %v4674_v53, %v1252_v24  ;;  %v1320_v39 = vmul.f32 %v5826_v41, %v1299_v45 }
 0x293   : > { %v1321_v17 = vmul.f32 %v5826_v41, %v1300_v32  ;;  %v5956_v40 = vadd.f32 %v5839_v2, %v1320_v39 }
 0x295   : > { %v5959_v51 = vadd.f32 %v5839_v2, %v1321_v17 }
 0x296   : > { %v4676_v35 = vpop.eup %4675 }
 0x297   : > { %v1351_v30 = vpack.c.bf16 %v5959_v51, %v5956_v40  ;;  %v1301_v3 = vmul.f32 %v4676_v35, %v1253_v5 }
 0x298   : > { %v4678_v22 = vpop.eup %4677 }
 0x299   : > { %4301 = vmatprep.mubr.bf16.mxu1 %v1351_v30  ;;  %v1302_v7 = vmul.f32 %v4678_v22, %v1254_v4  ;;  %v1322_v44 = vmul.f32 %v5826_v41, %v1301_v3 }
 0x29b   : > { %v1323_v9 = vmul.f32 %v5826_v41, %v1302_v7  ;;  %v5967_v10 = vadd.f32 %v5839_v2, %v1322_v44 }
 0x29d   : > { %v5970_v8 = vadd.f32 %v5839_v2, %v1323_v9 }
 0x29f   : > { %v1352_v47 = vpack.c.bf16 %v5970_v8, %v5967_v10 }
 0x2a1   : > { %4302 = vmatmul.mubr.bf16.gmra.mrb[28].mxu1 %v1352_v47 }
 0x344   : > { %v4291_v61 = vpop.f32.mrb[16].mxu1 }
 0x345   : > { %v1465_v14 = vadd.f32 %v4291_v61, %v5977_v58  ;;  %v1456_v52 = vpop.f32.mrb[17].mxu1 }
 0x346   : > { %v1457_v41 = vadd.f32 %v5977_v58, %v1456_v52  ;;  %v4292_v43 = vpop.f32.mrb[18].mxu1 }
 0x347   : > { %v1521_v12 = vadd.f32 %v1465_v14, %v5867_v59  ;;  %v1468_v2 = vadd.f32 %v4292_v43, %v5977_v58  ;;  %v1459_v57 = vpop.f32.mrb[19].mxu1 }
 0x348   : > { %v5984_v13 = vadd.f32 %v1457_v41, %v5846_v37  ;;  %v1460_v63 = vadd.f32 %v5977_v58, %v1459_v57 }
 0x349   : > { %v3936_v1 = vmul.f32 -1.442695, %v1521_v12  ;;  %v1522_v27 = vadd.f32 %v1468_v2, %v5870_v42 }
 0x34a   : > { %v3934_v49 = vmul.f32 -1.442695, %v5984_v13  ;;  %v5990_v60 = vadd.f32 %v1460_v63, %v5849_v46 }
 0x34b   : > { %4679 = vpow2.f32 %v3936_v1  ;;  %v3937_v33 = vmul.f32 -1.442695, %v1522_v27 }
 0x34c   : > { %4681 = vpow2.f32 %v3934_v49  ;;  %v3935_v23 = vmul.f32 -1.442695, %v5990_v60 }
 0x34d   : > { %4683 = vpow2.f32 %v3937_v33 }
 0x34e   : > { %4685 = vpow2.f32 %v3935_v23 }
 0x354   : > { %v4295_v26 = vpop.f32.mrb[20].mxu1 }
 0x355   : > { %v4680_v15 = vpop.eup %4679  ;;  %v1481_v55 = vadd.f32 %v4295_v26, %v5977_v58  ;;  %v1472_v28 = vpop.f32.mrb[21].mxu1 }
 0x356   : > { %v4682_v0 = vpop.eup %4681  ;;  %v1585_v62 = vadd.f32 1.0, %v4680_v15  ;;  %v1473_v38 = vadd.f32 %v5977_v58, %v1472_v28  ;;  %v4296_v31 = vpop.f32.mrb[22].mxu1 }
 0x357   : > { %v4684_v50 = vpop.eup %4683  ;;  %v1583_v54 = vadd.f32 1.0, %v4682_v0  ;;  %v5996_v19 = vadd.f32 %v1481_v55, %v5911_v36  ;;  %v1484_v21 = vadd.f32 %v4296_v31, %v5977_v58  ;;  %v1475_v56 = vpop.f32.mrb[23].mxu1 }
 0x358   : > { %v4686_v48 = vpop.eup %4685  ;;  %4687 = vrcp.f32 %v1585_v62  ;;  %v1586_v24 = vadd.f32 1.0, %v4684_v50  ;;  %v6000_v25 = vadd.f32 %v1473_v38, %v5889_v16  ;;  %v1476_v45 = vadd.f32 %v5977_v58, %v1475_v56 }
 0x359   : > { %4689 = vrcp.f32 %v1583_v54  ;;  %v1584_v53 = vadd.f32 1.0, %v4686_v48  ;;  %v3940_v32 = vmul.f32 -1.442695, %v5996_v19  ;;  %v6005_v39 = vadd.f32 %v1484_v21, %v5914_v34 }
 0x35a   : > { %4691 = vrcp.f32 %v1586_v24  ;;  %v3938_v17 = vmul.f32 -1.442695, %v6000_v25  ;;  %v6009_v5 = vadd.f32 %v1476_v45, %v5892_v20 }
 0x35b   : > { %4693 = vrcp.f32 %v1584_v53  ;;  %v3941_v35 = vmul.f32 -1.442695, %v6005_v39 }
 0x35c   : > { %4695 = vpow2.f32 %v3940_v32  ;;  %v3939_v4 = vmul.f32 -1.442695, %v6009_v5 }
 0x35d   : > { %4697 = vpow2.f32 %v3938_v17 }
 0x35e   : > { %4699 = vpow2.f32 %v3941_v35 }
 0x35f   : > { %4701 = vpow2.f32 %v3939_v4 }
 0x362   : > { %v4688_v30 = vpop.eup %4687 }
 0x363   : > { %v4690_v3 = vpop.eup %4689  ;;  %v6013_v22 = vmul.f32 %v4688_v30, %v1521_v12 }
 0x364   : > { %v4692_v7 = vpop.eup %4691  ;;  %v4299_v44 = vpop.f32.mrb[24].mxu1  ;;  %v6026_v49 = vmul.f32 %v4690_v3, %v5984_v13 }
 0x365   : > { %v4694_v9 = vpop.eup %4693  ;;  %v1497_v47 = vadd.f32 %v4299_v44, %v5977_v58  ;;  %1651 = vadd.xlane.f32.xlu0 %v6013_v22  ;;  %v1488_v61 = vpop.f32.mrb[25].mxu1  ;;  %v6017_v14 = vmul.f32 %v4692_v7, %v1522_v27  ;;  %v1697_v50 = vmul.f32 %v6013_v22, %v6013_v22 }
 0x366   : > { %v4696_v52 = vpop.eup %4695  ;;  %v1489_v41 = vadd.f32 %v5977_v58, %v1488_v61  ;;  %v4300_v43 = vpop.f32.mrb[26].mxu1  ;;  %v6033_v15 = vmul.f32 %v4694_v9, %v5990_v60  ;;  %v1695_v56 = vmul.f32 %v6026_v49, %v6026_v49 }
 0x367   : > { %v4698_v2 = vpop.eup %4697  ;;  %v1589_v57 = vadd.f32 1.0, %v4696_v52  ;;  %v6021_v63 = vadd.f32 %v1497_v47, %v5943_v11  ;;  %v1500_v12 = vadd.f32 %v4300_v43, %v5977_v58  ;;  %1653 = vadd.xlane.f32.xlu1 %v6017_v14  ;;  %v1491_v1 = vpop.f32.mrb[27].mxu1  ;;  %v1698_v21 = vmul.f32 %v6017_v14, %v6017_v14 }
 0x368   : > { %v4700_v33 = vpop.eup %4699  ;;  %v1587_v27 = vadd.f32 1.0, %v4698_v2  ;;  %v6029_v23 = vadd.f32 %v1489_v41, %v5929_v18  ;;  %v1492_v26 = vadd.f32 %v5977_v58, %v1491_v1  ;;  %v1696_v48 = vmul.f32 %v6033_v15, %v6033_v15 }
 0x369   : > { %v4702_v55 = vpop.eup %4701  ;;  %4703 = vrcp.f32 %v1589_v57  ;;  %v1590_v28 = vadd.f32 1.0, %v4700_v33  ;;  %v3944_v0 = vmul.f32 -1.442695, %v6021_v63  ;;  %v6037_v62 = vadd.f32 %v1500_v12, %v5946_v6  ;;  %1647 = vadd.xlane.f32.xlu0 %v6026_v49 }
 0x36a   : > { %4705 = vrcp.f32 %v1587_v27  ;;  %v1588_v13 = vadd.f32 1.0, %v4702_v55  ;;  %v3942_v38 = vmul.f32 -1.442695, %v6029_v23  ;;  %v6042_v31 = vadd.f32 %v1492_v26, %v5932_v29 }
 0x36b   : > { %4707 = vrcp.f32 %v1590_v28  ;;  %v3945_v60 = vmul.f32 -1.442695, %v6037_v62  ;;  %1649 = vadd.xlane.f32.xlu1 %v6033_v15 }
 0x36c   : > { %4709 = vrcp.f32 %v1588_v13  ;;  %v3943_v54 = vmul.f32 -1.442695, %v6042_v31 }
 0x36d   : > { %4711 = vpow2.f32 %v3944_v0  ;;  %1715 = vadd.xlane.f32.xlu0 %v1697_v50  ;;  %v4519_v0 = vld [vmem:[%s7536_s3 + $0x40] sm:$0xff]  }
 0x36e   : > { %4713 = vpow2.f32 %v3942_v38  ;;  %4305 = vmatprep.subr.bf16.mxu1 %v4519_v0 }
 0x36f   : > { %4715 = vpow2.f32 %v3945_v60  ;;  %1717 = vadd.xlane.f32.xlu1 %v1698_v21  ;;  %4306 = vmatpush3.bf16.msra.mxu1 %v4519_v0 }
 0x370   : > { %4717 = vpow2.f32 %v3943_v54  ;;  %v4520_v54 = vld [vmem:[%s7536_s3 + $0x48] sm:$0xff]  }
 0x371   : > { %1711 = vadd.xlane.f32.xlu0 %v1695_v56  ;;  %4307 = vmatprep.subr.bf16.mxu1 %v4520_v54 }
 0x373   : > { %v4704_v24 = vpop.eup %4703  ;;  %1713 = vadd.xlane.f32.xlu1 %v1696_v48  ;;  %4308 = vmatpush3.bf16.msra.mxu1 %v4520_v54  ;;  %v4521_v48 = vld [vmem:[%s7536_s3 + $0x50] sm:$0xff]  }
 0x374   : > { %v4706_v45 = vpop.eup %4705  ;;  %v4303_v53 = vpop.f32.mrb[28].mxu1  ;;  %v6056_v32 = vmul.f32 %v4704_v24, %v5996_v19  ;;  %4309 = vmatprep.subr.bf16.mxu1 %v4521_v48 }
 0x375   : > { %v4708_v17 = vpop.eup %4707  ;;  %v1513_v35 = vadd.f32 %v4303_v53, %v5977_v58  ;;  %v1504_v4 = vpop.f32.mrb[29].mxu1  ;;  %v6074_v57 = vmul.f32 %v4706_v45, %v6000_v25 }
 0x376   : > { %v4710_v30 = vpop.eup %4709  ;;  %1659 = vadd.xlane.f32.xlu0 %v6056_v32  ;;  %v1505_v3 = vadd.f32 %v5977_v58, %v1504_v4  ;;  %v4304_v7 = vpop.f32.mrb[30].mxu1  ;;  %v6062_v44 = vmul.f32 %v4708_v17, %v6005_v39  ;;  %v1701_v13 = vmul.f32 %v6056_v32, %v6056_v32 }
 0x377   : > { %v4712_v9 = vpop.eup %4711  ;;  %v6065_v47 = vadd.f32 %v1513_v35, %v5967_v10  ;;  %v1516_v19 = vadd.f32 %v4304_v7, %v5977_v58  ;;  %v1507_v61 = vpop.f32.mrb[31].mxu1  ;;  %v6080_v33 = vmul.f32 %v4710_v30, %v6009_v5  ;;  %v1699_v50 = vmul.f32 %v6074_v57, %v6074_v57  ;;  %4310 = vmatpush3.bf16.msra.mxu1 %v4521_v48  ;;  %v4522_v30 = vld [vmem:[%s7536_s3 + $0x58] sm:$0xff]  }
 0x378   : > { %v4714_v52 = vpop.eup %4713  ;;  %v1593_v41 = vadd.f32 1.0, %v4712_v9  ;;  %v6069_v43 = vadd.f32 %v1505_v3, %v5956_v40  ;;  %1661 = vadd.xlane.f32.xlu1 %v6062_v44  ;;  %v1508_v2 = vadd.f32 %v5977_v58, %v1507_v61  ;;  %v1702_v60 = vmul.f32 %v6062_v44, %v6062_v44  ;;  %4311 = vmatprep.subr.bf16.mxu1 %v4522_v30 }
 0x379   : > { %v4716_v39 = vpop.eup %4715  ;;  %v1591_v12 = vadd.f32 1.0, %v4714_v52  ;;  %v6077_v1 = vadd.f32 %v1516_v19, %v5970_v8  ;;  %v3948_v55 = vmul.f32 -1.442695, %v6065_v47  ;;  %v1700_v21 = vmul.f32 %v6080_v33, %v6080_v33 }
 0x37a   : > { %v4718_v27 = vpop.eup %4717  ;;  %4719 = vrcp.f32 %v1593_v41  ;;  %v1594_v26 = vadd.f32 1.0, %v4716_v39  ;;  %v6084_v28 = vadd.f32 %v1508_v2, %v5959_v51  ;;  %1655 = vadd.xlane.f32.xlu0 %v6074_v57  ;;  %v3946_v25 = vmul.f32 -1.442695, %v6069_v43  ;;  %v4523_v2 = vld [vmem:[%s7536_s3 + $0x60] sm:$0xff]   ;;  %v4524_v39 = vld [vmem:[%s7536_s3 + $0x68] sm:$0xff]  }
 0x37b   : > { %4721 = vrcp.f32 %v1591_v12  ;;  %v1592_v58 = vadd.f32 1.0, %v4718_v27  ;;  %v3949_v5 = vmul.f32 -1.442695, %v6077_v1  ;;  %4312 = vmatpush3.bf16.msra.mxu1 %v4522_v30 }
 0x37c   : > { %4723 = vrcp.f32 %v1594_v26  ;;  %1657 = vadd.xlane.f32.xlu1 %v6080_v33  ;;  %v3947_v38 = vmul.f32 -1.442695, %v6084_v28  ;;  %4313 = vmatprep.subr.bf16.mxu1 %v4523_v2  ;;  %v4525_v26 = vld [vmem:[%s7536_s3 + $0x70] sm:$0xff]  }
 0x37d   : > { %4725 = vrcp.f32 %v1592_v58 }
 0x37e   : > { %4727 = vpow2.f32 %v3948_v55  ;;  %1723 = vadd.xlane.f32.xlu0 %v1701_v13  ;;  %v4526_v13 = vld [vmem:[%s7536_s3 + $0x78] sm:$0xff]  }
 0x37f   : > { %4729 = vpow2.f32 %v3946_v25  ;;  %4314 = vmatpush3.bf16.msra.mxu1 %v4523_v2 }
 0x380   : > { %4731 = vpow2.f32 %v3949_v5  ;;  %1725 = vadd.xlane.f32.xlu1 %v1702_v60  ;;  %4315 = vmatprep.subr.bf16.mxu1 %v4524_v39 }
 0x381   : > { %4733 = vpow2.f32 %v3947_v38 }
 0x382   : > { %1719 = vadd.xlane.f32.xlu0 %v1699_v50 }
 0x383   : > { %4316 = vmatpush3.bf16.msra.mxu1 %v4524_v39 }
 0x384   : > { %v4720_v56 = vpop.eup %4719  ;;  %1721 = vadd.xlane.f32.xlu1 %v1700_v21  ;;  %4317 = vmatprep.subr.bf16.mxu1 %v4525_v26 }
 0x385   : > { %v4722_v24 = vpop.eup %4721  ;;  %v6109_v45 = vmul.f32 %v4720_v56, %v6021_v63 }
 0x386   : > { %v4724_v53 = vpop.eup %4723  ;;  %v6120_v63 = vmul.f32 %v4722_v24, %v6029_v23 }
 0x387   : > { %v4726_v17 = vpop.eup %4725  ;;  %1667 = vadd.xlane.f32.xlu0 %v6109_v45  ;;  %v6113_v35 = vmul.f32 %v4724_v53, %v6037_v62  ;;  %v1705_v23 = vmul.f32 %v6109_v45, %v6109_v45  ;;  %4318 = vmatpush3.bf16.msra.mxu1 %v4525_v26 }
 0x388   : > { %v4728_v4 = vpop.eup %4727  ;;  %v6124_v52 = vmul.f32 %v4726_v17, %v6042_v31  ;;  %v1703_v12 = vmul.f32 %v6120_v63, %v6120_v63  ;;  %4319 = vmatprep.subr.bf16.mxu1 %v4526_v13 }
 0x389   : > { %v4730_v3 = vpop.eup %4729  ;;  %v1597_v7 = vadd.f32 1.0, %v4728_v4  ;;  %1669 = vadd.xlane.f32.xlu1 %v6113_v35  ;;  %v1706_v31 = vmul.f32 %v6113_v35, %v6113_v35 }
 0x38a   : > { %v4732_v9 = vpop.eup %4731  ;;  %v1595_v19 = vadd.f32 1.0, %v4730_v3  ;;  %v1704_v27 = vmul.f32 %v6124_v52, %v6124_v52 }
 0x38b   : > { %v4734_v61 = vpop.eup %4733  ;;  %4735 = vrcp.f32 %v1597_v7  ;;  %v1598_v62 = vadd.f32 1.0, %v4732_v9  ;;  %1663 = vadd.xlane.f32.xlu0 %v6120_v63  ;;  %4320 = vmatpush3.bf16.msra.mxu1 %v4526_v13 }
 0x38c   : > { %4737 = vrcp.f32 %v1595_v19  ;;  %v1596_v41 = vadd.f32 1.0, %v4734_v61 }
 0x38d   : > { %4739 = vrcp.f32 %v1598_v62  ;;  %1665 = vadd.xlane.f32.xlu1 %v6124_v52 }
 0x38e   : > { %4741 = vrcp.f32 %v1596_v41 }
 0x38f   : > { %1731 = vadd.xlane.f32.xlu0 %v1705_v23 }
 0x391   : > { %1733 = vadd.xlane.f32.xlu1 %v1706_v31 }
 0x393   : > { %1727 = vadd.xlane.f32.xlu0 %v1703_v12 }
 0x395   : > { %v4736_v55 = vpop.eup %4735  ;;  %1729 = vadd.xlane.f32.xlu1 %v1704_v27 }
 0x396   : > { %v4738_v58 = vpop.eup %4737  ;;  %v6145_v25 = vmul.f32 %v4736_v55, %v6065_v47 }
 0x397   : > { %v4740_v0 = vpop.eup %4739  ;;  %v6156_v60 = vmul.f32 %v4738_v58, %v6069_v43 }
 0x398   : > { %1675 = vadd.xlane.f32.xlu0 %v6145_v25  ;;  %v6149_v5 = vmul.f32 %v4740_v0, %v6077_v1  ;;  %v4742_v38 = vpop.eup %4741  ;;  %v1709_v43 = vmul.f32 %v6145_v25, %v6145_v25 }
 0x399   : > { %v6160_v47 = vmul.f32 %v4742_v38, %v6084_v28  ;;  %v1707_v1 = vmul.f32 %v6156_v60, %v6156_v60 }
 0x39a   : > { %1677 = vadd.xlane.f32.xlu1 %v6149_v5  ;;  %v1710_v54 = vmul.f32 %v6149_v5, %v6149_v5 }
 0x39b   : > { %v1708_v50 = vmul.f32 %v6160_v47, %v6160_v47 }
 0x39c   : > { %1671 = vadd.xlane.f32.xlu0 %v6156_v60 }
 0x39e   : > { %1673 = vadd.xlane.f32.xlu1 %v6160_v47 }
 0x3a0   : > { %1735 = vadd.xlane.f32.xlu0 %v1707_v1 }
 0x3a2   : > { %1737 = vadd.xlane.f32.xlu1 %v1708_v50 }
 0x3a4   : > { %1739 = vadd.xlane.f32.xlu0 %v1709_v43 }
 0x3a6   : > { %1741 = vadd.xlane.f32.xlu1 %v1710_v54 }
 0x3f2   : > { %v1652_v28 = vpop.xlane.xlu0 %1651 }
 0x3f3   : > { %v1681_v48 = vmul.f32 0.0078125, %v1652_v28 }
 0x3f4   : > { %v1654_v21 = vpop.xlane.xlu1 %1653 }
 0x3f5   : > { %v1682_v53 = vmul.f32 0.0078125, %v1654_v21  ;;  %v1761_v4 = vmul.f32 %v1681_v48, %v1681_v48 }
 0x3f6   : > { %v1648_v56 = vpop.xlane.xlu0 %1647 }
 0x3f7   : > { %v1679_v30 = vmul.f32 0.0078125, %v1648_v56  ;;  %v1762_v9 = vmul.f32 %v1682_v53, %v1682_v53 }
 0x3f8   : > { %v1650_v24 = vpop.xlane.xlu1 %1649 }
 0x3f9   : > { %v1680_v19 = vmul.f32 0.0078125, %v1650_v24  ;;  %v1759_v2 = vmul.f32 %v1679_v30, %v1679_v30 }
 0x3fa   : > { %v1716_v17 = vpop.xlane.xlu0 %1715 }
 0x3fb   : > { %v1745_v3 = vmul.f32 0.0078125, %v1716_v17  ;;  %v1760_v27 = vmul.f32 %v1680_v19, %v1680_v19 }
 0x3fc   : > { %v1718_v7 = vpop.xlane.xlu1 %1717 }
 0x3fd   : > { %v1777_v61 = vsub.f32 %v1745_v3, %v1761_v4  ;;  %v1746_v62 = vmul.f32 0.0078125, %v1718_v7  ;;  %v1794_v4 = vsub.f32 %v6017_v14, %v1682_v53 }
 0x3fe   : > { %v1712_v41 = vpop.xlane.xlu0 %1711 }
 0x3ff   : > { %v1809_v23 = vadd.f32 0.1, %v1777_v61  ;;  %v1778_v31 = vsub.f32 %v1746_v62, %v1762_v9  ;;  %v1743_v39 = vmul.f32 0.0078125, %v1712_v41  ;;  %v1793_v61 = vsub.f32 %v6013_v22, %v1681_v48 }
 0x400   : > { %v1714_v12 = vpop.xlane.xlu1 %1713  ;;  %v1791_v62 = vsub.f32 %v6026_v49, %v1679_v30  ;;  %v1792_v30 = vsub.f32 %v6033_v15, %v1680_v19 }
 0x401   : > { %v1810_v26 = vadd.f32 0.1, %v1778_v31  ;;  %v1775_v55 = vsub.f32 %v1743_v39, %v1759_v2  ;;  %v1744_v58 = vmul.f32 0.0078125, %v1714_v12  ;;  %4743 = vrsqrt.f32 %v1809_v23 }
 0x403   : > { %4745 = vrsqrt.f32 %v1810_v26  ;;  %v1807_v0 = vadd.f32 0.1, %v1775_v55  ;;  %v1776_v13 = vsub.f32 %v1744_v58, %v1760_v27  ;;  %v1660_v38 = vpop.xlane.xlu0 %1659 }
 0x404   : > { %v6171_v54 = vmul.f32 0.0078125, %v1660_v38  ;;  %v6194_v38 = vld [vmem:[%s7538_s5 + $0x1] ss:$0 sm:$0xff] }
 0x405   : > { %4747 = vrsqrt.f32 %v1807_v0  ;;  %v1808_v1 = vadd.f32 0.1, %v1776_v13  ;;  %v1662_v50 = vpop.xlane.xlu1 %1661 }
 0x406   : > { %v6173_v21 = vmul.f32 0.0078125, %v1662_v50  ;;  %v1765_v3 = vmul.f32 %v6171_v54, %v6171_v54 }
 0x407   : > { %4749 = vrsqrt.f32 %v1808_v1  ;;  %v1656_v43 = vpop.xlane.xlu0 %1655 }
 0x408   : > { %v6175_v56 = vmul.f32 0.0078125, %v1656_v43  ;;  %v1766_v31 = vmul.f32 %v6173_v21, %v6173_v21 }
 0x409   : > { %v1658_v28 = vpop.xlane.xlu1 %1657 }
 0x40a   : > { %v6182_v41 = vmul.f32 0.0078125, %v1658_v28  ;;  %v1763_v53 = vmul.f32 %v6175_v56, %v6175_v56 }
 0x40b   : > { %v1724_v24 = vpop.xlane.xlu0 %1723  ;;  %v4744_v17 = vpop.eup %4743 }
 0x40c   : > { %v1749_v7 = vmul.f32 0.0078125, %v1724_v24  ;;  %v1841_v14 = vmul.f32 %v4744_v17, %v1793_v61  ;;  %v1764_v0 = vmul.f32 %v6182_v41, %v6182_v41 }
 0x40d   : > { %v4746_v9 = vpop.eup %4745  ;;  %v1726_v2 = vpop.xlane.xlu1 %1725 }
 0x40e   : > { %v1842_v23 = vmul.f32 %v4746_v9, %v1794_v4  ;;  %v1781_v39 = vsub.f32 %v1749_v7, %v1765_v3  ;;  %v1750_v12 = vmul.f32 0.0078125, %v1726_v2  ;;  %v1862_v3 = vmul.f32 %v6194_v38, %v1841_v14  ;;  %v6203_v9 = vld [vmem:[%s7539_s6 + $0x1] ss:$0 sm:$0xff] }
 0x40f   : > { %v4748_v27 = vpop.eup %4747  ;;  %v1720_v26 = vpop.xlane.xlu0 %1719 }
 0x410   : > { %v1813_v55 = vadd.f32 0.1, %v1781_v39  ;;  %v1782_v58 = vsub.f32 %v1750_v12, %v1766_v31  ;;  %v1747_v22 = vmul.f32 0.0078125, %v1720_v26  ;;  %v1839_v48 = vmul.f32 %v4748_v27, %v1791_v62 }
 0x411   : > { %v4750_v49 = vpop.eup %4749  ;;  %v1722_v13 = vpop.xlane.xlu1 %1721  ;;  %v1863_v28 = vmul.f32 %v6194_v38, %v1842_v23  ;;  %v6215_v12 = vadd.f32 %v6203_v9, %v1862_v3 }
 0x412   : > { %v1814_v1 = vadd.f32 0.1, %v1782_v58  ;;  %v1779_v50 = vsub.f32 %v1747_v22, %v1763_v53  ;;  %v1748_v43 = vmul.f32 0.0078125, %v1722_v13  ;;  %4751 = vrsqrt.f32 %v1813_v55 }
 0x413   : > { %v1840_v24 = vmul.f32 %v4750_v49, %v1792_v30  ;;  %v1860_v17 = vmul.f32 %v6194_v38, %v1839_v48  ;;  %v6206_v2 = vadd.f32 %v6203_v9, %v1863_v28  ;;  %v1798_v49 = vsub.f32 %v6062_v44, %v6173_v21 }
 0x414   : > { %4753 = vrsqrt.f32 %v1814_v1  ;;  %v1811_v15 = vadd.f32 0.1, %v1779_v50  ;;  %v1780_v19 = vsub.f32 %v1748_v43, %v1764_v0  ;;  %v1668_v4 = vpop.xlane.xlu0 %1667  ;;  %v1797_v1 = vsub.f32 %v6056_v32, %v6171_v54 }
 0x415   : > { %v1861_v7 = vmul.f32 %v6194_v38, %v1840_v24  ;;  %v6209_v23 = vadd.f32 %v6203_v9, %v1860_v17  ;;  %v6217_v27 = vmul.f32 0.0078125, %v1668_v4  ;;  %v1914_v26 = vpack.c.bf16 %v6206_v2, %v6215_v12 }
 0x416   : > { %4755 = vrsqrt.f32 %v1811_v15  ;;  %v1812_v61 = vadd.f32 0.1, %v1780_v19  ;;  %v1670_v62 = vpop.xlane.xlu1 %1669  ;;  %v1795_v50 = vsub.f32 %v6074_v57, %v6175_v56  ;;  %v1796_v56 = vsub.f32 %v6080_v33, %v6182_v41 }
 0x417   : > { %v6212_v31 = vadd.f32 %v6203_v9, %v1861_v7  ;;  %v6223_v55 = vmul.f32 0.0078125, %v1670_v62  ;;  %v1769_v30 = vmul.f32 %v6217_v27, %v6217_v27 }
 0x418   : > { %4757 = vrsqrt.f32 %v1812_v61  ;;  %v1664_v39 = vpop.xlane.xlu0 %1663 }
 0x419   : > { %v1913_v14 = vpack.c.bf16 %v6212_v31, %v6209_v23  ;;  %v6225_v58 = vmul.f32 0.0078125, %v1664_v39  ;;  %v1770_v24 = vmul.f32 %v6223_v55, %v6223_v55 }
 0x41a   : > { %v1666_v53 = vpop.xlane.xlu1 %1665 }
 0x41b   : > { %4321 = vmatprep.mubr.bf16.mxu1 %v1913_v14  ;;  %v6235_v43 = vmul.f32 0.0078125, %v1666_v53  ;;  %v1767_v19 = vmul.f32 %v6225_v58, %v6225_v58 }
 0x41c   : > { %v1732_v22 = vpop.xlane.xlu0 %1731  ;;  %4322 = vmatmul.mubr.bf16.vlgmr.msra.gmra.mrb[32].mxu1 %v1914_v26  ;;  %v4752_v48 = vpop.eup %4751 }
 0x41d   : > { %v1753_v0 = vmul.f32 0.0078125, %v1732_v22  ;;  %v1845_v3 = vmul.f32 %v4752_v48, %v1797_v1  ;;  %v1768_v62 = vmul.f32 %v6235_v43, %v6235_v43 }
 0x41e   : > { %v4754_v13 = vpop.eup %4753  ;;  %v1734_v28 = vpop.xlane.xlu1 %1733 }
 0x41f   : > { %v1785_v17 = vsub.f32 %v1753_v0, %v1769_v30  ;;  %v1754_v15 = vmul.f32 0.0078125, %v1734_v28  ;;  %v1846_v44 = vmul.f32 %v4754_v13, %v1798_v49  ;;  %v1866_v1 = vmul.f32 %v6194_v38, %v1845_v3 }
 0x420   : > { %v4756_v21 = vpop.eup %4755  ;;  %v1728_v4 = vpop.xlane.xlu0 %1727 }
 0x421   : > { %v1817_v7 = vadd.f32 0.1, %v1785_v17  ;;  %v1786_v32 = vsub.f32 %v1754_v15, %v1770_v24  ;;  %v1751_v54 = vmul.f32 0.0078125, %v1728_v4  ;;  %v1843_v61 = vmul.f32 %v4756_v21, %v1795_v50 }
 0x422   : > { %v4758_v57 = vpop.eup %4757  ;;  %v1730_v39 = vpop.xlane.xlu1 %1729  ;;  %v1867_v22 = vmul.f32 %v6194_v38, %v1846_v44  ;;  %v6259_v44 = vadd.f32 %v6203_v9, %v1866_v1 }
 0x423   : > { %v1818_v14 = vadd.f32 0.1, %v1786_v32  ;;  %v1783_v53 = vsub.f32 %v1751_v54, %v1767_v19  ;;  %v1752_v26 = vmul.f32 0.0078125, %v1730_v39  ;;  %4759 = vrsqrt.f32 %v1817_v7 }
 0x424   : > { %v1844_v49 = vmul.f32 %v4758_v57, %v1796_v56  ;;  %v1864_v48 = vmul.f32 %v6194_v38, %v1843_v61  ;;  %v6250_v28 = vadd.f32 %v6203_v9, %v1867_v22  ;;  %v1802_v57 = vsub.f32 %v6113_v35, %v6223_v55 }
 0x425   : > { %4761 = vrsqrt.f32 %v1818_v14  ;;  %v1815_v30 = vadd.f32 0.1, %v1783_v53  ;;  %v1784_v0 = vsub.f32 %v1752_v26, %v1768_v62  ;;  %v1676_v13 = vpop.xlane.xlu0 %1675  ;;  %v1801_v14 = vsub.f32 %v6109_v45, %v6217_v27 }
 0x426   : > { %v1865_v33 = vmul.f32 %v6194_v38, %v1844_v49  ;;  %v6253_v24 = vadd.f32 %v6203_v9, %v1864_v48  ;;  %v1916_v3 = vpack.c.bf16 %v6250_v28, %v6259_v44  ;;  %v6265_v32 = vmul.f32 0.0078125, %v1676_v13 }
 0x427   : > { %4763 = vrsqrt.f32 %v1815_v30  ;;  %v1816_v41 = vadd.f32 0.1, %v1784_v0  ;;  %v1678_v50 = vpop.xlane.xlu1 %1677  ;;  %v1799_v53 = vsub.f32 %v6120_v63, %v6225_v58  ;;  %v1800_v63 = vsub.f32 %v6124_v52, %v6235_v43 }
 0x428   : > { %v6256_v17 = vadd.f32 %v6203_v9, %v1865_v33  ;;  %v1694_v26 = vmul.f32 0.0078125, %v1678_v50  ;;  %v1773_v1 = vmul.f32 %v6265_v32, %v6265_v32 }
 0x429   : > { %4765 = vrsqrt.f32 %v1816_v41  ;;  %v1672_v15 = vpop.xlane.xlu0 %1671 }
 0x42a   : > { %v1691_v21 = vmul.f32 0.0078125, %v1672_v15  ;;  %v1915_v19 = vpack.c.bf16 %v6256_v17, %v6253_v24  ;;  %v1774_v27 = vmul.f32 %v1694_v26, %v1694_v26 }
 0x42b   : > { %v1674_v4 = vpop.xlane.xlu1 %1673 }
 0x42c   : > { %v1692_v7 = vmul.f32 0.0078125, %v1674_v4  ;;  %4325 = vmatprep.mubr.bf16.mxu1 %v1915_v19  ;;  %v1771_v56 = vmul.f32 %v1691_v21, %v1691_v21 }
 0x42d   : > { %v1736_v54 = vpop.xlane.xlu0 %1735  ;;  %4326 = vmatmul.mubr.bf16.gmra.mrb[36].mxu1 %v1916_v3  ;;  %v4760_v61 = vpop.eup %4759 }
 0x42e   : > { %v1755_v62 = vmul.f32 0.0078125, %v1736_v54  ;;  %v1772_v49 = vmul.f32 %v1692_v7, %v1692_v7  ;;  %v1849_v55 = vmul.f32 %v4760_v61, %v1801_v14 }
 0x42f   : > { %v4762_v39 = vpop.eup %4761  ;;  %v1738_v22 = vpop.xlane.xlu1 %1737 }
 0x430   : > { %v1787_v48 = vsub.f32 %v1755_v62, %v1771_v56  ;;  %v1756_v30 = vmul.f32 0.0078125, %v1738_v22  ;;  %v1850_v0 = vmul.f32 %v4762_v39, %v1802_v57  ;;  %v1870_v39 = vmul.f32 %v6194_v38, %v1849_v55 }
 0x431   : > { %v4764_v13 = vpop.eup %4763  ;;  %v1740_v35 = vpop.xlane.xlu0 %1739 }
 0x432   : > { %v1819_v33 = vadd.f32 0.1, %v1787_v48  ;;  %v1788_v41 = vsub.f32 %v1756_v30, %v1772_v49  ;;  %v1757_v15 = vmul.f32 0.0078125, %v1740_v35  ;;  %v1847_v19 = vmul.f32 %v4764_v13, %v1799_v53 }
 0x433   : > { %v4766_v45 = vpop.eup %4765  ;;  %v1742_v58 = vpop.xlane.xlu1 %1741  ;;  %v1871_v50 = vmul.f32 %v6194_v38, %v1850_v0  ;;  %v6291_v49 = vadd.f32 %v6203_v9, %v1870_v39  ;;  %v1803_v0 = vsub.f32 %v6156_v60, %v1691_v21  ;;  %v6346_v39 = vadd.f32 %v6209_v23, %v5846_v37 }
 0x434   : > { %4767 = vrsqrt.f32 %v1819_v33  ;;  %v1820_v4 = vadd.f32 0.1, %v1788_v41  ;;  %v1789_v3 = vsub.f32 %v1757_v15, %v1773_v1  ;;  %v1758_v54 = vmul.f32 0.0078125, %v1742_v58 }
 0x435   : > { %v1848_v57 = vmul.f32 %v4766_v45, %v1800_v63  ;;  %v1868_v56 = vmul.f32 %v6194_v38, %v1847_v19  ;;  %v6282_v43 = vadd.f32 %v6203_v9, %v1871_v50  ;;  %v1804_v1 = vsub.f32 %v6160_v47, %v1692_v7 }
 0x436   : > { %4769 = vrsqrt.f32 %v1820_v4  ;;  %v1821_v61 = vadd.f32 0.1, %v1789_v3  ;;  %v1790_v62 = vsub.f32 %v1758_v54, %v1774_v27  ;;  %v1805_v33 = vsub.f32 %v6145_v25, %v6265_v32  ;;  %v4527_v4 = vld [vmem:[%s7536_s3 + $0x80] sm:$0xff]   ;;  %v4528_v3 = vld [vmem:[%s7536_s3 + $0x88] sm:$0xff]  }
 0x437   : > { %v1869_v14 = vmul.f32 %v6194_v38, %v1848_v57  ;;  %v6285_v53 = vadd.f32 %v6203_v9, %v1868_v56  ;;  %v1918_v30 = vpack.c.bf16 %v6282_v43, %v6291_v49  ;;  %v1806_v45 = vsub.f32 %v6149_v5, %v1694_v26  ;;  %4337 = vmatprep.subr.bf16.mxu0 %v4527_v4  ;;  %v6337_v54 = vld [vmem:[%s7537_s4 + $0x1] ss:$0 sm:$0xff] }
 0x438   : > { %4771 = vrsqrt.f32 %v1821_v61  ;;  %v1822_v52 = vadd.f32 0.1, %v1790_v62  ;;  %4338 = vmatpush3.bf16.msra.mxu0 %v4527_v4  ;;  %v6341_v56 = vadd.f32 %v6215_v12, %v5867_v59 }
 0x439   : > { %v6288_v22 = vadd.f32 %v6203_v9, %v1869_v14  ;;  %4339 = vmatprep.subr.bf16.mxu0 %v4528_v3 }
 0x43a   : > { %4773 = vrsqrt.f32 %v1822_v52 }
 0x43b   : > { %v1917_v48 = vpack.c.bf16 %v6288_v22, %v6285_v53 }
 0x43c   : > { %4340 = vmatpush3.bf16.msra.mxu0 %v4528_v3 }
 0x43d   : > { %4329 = vmatprep.mubr.bf16.mxu1 %v1917_v48 }
 0x43e   : > { %v4768_v13 = vpop.eup %4767  ;;  %4330 = vmatmul.mubr.bf16.gmra.mrb[40].mxu1 %v1918_v30  ;;  %v6352_v30 = vadd.f32 %v6206_v2, %v5870_v42 }
 0x43f   : > { %v1851_v35 = vmul.f32 %v4768_v13, %v1803_v0  ;;  %v6360_v13 = vadd.f32 %v6212_v31, %v5849_v46 }
 0x440   : > { %v4770_v55 = vpop.eup %4769 }
 0x441   : > { %v1852_v41 = vmul.f32 %v4770_v55, %v1804_v1  ;;  %v1872_v15 = vmul.f32 %v6194_v38, %v1851_v35 }
 0x442   : > { %v4772_v19 = vpop.eup %4771 }
 0x443   : > { %v1873_v63 = vmul.f32 %v6194_v38, %v1852_v41  ;;  %v1853_v27 = vmul.f32 %v4772_v19, %v1805_v33  ;;  %v6305_v21 = vadd.f32 %v6203_v9, %v1872_v15  ;;  %v6371_v15 = vadd.f32 %v6259_v44, %v5911_v36 }
 0x444   : > { %v4774_v60 = vpop.eup %4773  ;;  %v6385_v36 = vadd.f32 %v6256_v17, %v5892_v20 }
 0x445   : > { %v6308_v47 = vadd.f32 %v6203_v9, %v1873_v63  ;;  %v1854_v7 = vmul.f32 %v4774_v60, %v1806_v45  ;;  %v1874_v58 = vmul.f32 %v6194_v38, %v1853_v27  ;;  %v6376_v63 = vadd.f32 %v6250_v28, %v5914_v34 }
 0x447   : > { %v1919_v25 = vpack.c.bf16 %v6308_v47, %v6305_v21  ;;  %v1875_v32 = vmul.f32 %v6194_v38, %v1854_v7  ;;  %v6315_v5 = vadd.f32 %v6203_v9, %v1874_v58  ;;  %v4529_v38 = vld [vmem:[%s7536_s3 + $0x90] sm:$0xff]   ;;  %v6380_v7 = vadd.f32 %v6253_v24, %v5889_v16 }
 0x448   : > { %4341 = vmatprep.subr.bf16.mxu0 %v4529_v38 }
 0x449   : > { %4333 = vmatprep.mubr.bf16.mxu1 %v1919_v25  ;;  %v6318_v26 = vadd.f32 %v6203_v9, %v1875_v32  ;;  %v4530_v9 = vld [vmem:[%s7536_s3 + $0x98] sm:$0xff]   ;;  %4342 = vmatpush3.bf16.msra.mxu0 %v4529_v38 }
 0x44a   : > { %4343 = vmatprep.subr.bf16.mxu0 %v4530_v9 }
 0x44b   : > { %v1920_v50 = vpack.c.bf16 %v6318_v26, %v6315_v5 }
 0x44d   : > { %4334 = vmatmul.mubr.bf16.gmra.mrb[44].mxu1 %v1920_v50  ;;  %4344 = vmatpush3.bf16.msra.mxu0 %v4530_v9 }
 0x4ef   : > { %v4323_v57 = vpop.f32.mrb[32].mxu1 }
 0x4f0   : > { %v2034_v61 = vadd.f32 %v4323_v57, %v6337_v54  ;;  %v2025_v62 = vpop.f32.mrb[33].mxu1 }
 0x4f1   : > { %v2026_v14 = vadd.f32 %v6337_v54, %v2025_v62  ;;  %v4324_v52 = vpop.f32.mrb[34].mxu1 }
 0x4f2   : > { %v2090_v48 = vadd.f32 %v2034_v61, %v6341_v56  ;;  %v2037_v0 = vadd.f32 %v4324_v52, %v6337_v54  ;;  %v2028_v59 = vpop.f32.mrb[35].mxu1 }
 0x4f3   : > { %v6356_v12 = vadd.f32 %v2026_v14, %v6346_v39  ;;  %v2029_v37 = vadd.f32 %v6337_v54, %v2028_v59 }
 0x4f4   : > { %v3979_v23 = vmul.f32 -1.442695, %v2090_v48  ;;  %v2091_v1 = vadd.f32 %v2037_v0, %v6352_v30 }
 0x4f5   : > { %v3977_v35 = vmul.f32 -1.442695, %v6356_v12  ;;  %v6366_v42 = vadd.f32 %v2029_v37, %v6360_v13 }
 0x4f6   : > { %4775 = vpow2.f32 %v3979_v23  ;;  %v3980_v2 = vmul.f32 -1.442695, %v2091_v1  ;;  %v6412_v23 = vadd.f32 %v6291_v49, %v5943_v11 }
 0x4f7   : > { %4777 = vpow2.f32 %v3977_v35  ;;  %v3978_v55 = vmul.f32 -1.442695, %v6366_v42 }
 0x4f8   : > { %4779 = vpow2.f32 %v3980_v2  ;;  %v6416_v2 = vadd.f32 %v6282_v43, %v5946_v6  ;;  %v6430_v43 = vadd.f32 %v6288_v22, %v5932_v29 }
 0x4f9   : > { %4781 = vpow2.f32 %v3978_v55 }
 0x500   : > { %v4776_v33 = vpop.eup %4775  ;;  %v4327_v46 = vpop.f32.mrb[36].mxu1 }
 0x501   : > { %v4778_v31 = vpop.eup %4777  ;;  %v2154_v41 = vadd.f32 1.0, %v4776_v33  ;;  %v2050_v19 = vadd.f32 %v4327_v46, %v6337_v54  ;;  %v2041_v45 = vpop.f32.mrb[37].mxu1  ;;  %v6421_v46 = vadd.f32 %v6285_v53, %v5929_v18 }
 0x502   : > { %v4780_v27 = vpop.eup %4779  ;;  %v2152_v60 = vadd.f32 1.0, %v4778_v31  ;;  %v2042_v58 = vadd.f32 %v6337_v54, %v2041_v45  ;;  %v4328_v25 = vpop.f32.mrb[38].mxu1 }
 0x503   : > { %v4782_v44 = vpop.eup %4781  ;;  %4783 = vrcp.f32 %v2154_v41  ;;  %v2155_v32 = vadd.f32 1.0, %v4780_v27  ;;  %v6388_v50 = vadd.f32 %v2050_v19, %v6371_v15  ;;  %v2053_v34 = vadd.f32 %v4328_v25, %v6337_v54  ;;  %v2044_v28 = vpop.f32.mrb[39].mxu1 }
 0x504   : > { %4785 = vrcp.f32 %v2152_v60  ;;  %v2153_v4 = vadd.f32 1.0, %v4782_v44  ;;  %v6392_v16 = vadd.f32 %v2042_v58, %v6380_v7  ;;  %v2045_v24 = vadd.f32 %v6337_v54, %v2044_v28 }
 0x505   : > { %4787 = vrcp.f32 %v2155_v32  ;;  %v3983_v20 = vmul.f32 -1.442695, %v6388_v50  ;;  %v6397_v17 = vadd.f32 %v2053_v34, %v6376_v63 }
 0x506   : > { %4789 = vrcp.f32 %v2153_v4  ;;  %v3981_v3 = vmul.f32 -1.442695, %v6392_v16  ;;  %v6401_v38 = vadd.f32 %v2045_v24, %v6385_v36 }
 0x507   : > { %4791 = vpow2.f32 %v3983_v20  ;;  %v3984_v9 = vmul.f32 -1.442695, %v6397_v17 }
 0x508   : > { %4793 = vpow2.f32 %v3981_v3  ;;  %v3982_v57 = vmul.f32 -1.442695, %v6401_v38 }
 0x509   : > { %4795 = vpow2.f32 %v3984_v9 }
 0x50a   : > { %4797 = vpow2.f32 %v3982_v57 }
 0x50d   : > { %v4784_v61 = vpop.eup %4783 }
 0x50e   : > { %v4786_v62 = vpop.eup %4785  ;;  %v6405_v14 = vmul.f32 %v4784_v61, %v2090_v48 }
 0x50f   : > { %v4788_v52 = vpop.eup %4787  ;;  %v6425_v31 = vmul.f32 %v4786_v62, %v6356_v12 }
 0x510   : > { %v4790_v0 = vpop.eup %4789  ;;  %2220 = vadd.xlane.f32.xlu0 %v6405_v14  ;;  %v6408_v59 = vmul.f32 %v4788_v52, %v2091_v1  ;;  %v2266_v25 = vmul.f32 %v6405_v14, %v6405_v14 }
 0x511   : > { %v4792_v37 = vpop.eup %4791  ;;  %v4331_v35 = vpop.f32.mrb[40].mxu1  ;;  %v6433_v19 = vmul.f32 %v4790_v0, %v6366_v42  ;;  %v2264_v24 = vmul.f32 %v6425_v31, %v6425_v31  ;;  %v6468_v0 = vadd.f32 %v6315_v5, %v5967_v10  ;;  %v6486_v5 = vadd.f32 %v6308_v47, %v5959_v51 }
 0x512   : > { %v4794_v55 = vpop.eup %4793  ;;  %v2158_v33 = vadd.f32 1.0, %v4792_v37  ;;  %v2066_v48 = vadd.f32 %v4331_v35, %v6337_v54  ;;  %v2057_v1 = vpop.f32.mrb[41].mxu1  ;;  %2222 = vadd.xlane.f32.xlu1 %v6408_v59  ;;  %v2267_v28 = vmul.f32 %v6408_v59, %v6408_v59 }
 0x513   : > { %v4796_v11 = vpop.eup %4795  ;;  %v2156_v49 = vadd.f32 1.0, %v4794_v55  ;;  %v2058_v41 = vadd.f32 %v6337_v54, %v2057_v1  ;;  %v4332_v6 = vpop.f32.mrb[42].mxu1  ;;  %v2265_v20 = vmul.f32 %v6433_v19, %v6433_v19  ;;  %v6482_v1 = vadd.f32 %v6318_v26, %v5970_v8 }
 0x514   : > { %v4798_v18 = vpop.eup %4797  ;;  %4799 = vrcp.f32 %v2158_v33  ;;  %v2159_v53 = vadd.f32 1.0, %v4796_v11  ;;  %v6436_v45 = vadd.f32 %v2066_v48, %v6412_v23  ;;  %v2069_v12 = vadd.f32 %v4332_v6, %v6337_v54  ;;  %v2060_v27 = vpop.f32.mrb[43].mxu1  ;;  %2216 = vadd.xlane.f32.xlu0 %v6425_v31 }
 0x515   : > { %4801 = vrcp.f32 %v2156_v49  ;;  %v2157_v60 = vadd.f32 1.0, %v4798_v18  ;;  %v6441_v58 = vadd.f32 %v2058_v41, %v6421_v46  ;;  %v2061_v29 = vadd.f32 %v6337_v54, %v2060_v27 }
 0x516   : > { %4803 = vrcp.f32 %v2159_v53  ;;  %v3987_v22 = vmul.f32 -1.442695, %v6436_v45  ;;  %v6446_v42 = vadd.f32 %v2069_v12, %v6416_v2  ;;  %2218 = vadd.xlane.f32.xlu1 %v6433_v19 }
 0x517   : > { %4805 = vrcp.f32 %v2157_v60  ;;  %v3985_v44 = vmul.f32 -1.442695, %v6441_v58  ;;  %v6453_v32 = vadd.f32 %v2061_v29, %v6430_v43 }
 0x518   : > { %4807 = vpow2.f32 %v3987_v22  ;;  %v3988_v34 = vmul.f32 -1.442695, %v6446_v42  ;;  %2284 = vadd.xlane.f32.xlu0 %v2266_v25 }
 0x519   : > { %4809 = vpow2.f32 %v3985_v44  ;;  %v3986_v4 = vmul.f32 -1.442695, %v6453_v32 }
 0x51a   : > { %4811 = vpow2.f32 %v3988_v34  ;;  %2286 = vadd.xlane.f32.xlu1 %v2267_v28 }
 0x51b   : > { %4813 = vpow2.f32 %v3986_v4 }
 0x51c   : > { %2280 = vadd.xlane.f32.xlu0 %v2264_v24 }
 0x51e   : > { %v4800_v3 = vpop.eup %4799  ;;  %2282 = vadd.xlane.f32.xlu1 %v2265_v20 }
 0x51f   : > { %v4802_v9 = vpop.eup %4801  ;;  %v6464_v57 = vmul.f32 %v4800_v3, %v6388_v50  ;;  %v6477_v50 = vadd.f32 %v6305_v21, %v5956_v40 }
 0x520   : > { %v4804_v61 = vpop.eup %4803  ;;  %v4335_v62 = vpop.f32.mrb[44].mxu1  ;;  %v6494_v21 = vmul.f32 %v4802_v9, %v6392_v16 }
 0x521   : > { %v4806_v52 = vpop.eup %4805  ;;  %v2082_v37 = vadd.f32 %v4335_v62, %v6337_v54  ;;  %v2073_v35 = vpop.f32.mrb[45].mxu1  ;;  %2228 = vadd.xlane.f32.xlu0 %v6464_v57  ;;  %v6473_v55 = vmul.f32 %v4804_v61, %v6397_v17  ;;  %v2270_v22 = vmul.f32 %v6464_v57, %v6464_v57 }
 0x522   : > { %v4808_v33 = vpop.eup %4807  ;;  %v2074_v48 = vadd.f32 %v6337_v54, %v2073_v35  ;;  %v4336_v10 = vpop.f32.mrb[46].mxu1  ;;  %v6501_v47 = vmul.f32 %v4806_v52, %v6401_v38  ;;  %v2268_v34 = vmul.f32 %v6494_v21, %v6494_v21 }
 0x523   : > { %v4810_v11 = vpop.eup %4809  ;;  %v2162_v49 = vadd.f32 1.0, %v4808_v33  ;;  %v6489_v17 = vadd.f32 %v2082_v37, %v6468_v0  ;;  %v2085_v41 = vadd.f32 %v4336_v10, %v6337_v54  ;;  %v2076_v40 = vpop.f32.mrb[47].mxu1  ;;  %2230 = vadd.xlane.f32.xlu1 %v6473_v55  ;;  %v2271_v44 = vmul.f32 %v6473_v55, %v6473_v55 }
 0x524   : > { %v4812_v8 = vpop.eup %4811  ;;  %v2160_v26 = vadd.f32 1.0, %v4810_v11  ;;  %v6497_v6 = vadd.f32 %v2074_v48, %v6477_v50  ;;  %v2077_v51 = vadd.f32 %v6337_v54, %v2076_v40  ;;  %v4531_v54 = vld [vmem:[%s7536_s3 + $0xa0] sm:$0xff]   ;;  %v2269_v28 = vmul.f32 %v6501_v47, %v6501_v47 }
 0x525   : > { %v4814_v18 = vpop.eup %4813  ;;  %4815 = vrcp.f32 %v2162_v49  ;;  %v2163_v53 = vadd.f32 1.0, %v4812_v8  ;;  %v3991_v12 = vmul.f32 -1.442695, %v6489_v17  ;;  %v6505_v27 = vadd.f32 %v2085_v41, %v6482_v1  ;;  %2224 = vadd.xlane.f32.xlu0 %v6494_v21  ;;  %4345 = vmatprep.subr.bf16.mxu0 %v4531_v54  ;;  %v4533_v41 = vld [vmem:[%s7536_s3 + $0xb0] sm:$0xff]  }
 0x526   : > { %4817 = vrcp.f32 %v2160_v26  ;;  %v2161_v16 = vadd.f32 1.0, %v4814_v18  ;;  %v3989_v60 = vmul.f32 -1.442695, %v6497_v6  ;;  %v6510_v29 = vadd.f32 %v2077_v51, %v6486_v5  ;;  %4346 = vmatpush3.bf16.msra.mxu0 %v4531_v54 }
 0x527   : > { %4819 = vrcp.f32 %v2163_v53  ;;  %v3992_v38 = vmul.f32 -1.442695, %v6505_v27  ;;  %2226 = vadd.xlane.f32.xlu1 %v6501_v47 }
 0x528   : > { %4821 = vrcp.f32 %v2161_v16  ;;  %v3990_v25 = vmul.f32 -1.442695, %v6510_v29  ;;  %v4534_v16 = vld [vmem:[%s7536_s3 + $0xb8] sm:$0xff]  }
 0x529   : > { %4823 = vpow2.f32 %v3991_v12  ;;  %2292 = vadd.xlane.f32.xlu0 %v2270_v22 }
 0x52a   : > { %4825 = vpow2.f32 %v3989_v60 }
 0x52b   : > { %4827 = vpow2.f32 %v3992_v38  ;;  %2294 = vadd.xlane.f32.xlu1 %v2271_v44 }
 0x52c   : > { %4829 = vpow2.f32 %v3990_v25 }
 0x52d   : > { %2288 = vadd.xlane.f32.xlu0 %v2268_v34 }
 0x52f   : > { %v4816_v4 = vpop.eup %4815  ;;  %2290 = vadd.xlane.f32.xlu1 %v2269_v28 }
 0x530   : > { %v4818_v24 = vpop.eup %4817  ;;  %v6527_v20 = vmul.f32 %v4816_v4, %v6436_v45 }
 0x531   : > { %v4820_v3 = vpop.eup %4819  ;;  %v6535_v35 = vmul.f32 %v4818_v24, %v6441_v58  ;;  %v4532_v58 = vld [vmem:[%s7536_s3 + $0xa8] sm:$0xff]  }
 0x532   : > { %v4822_v9 = vpop.eup %4821  ;;  %2236 = vadd.xlane.f32.xlu0 %v6527_v20  ;;  %v6531_v61 = vmul.f32 %v4820_v3, %v6446_v42  ;;  %v2274_v49 = vmul.f32 %v6527_v20, %v6527_v20  ;;  %4347 = vmatprep.subr.bf16.mxu0 %v4532_v58 }
 0x533   : > { %v4824_v62 = vpop.eup %4823  ;;  %v6539_v11 = vmul.f32 %v4822_v9, %v6453_v32  ;;  %v2272_v40 = vmul.f32 %v6535_v35, %v6535_v35  ;;  %4348 = vmatpush3.bf16.msra.mxu0 %v4532_v58 }
 0x534   : > { %v4826_v52 = vpop.eup %4825  ;;  %v2166_v37 = vadd.f32 1.0, %v4824_v62  ;;  %2238 = vadd.xlane.f32.xlu1 %v6531_v61  ;;  %v2275_v32 = vmul.f32 %v6531_v61, %v6531_v61  ;;  %4349 = vmatprep.subr.bf16.mxu0 %v4533_v41 }
 0x535   : > { %v4828_v33 = vpop.eup %4827  ;;  %v2164_v48 = vadd.f32 1.0, %v4826_v52  ;;  %v2273_v8 = vmul.f32 %v6539_v11, %v6539_v11 }
 0x536   : > { %v4830_v10 = vpop.eup %4829  ;;  %4831 = vrcp.f32 %v2166_v37  ;;  %v2167_v45 = vadd.f32 1.0, %v4828_v33  ;;  %2232 = vadd.xlane.f32.xlu0 %v6535_v35 }
 0x537   : > { %4833 = vrcp.f32 %v2164_v48  ;;  %v2165_v42 = vadd.f32 1.0, %v4830_v10  ;;  %4350 = vmatpush3.bf16.msra.mxu0 %v4533_v41 }
 0x538   : > { %4835 = vrcp.f32 %v2167_v45  ;;  %2234 = vadd.xlane.f32.xlu1 %v6539_v11  ;;  %4351 = vmatprep.subr.bf16.mxu0 %v4534_v16 }
 0x539   : > { %4837 = vrcp.f32 %v2165_v42 }
 0x53a   : > { %2300 = vadd.xlane.f32.xlu0 %v2274_v49 }
 0x53b   : > { %4352 = vmatpush3.bf16.msra.mxu0 %v4534_v16 }
 0x53c   : > { %2302 = vadd.xlane.f32.xlu1 %v2275_v32 }
 0x53e   : > { %2296 = vadd.xlane.f32.xlu0 %v2272_v40 }
 0x540   : > { %v4832_v26 = vpop.eup %4831  ;;  %2298 = vadd.xlane.f32.xlu1 %v2273_v8 }
 0x541   : > { %v4834_v51 = vpop.eup %4833  ;;  %v6557_v18 = vmul.f32 %v4832_v26, %v6489_v17 }
 0x542   : > { %v4836_v53 = vpop.eup %4835  ;;  %v6568_v54 = vmul.f32 %v4834_v51, %v6497_v6 }
 0x543   : > { %2244 = vadd.xlane.f32.xlu0 %v6557_v18  ;;  %v6561_v12 = vmul.f32 %v4836_v53, %v6505_v27  ;;  %v4838_v60 = vpop.eup %4837  ;;  %v2278_v6 = vmul.f32 %v6557_v18, %v6557_v18 }
 0x544   : > { %v6572_v17 = vmul.f32 %v4838_v60, %v6510_v29  ;;  %v2276_v27 = vmul.f32 %v6568_v54, %v6568_v54 }
 0x545   : > { %2246 = vadd.xlane.f32.xlu1 %v6561_v12  ;;  %v2279_v22 = vmul.f32 %v6561_v12, %v6561_v12 }
 0x546   : > { %v2277_v38 = vmul.f32 %v6572_v17, %v6572_v17 }
 0x547   : > { %2240 = vadd.xlane.f32.xlu0 %v6568_v54 }
 0x549   : > { %2242 = vadd.xlane.f32.xlu1 %v6572_v17 }
 0x54b   : > { %2304 = vadd.xlane.f32.xlu0 %v2276_v27 }
 0x54d   : > { %2306 = vadd.xlane.f32.xlu1 %v2277_v38 }
 0x54f   : > { %2308 = vadd.xlane.f32.xlu0 %v2278_v6 }
 0x551   : > { %2310 = vadd.xlane.f32.xlu1 %v2279_v22 }
 0x59d   : > { %v2221_v29 = vpop.xlane.xlu0 %2220 }
 0x59e   : > { %v2250_v34 = vmul.f32 0.0078125, %v2221_v29 }
 0x59f   : > { %v2223_v25 = vpop.xlane.xlu1 %2222 }
 0x5a0   : > { %v2251_v4 = vmul.f32 0.0078125, %v2223_v25  ;;  %v2330_v3 = vmul.f32 %v2250_v34, %v2250_v34 }
 0x5a1   : > { %v2217_v44 = vpop.xlane.xlu0 %2216 }
 0x5a2   : > { %v2248_v9 = vmul.f32 0.0078125, %v2217_v44  ;;  %v2331_v37 = vmul.f32 %v2251_v4, %v2251_v4 }
 0x5a3   : > { %v2219_v28 = vpop.xlane.xlu1 %2218 }
 0x5a4   : > { %v2249_v33 = vmul.f32 0.0078125, %v2219_v28  ;;  %v2328_v42 = vmul.f32 %v2248_v9, %v2248_v9 }
 0x5a5   : > { %v2285_v24 = vpop.xlane.xlu0 %2284 }
 0x5a6   : > { %v2314_v62 = vmul.f32 0.0078125, %v2285_v24  ;;  %v2329_v40 = vmul.f32 %v2249_v33, %v2249_v33 }
 0x5a7   : > { %v2287_v52 = vpop.xlane.xlu1 %2286 }
 0x5a8   : > { %v2346_v48 = vsub.f32 %v2314_v62, %v2330_v3  ;;  %v2315_v10 = vmul.f32 0.0078125, %v2287_v52  ;;  %v2363_v3 = vsub.f32 %v6408_v59, %v2251_v4 }
 0x5a9   : > { %v2281_v45 = vpop.xlane.xlu0 %2280 }
 0x5aa   : > { %v2378_v49 = vadd.f32 0.1, %v2346_v48  ;;  %v2347_v58 = vsub.f32 %v2315_v10, %v2331_v37  ;;  %v2312_v41 = vmul.f32 0.0078125, %v2281_v45  ;;  %v2362_v48 = vsub.f32 %v6405_v14, %v2250_v34 }
 0x5ab   : > { %v2283_v32 = vpop.xlane.xlu1 %2282  ;;  %v2360_v10 = vsub.f32 %v6425_v31, %v2248_v9  ;;  %v2361_v9 = vsub.f32 %v6433_v19, %v2249_v33 }
 0x5ac   : > { %v2379_v8 = vadd.f32 0.1, %v2347_v58  ;;  %v2344_v26 = vsub.f32 %v2312_v41, %v2328_v42  ;;  %v2313_v51 = vmul.f32 0.0078125, %v2283_v32  ;;  %4839 = vrsqrt.f32 %v2378_v49 }
 0x5ae   : > { %4841 = vrsqrt.f32 %v2379_v8  ;;  %v2376_v53 = vadd.f32 0.1, %v2344_v26  ;;  %v2345_v16 = vsub.f32 %v2313_v51, %v2329_v40  ;;  %v2229_v60 = vpop.xlane.xlu0 %2228 }
 0x5af   : > { %v6583_v22 = vmul.f32 0.0078125, %v2229_v60  ;;  %v6606_v60 = vld [vmem:[%s7538_s5 + $0x2] ss:$0 sm:$0xff] }
 0x5b0   : > { %4843 = vrsqrt.f32 %v2376_v53  ;;  %v2377_v27 = vadd.f32 0.1, %v2345_v16  ;;  %v2231_v38 = vpop.xlane.xlu1 %2230 }
 0x5b1   : > { %v6585_v25 = vmul.f32 0.0078125, %v2231_v38  ;;  %v2334_v62 = vmul.f32 %v6583_v22, %v6583_v22 }
 0x5b2   : > { %4845 = vrsqrt.f32 %v2377_v27  ;;  %v2225_v6 = vpop.xlane.xlu0 %2224 }
 0x5b3   : > { %v6587_v44 = vmul.f32 0.0078125, %v2225_v6  ;;  %v2335_v58 = vmul.f32 %v6585_v25, %v6585_v25 }
 0x5b4   : > { %v2227_v29 = vpop.xlane.xlu1 %2226 }
 0x5b5   : > { %v6594_v45 = vmul.f32 0.0078125, %v2227_v29  ;;  %v2332_v4 = vmul.f32 %v6587_v44, %v6587_v44 }
 0x5b6   : > { %v2293_v28 = vpop.xlane.xlu0 %2292  ;;  %v4840_v24 = vpop.eup %4839 }
 0x5b7   : > { %v2318_v52 = vmul.f32 0.0078125, %v2293_v28  ;;  %v2410_v59 = vmul.f32 %v4840_v24, %v2362_v48  ;;  %v2333_v53 = vmul.f32 %v6594_v45, %v6594_v45 }
 0x5b8   : > { %v4842_v37 = vpop.eup %4841  ;;  %v2295_v42 = vpop.xlane.xlu1 %2294 }
 0x5b9   : > { %v2411_v49 = vmul.f32 %v4842_v37, %v2363_v3  ;;  %v2350_v41 = vsub.f32 %v2318_v52, %v2334_v62  ;;  %v2319_v32 = vmul.f32 0.0078125, %v2295_v42  ;;  %v2431_v62 = vmul.f32 %v6606_v60, %v2410_v59  ;;  %v6615_v37 = vld [vmem:[%s7539_s6 + $0x2] ss:$0 sm:$0xff] }
 0x5ba   : > { %v4844_v40 = vpop.eup %4843  ;;  %v2289_v8 = vpop.xlane.xlu0 %2288 }
 0x5bb   : > { %v2382_v26 = vadd.f32 0.1, %v2350_v41  ;;  %v2351_v51 = vsub.f32 %v2319_v32, %v2335_v58  ;;  %v2316_v14 = vmul.f32 0.0078125, %v2289_v8  ;;  %v2408_v34 = vmul.f32 %v4844_v40, %v2360_v10 }
 0x5bc   : > { %v4846_v31 = vpop.eup %4845  ;;  %v2291_v16 = vpop.xlane.xlu1 %2290  ;;  %v2432_v29 = vmul.f32 %v6606_v60, %v2411_v49  ;;  %v6627_v32 = vadd.f32 %v6615_v37, %v2431_v62 }
 0x5bd   : > { %v2383_v27 = vadd.f32 0.1, %v2351_v51  ;;  %v2348_v38 = vsub.f32 %v2316_v14, %v2332_v4  ;;  %v2317_v6 = vmul.f32 0.0078125, %v2291_v16  ;;  %4847 = vrsqrt.f32 %v2382_v26 }
 0x5be   : > { %v2409_v28 = vmul.f32 %v4846_v31, %v2361_v9  ;;  %v2429_v24 = vmul.f32 %v6606_v60, %v2408_v34  ;;  %v6618_v42 = vadd.f32 %v6615_v37, %v2432_v29  ;;  %v2367_v31 = vsub.f32 %v6473_v55, %v6585_v25 }
 0x5bf   : > { %4849 = vrsqrt.f32 %v2383_v27  ;;  %v2380_v19 = vadd.f32 0.1, %v2348_v38  ;;  %v2349_v33 = vsub.f32 %v2317_v6, %v2333_v53  ;;  %v2237_v3 = vpop.xlane.xlu0 %2236  ;;  %v2366_v27 = vsub.f32 %v6464_v57, %v6583_v22 }
 0x5c0   : > { %v2430_v52 = vmul.f32 %v6606_v60, %v2409_v28  ;;  %v6621_v49 = vadd.f32 %v6615_v37, %v2429_v24  ;;  %v6629_v40 = vmul.f32 0.0078125, %v2237_v3  ;;  %v2483_v8 = vpack.c.bf16 %v6618_v42, %v6627_v32 }
 0x5c1   : > { %4851 = vrsqrt.f32 %v2380_v19  ;;  %v2381_v48 = vadd.f32 0.1, %v2349_v33  ;;  %v2239_v10 = vpop.xlane.xlu1 %2238  ;;  %v2364_v38 = vsub.f32 %v6494_v21, %v6587_v44  ;;  %v2365_v44 = vsub.f32 %v6501_v47, %v6594_v45 }
 0x5c2   : > { %v6624_v58 = vadd.f32 %v6615_v37, %v2430_v52  ;;  %v6635_v26 = vmul.f32 0.0078125, %v2239_v10  ;;  %v2338_v9 = vmul.f32 %v6629_v40, %v6629_v40 }
 0x5c3   : > { %4853 = vrsqrt.f32 %v2381_v48  ;;  %v2233_v41 = vpop.xlane.xlu0 %2232 }
 0x5c4   : > { %v2482_v59 = vpack.c.bf16 %v6624_v58, %v6621_v49  ;;  %v6637_v51 = vmul.f32 0.0078125, %v2233_v41  ;;  %v2339_v28 = vmul.f32 %v6635_v26, %v6635_v26 }
 0x5c5   : > { %v2235_v4 = vpop.xlane.xlu1 %2234 }
 0x5c6   : > { %4353 = vmatprep.mubr.bf16.mxu0 %v2482_v59  ;;  %v6647_v6 = vmul.f32 0.0078125, %v2235_v4  ;;  %v2336_v33 = vmul.f32 %v6637_v51, %v6637_v51 }
 0x5c7   : > { %v2301_v14 = vpop.xlane.xlu0 %2300  ;;  %4354 = vmatmul.mubr.bf16.vlgmr.msra.gmra.mrb[32].mxu0 %v2483_v8  ;;  %v4848_v34 = vpop.eup %4847 }
 0x5c8   : > { %v2322_v53 = vmul.f32 0.0078125, %v2301_v14  ;;  %v2414_v62 = vmul.f32 %v4848_v34, %v2366_v27  ;;  %v2337_v10 = vmul.f32 %v6647_v6, %v6647_v6 }
 0x5c9   : > { %v4850_v16 = vpop.eup %4849  ;;  %v2303_v29 = vpop.xlane.xlu1 %2302 }
 0x5ca   : > { %v2354_v24 = vsub.f32 %v2322_v53, %v2338_v9  ;;  %v2323_v19 = vmul.f32 0.0078125, %v2303_v29  ;;  %v2415_v55 = vmul.f32 %v4850_v16, %v2367_v31  ;;  %v2435_v27 = vmul.f32 %v6606_v60, %v2414_v62 }
 0x5cb   : > { %v4852_v25 = vpop.eup %4851  ;;  %v2297_v3 = vpop.xlane.xlu0 %2296 }
 0x5cc   : > { %v2386_v52 = vadd.f32 0.1, %v2354_v24  ;;  %v2355_v57 = vsub.f32 %v2323_v19, %v2339_v28  ;;  %v2320_v22 = vmul.f32 0.0078125, %v2297_v3  ;;  %v2412_v48 = vmul.f32 %v4852_v25, %v2364_v38 }
 0x5cd   : > { %v4854_v21 = vpop.eup %4853  ;;  %v2299_v41 = vpop.xlane.xlu1 %2298  ;;  %v2436_v14 = vmul.f32 %v6606_v60, %v2415_v55  ;;  %v6671_v55 = vadd.f32 %v6615_v37, %v2435_v27 }
 0x5ce   : > { %v2387_v59 = vadd.f32 0.1, %v2355_v57  ;;  %v2352_v4 = vsub.f32 %v2320_v22, %v2336_v33  ;;  %v2321_v8 = vmul.f32 0.0078125, %v2299_v41  ;;  %4855 = vrsqrt.f32 %v2386_v52 }
 0x5cf   : > { %v2413_v31 = vmul.f32 %v4854_v21, %v2365_v44  ;;  %v2433_v34 = vmul.f32 %v6606_v60, %v2412_v48  ;;  %v6662_v29 = vadd.f32 %v6615_v37, %v2436_v14  ;;  %v2371_v21 = vsub.f32 %v6531_v61, %v6635_v26 }
 0x5d0   : > { %4857 = vrsqrt.f32 %v2387_v59  ;;  %v2384_v9 = vadd.f32 0.1, %v2352_v4  ;;  %v2353_v53 = vsub.f32 %v2321_v8, %v2337_v10  ;;  %v2245_v16 = vpop.xlane.xlu0 %2244  ;;  %v2370_v59 = vsub.f32 %v6527_v20, %v6629_v40 }
 0x5d1   : > { %v2434_v47 = vmul.f32 %v6606_v60, %v2413_v31  ;;  %v6665_v28 = vadd.f32 %v6615_v37, %v2433_v34  ;;  %v2485_v62 = vpack.c.bf16 %v6662_v29, %v6671_v55  ;;  %v6677_v57 = vmul.f32 0.0078125, %v2245_v16 }
 0x5d2   : > { %4859 = vrsqrt.f32 %v2384_v9  ;;  %v2385_v45 = vadd.f32 0.1, %v2353_v53  ;;  %v2247_v38 = vpop.xlane.xlu1 %2246  ;;  %v2368_v4 = vsub.f32 %v6535_v35, %v6637_v51  ;;  %v2369_v35 = vsub.f32 %v6539_v11, %v6647_v6 }
 0x5d3   : > { %v6668_v24 = vadd.f32 %v6615_v37, %v2434_v47  ;;  %v2263_v8 = vmul.f32 0.0078125, %v2247_v38  ;;  %v2342_v27 = vmul.f32 %v6677_v57, %v6677_v57 }
 0x5d4   : > { %4861 = vrsqrt.f32 %v2385_v45  ;;  %v2241_v19 = vpop.xlane.xlu0 %2240 }
 0x5d5   : > { %v2260_v25 = vmul.f32 0.0078125, %v2241_v19  ;;  %v2484_v33 = vpack.c.bf16 %v6668_v24, %v6665_v28  ;;  %v2343_v40 = vmul.f32 %v2263_v8, %v2263_v8 }
 0x5d6   : > { %v2243_v3 = vpop.xlane.xlu1 %2242 }
 0x5d7   : > { %v2261_v52 = vmul.f32 0.0078125, %v2243_v3  ;;  %4357 = vmatprep.mubr.bf16.mxu0 %v2484_v33  ;;  %v2340_v44 = vmul.f32 %v2260_v25, %v2260_v25 }
 0x5d8   : > { %v2305_v22 = vpop.xlane.xlu0 %2304  ;;  %4358 = vmatmul.mubr.bf16.gmra.mrb[36].mxu0 %v2485_v62  ;;  %v4856_v48 = vpop.eup %4855 }
 0x5d9   : > { %v2324_v10 = vmul.f32 0.0078125, %v2305_v22  ;;  %v2341_v31 = vmul.f32 %v2261_v52, %v2261_v52  ;;  %v2418_v26 = vmul.f32 %v4856_v48, %v2370_v59 }
 0x5da   : > { %v4858_v41 = vpop.eup %4857  ;;  %v2307_v14 = vpop.xlane.xlu1 %2306 }
 0x5db   : > { %v2356_v34 = vsub.f32 %v2324_v10, %v2340_v44  ;;  %v2325_v9 = vmul.f32 0.0078125, %v2307_v14  ;;  %v2419_v53 = vmul.f32 %v4858_v41, %v2371_v21  ;;  %v2439_v41 = vmul.f32 %v6606_v60, %v2418_v26 }
 0x5dc   : > { %v4860_v16 = vpop.eup %4859  ;;  %v2309_v61 = vpop.xlane.xlu0 %2308 }
 0x5dd   : > { %v2388_v47 = vadd.f32 0.1, %v2356_v34  ;;  %v2357_v45 = vsub.f32 %v2325_v9, %v2341_v31  ;;  %v2326_v19 = vmul.f32 0.0078125, %v2309_v61  ;;  %v2416_v33 = vmul.f32 %v4860_v16, %v2368_v4 }
 0x5de   : > { %v4862_v20 = vpop.eup %4861  ;;  %v2311_v51 = vpop.xlane.xlu1 %2310  ;;  %v2440_v38 = vmul.f32 %v6606_v60, %v2419_v53  ;;  %v6703_v31 = vadd.f32 %v6615_v37, %v2439_v41  ;;  %v2372_v53 = vsub.f32 %v6568_v54, %v2260_v25  ;;  %v6752_v41 = vadd.f32 %v6618_v42, %v6352_v30 }
 0x5df   : > { %4863 = vrsqrt.f32 %v2388_v47  ;;  %v2389_v3 = vadd.f32 0.1, %v2357_v45  ;;  %v2358_v62 = vsub.f32 %v2326_v19, %v2342_v27  ;;  %v2327_v22 = vmul.f32 0.0078125, %v2311_v51 }
 0x5e0   : > { %v2417_v21 = vmul.f32 %v4862_v20, %v2369_v35  ;;  %v2437_v44 = vmul.f32 %v6606_v60, %v2416_v33  ;;  %v6694_v6 = vadd.f32 %v6615_v37, %v2440_v38  ;;  %v2373_v27 = vsub.f32 %v6572_v17, %v2261_v52 }
 0x5e1   : > { %4865 = vrsqrt.f32 %v2389_v3  ;;  %v2390_v48 = vadd.f32 0.1, %v2358_v62  ;;  %v2359_v10 = vsub.f32 %v2327_v22, %v2343_v40  ;;  %v2374_v47 = vsub.f32 %v6557_v18, %v6677_v57  ;;  %v6737_v3 = vld [vmem:[%s7537_s4 + $0x2] ss:$0 sm:$0xff] }
 0x5e2   : > { %v2438_v59 = vmul.f32 %v6606_v60, %v2417_v21  ;;  %v6697_v4 = vadd.f32 %v6615_v37, %v2437_v44  ;;  %v2487_v9 = vpack.c.bf16 %v6694_v6, %v6703_v31  ;;  %v2375_v20 = vsub.f32 %v6561_v12, %v2263_v8 }
 0x5e3   : > { %4867 = vrsqrt.f32 %v2390_v48  ;;  %v2391_v11 = vadd.f32 0.1, %v2359_v10 }
 0x5e4   : > { %v6700_v14 = vadd.f32 %v6615_v37, %v2438_v59 }
 0x5e5   : > { %4869 = vrsqrt.f32 %v2391_v11  ;;  %v6760_v11 = vadd.f32 %v6624_v58, %v6360_v13 }
 0x5e6   : > { %v2486_v34 = vpack.c.bf16 %v6700_v14, %v6697_v4 }
 0x5e8   : > { %4361 = vmatprep.mubr.bf16.mxu0 %v2486_v34 }
 0x5e9   : > { %v4864_v16 = vpop.eup %4863  ;;  %4362 = vmatmul.mubr.bf16.gmra.mrb[40].mxu0 %v2487_v9 }
 0x5ea   : > { %v2420_v61 = vmul.f32 %v4864_v16, %v2372_v53 }
 0x5eb   : > { %v4866_v26 = vpop.eup %4865 }
 0x5ec   : > { %v2421_v45 = vmul.f32 %v4866_v26, %v2373_v27  ;;  %v2441_v19 = vmul.f32 %v6606_v60, %v2420_v61  ;;  %v6771_v61 = vadd.f32 %v6671_v55, %v6371_v15  ;;  %v6785_v15 = vadd.f32 %v6668_v24, %v6385_v36 }
 0x5ed   : > { %v4868_v33 = vpop.eup %4867 }
 0x5ee   : > { %v2442_v35 = vmul.f32 %v6606_v60, %v2421_v45  ;;  %v2422_v40 = vmul.f32 %v4868_v33, %v2374_v47  ;;  %v6717_v25 = vadd.f32 %v6615_v37, %v2441_v19  ;;  %v6776_v45 = vadd.f32 %v6662_v29, %v6376_v63 }
 0x5ef   : > { %v4870_v54 = vpop.eup %4869 }
 0x5f0   : > { %v6720_v17 = vadd.f32 %v6615_v37, %v2442_v35  ;;  %v2423_v52 = vmul.f32 %v4870_v54, %v2375_v20  ;;  %v2443_v51 = vmul.f32 %v6606_v60, %v2422_v40  ;;  %v6780_v20 = vadd.f32 %v6665_v28, %v6380_v7 }
 0x5f2   : > { %v2488_v18 = vpack.c.bf16 %v6720_v17, %v6717_v25  ;;  %v2444_v57 = vmul.f32 %v6606_v60, %v2423_v52  ;;  %v6727_v12 = vadd.f32 %v6615_v37, %v2443_v51  ;;  %v6741_v60 = vadd.f32 %v6627_v32, %v6341_v56 }
 0x5f4   : > { %4365 = vmatprep.mubr.bf16.mxu0 %v2488_v18  ;;  %v6730_v8 = vadd.f32 %v6615_v37, %v2444_v57  ;;  %v6746_v37 = vadd.f32 %v6621_v49, %v6346_v39 }
 0x5f6   : > { %v2489_v38 = vpack.c.bf16 %v6730_v8, %v6727_v12 }
 0x5f8   : > { %4366 = vmatmul.mubr.bf16.gmra.mrb[44].mxu0 %v2489_v38 }
 0x69a   : > { %v4355_v62 = vpop.f32.mrb[32].mxu0 }
 0x69b   : > { %v2603_v22 = vadd.f32 %v4355_v62, %v6737_v3  ;;  %v2594_v21 = vpop.f32.mrb[33].mxu0 }
 0x69c   : > { %v2595_v44 = vadd.f32 %v6737_v3, %v2594_v21  ;;  %v4356_v48 = vpop.f32.mrb[34].mxu0 }
 0x69d   : > { %v2659_v10 = vadd.f32 %v2603_v22, %v6741_v60  ;;  %v2606_v59 = vadd.f32 %v4356_v48, %v6737_v3  ;;  %v2597_v56 = vpop.f32.mrb[35].mxu0 }
 0x69e   : > { %v6756_v32 = vadd.f32 %v2595_v44, %v6746_v37  ;;  %v2598_v39 = vadd.f32 %v6737_v3, %v2597_v56 }
 0x69f   : > { %v4022_v49 = vmul.f32 -1.442695, %v2659_v10  ;;  %v2660_v34 = vadd.f32 %v2606_v59, %v6752_v41 }
 0x6a0   : > { %v4020_v9 = vmul.f32 -1.442695, %v6756_v32  ;;  %v6766_v30 = vadd.f32 %v2598_v39, %v6760_v11 }
 0x6a1   : > { %4871 = vpow2.f32 %v4022_v49  ;;  %v4023_v42 = vmul.f32 -1.442695, %v2660_v34  ;;  %v6812_v49 = vadd.f32 %v6703_v31, %v6412_v23 }
 0x6a2   : > { %4873 = vpow2.f32 %v4020_v9  ;;  %v4021_v53 = vmul.f32 -1.442695, %v6766_v30 }
 0x6a3   : > { %4875 = vpow2.f32 %v4023_v42  ;;  %v6816_v42 = vadd.f32 %v6694_v6, %v6416_v2  ;;  %v6830_v6 = vadd.f32 %v6700_v14, %v6430_v43 }
 0x6a4   : > { %4877 = vpow2.f32 %v4021_v53 }
 0x6ab   : > { %v4872_v16 = vpop.eup %4871  ;;  %v4359_v13 = vpop.f32.mrb[36].mxu0 }
 0x6ac   : > { %v4874_v58 = vpop.eup %4873  ;;  %v2723_v27 = vadd.f32 1.0, %v4872_v16  ;;  %v2619_v26 = vadd.f32 %v4359_v13, %v6737_v3  ;;  %v2610_v47 = vpop.f32.mrb[37].mxu0  ;;  %v6821_v13 = vadd.f32 %v6697_v4, %v6421_v46 }
 0x6ad   : > { %v4876_v19 = vpop.eup %4875  ;;  %v2721_v33 = vadd.f32 1.0, %v4874_v58  ;;  %v2611_v35 = vadd.f32 %v6737_v3, %v2610_v47  ;;  %v4360_v40 = vpop.f32.mrb[38].mxu0 }
 0x6ae   : > { %v4878_v55 = vpop.eup %4877  ;;  %4879 = vrcp.f32 %v2723_v27  ;;  %v2724_v54 = vadd.f32 1.0, %v4876_v19  ;;  %v6788_v52 = vadd.f32 %v2619_v26, %v6771_v61  ;;  %v2622_v63 = vadd.f32 %v4360_v40, %v6737_v3  ;;  %v2613_v29 = vpop.f32.mrb[39].mxu0 }
 0x6af   : > { %4881 = vrcp.f32 %v2721_v33  ;;  %v2722_v51 = vadd.f32 1.0, %v4878_v55  ;;  %v6792_v7 = vadd.f32 %v2611_v35, %v6780_v20  ;;  %v2614_v28 = vadd.f32 %v6737_v3, %v2613_v29 }
 0x6b0   : > { %4883 = vrcp.f32 %v2724_v54  ;;  %v4026_v36 = vmul.f32 -1.442695, %v6788_v52  ;;  %v6797_v24 = vadd.f32 %v2622_v63, %v6776_v45 }
 0x6b1   : > { %4885 = vrcp.f32 %v2722_v51  ;;  %v4024_v18 = vmul.f32 -1.442695, %v6792_v7  ;;  %v6801_v57 = vadd.f32 %v2614_v28, %v6785_v15 }
 0x6b2   : > { %4887 = vpow2.f32 %v4026_v36  ;;  %v4027_v38 = vmul.f32 -1.442695, %v6797_v24 }
 0x6b3   : > { %4889 = vpow2.f32 %v4024_v18  ;;  %v4025_v62 = vmul.f32 -1.442695, %v6801_v57 }
 0x6b4   : > { %4891 = vpow2.f32 %v4027_v38 }
 0x6b5   : > { %4893 = vpow2.f32 %v4025_v62 }
 0x6b8   : > { %v4880_v22 = vpop.eup %4879 }
 0x6b9   : > { %v4882_v21 = vpop.eup %4881  ;;  %v6805_v44 = vmul.f32 %v4880_v22, %v2659_v10 }
 0x6ba   : > { %v4884_v48 = vpop.eup %4883  ;;  %v6825_v58 = vmul.f32 %v4882_v21, %v6756_v32 }
 0x6bb   : > { %v4886_v59 = vpop.eup %4885  ;;  %2789 = vadd.xlane.f32.xlu0 %v6805_v44  ;;  %v6808_v56 = vmul.f32 %v4884_v48, %v2660_v34  ;;  %v2835_v40 = vmul.f32 %v6805_v44, %v6805_v44 }
 0x6bc   : > { %v4888_v39 = vpop.eup %4887  ;;  %v4363_v9 = vpop.f32.mrb[40].mxu0  ;;  %v6833_v26 = vmul.f32 %v4886_v59, %v6766_v30  ;;  %v2833_v28 = vmul.f32 %v6825_v58, %v6825_v58  ;;  %v6868_v59 = vadd.f32 %v6727_v12, %v6468_v0  ;;  %v6886_v12 = vadd.f32 %v6720_v17, %v6486_v5 }
 0x6bd   : > { %v4890_v53 = vpop.eup %4889  ;;  %v2727_v16 = vadd.f32 1.0, %v4888_v39  ;;  %v2635_v10 = vadd.f32 %v4363_v9, %v6737_v3  ;;  %v2626_v34 = vpop.f32.mrb[41].mxu0  ;;  %2791 = vadd.xlane.f32.xlu1 %v6808_v56  ;;  %v2836_v29 = vmul.f32 %v6808_v56, %v6808_v56 }
 0x6be   : > { %v4892_v23 = vpop.eup %4891  ;;  %v2725_v31 = vadd.f32 1.0, %v4890_v53  ;;  %v2627_v27 = vadd.f32 %v6737_v3, %v2626_v34  ;;  %v4364_v2 = vpop.f32.mrb[42].mxu0  ;;  %v2834_v36 = vmul.f32 %v6833_v26, %v6833_v26  ;;  %v6882_v34 = vadd.f32 %v6730_v8, %v6482_v1 }
 0x6bf   : > { %v4894_v46 = vpop.eup %4893  ;;  %4895 = vrcp.f32 %v2727_v16  ;;  %v2728_v4 = vadd.f32 1.0, %v4892_v23  ;;  %v6836_v47 = vadd.f32 %v2635_v10, %v6812_v49  ;;  %v2638_v32 = vadd.f32 %v4364_v2, %v6737_v3  ;;  %v2629_v19 = vpop.f32.mrb[43].mxu0  ;;  %2785 = vadd.xlane.f32.xlu0 %v6825_v58 }
 0x6c0   : > { %4897 = vrcp.f32 %v2725_v31  ;;  %v2726_v33 = vadd.f32 1.0, %v4894_v46  ;;  %v6841_v35 = vadd.f32 %v2627_v27, %v6821_v13  ;;  %v2630_v43 = vadd.f32 %v6737_v3, %v2629_v19 }
 0x6c1   : > { %4899 = vrcp.f32 %v2728_v4  ;;  %v4030_v14 = vmul.f32 -1.442695, %v6836_v47  ;;  %v6846_v30 = vadd.f32 %v2638_v32, %v6816_v42  ;;  %2787 = vadd.xlane.f32.xlu1 %v6833_v26 }
 0x6c2   : > { %4901 = vrcp.f32 %v2726_v33  ;;  %v4028_v55 = vmul.f32 -1.442695, %v6841_v35  ;;  %v6853_v54 = vadd.f32 %v2630_v43, %v6830_v6 }
 0x6c3   : > { %4903 = vpow2.f32 %v4030_v14  ;;  %v4031_v63 = vmul.f32 -1.442695, %v6846_v30  ;;  %2853 = vadd.xlane.f32.xlu0 %v2835_v40 }
 0x6c4   : > { %4905 = vpow2.f32 %v4028_v55  ;;  %v4029_v51 = vmul.f32 -1.442695, %v6853_v54 }
 0x6c5   : > { %4907 = vpow2.f32 %v4031_v63  ;;  %2855 = vadd.xlane.f32.xlu1 %v2836_v29  ;;  %v4536_v29 = vld [vmem:[%s7536_s3 + $0xc8] sm:$0xff]  }
 0x6c6   : > { %4909 = vpow2.f32 %v4029_v51 }
 0x6c7   : > { %2849 = vadd.xlane.f32.xlu0 %v2833_v28 }
 0x6c9   : > { %v4896_v18 = vpop.eup %4895  ;;  %2851 = vadd.xlane.f32.xlu1 %v2834_v36 }
 0x6ca   : > { %v4898_v38 = vpop.eup %4897  ;;  %v6864_v62 = vmul.f32 %v4896_v18, %v6788_v52  ;;  %v6877_v52 = vadd.f32 %v6717_v25, %v6477_v50 }
 0x6cb   : > { %v4900_v22 = vpop.eup %4899  ;;  %v4367_v21 = vpop.f32.mrb[44].mxu0  ;;  %v6894_v25 = vmul.f32 %v4898_v38, %v6792_v7  ;;  %v4537_v38 = vld [vmem:[%s7536_s3 + $0xd0] sm:$0xff]  }
 0x6cc   : > { %v4902_v48 = vpop.eup %4901  ;;  %v2651_v39 = vadd.f32 %v4367_v21, %v6737_v3  ;;  %v2642_v9 = vpop.f32.mrb[45].mxu0  ;;  %2797 = vadd.xlane.f32.xlu0 %v6864_v62  ;;  %v6873_v53 = vmul.f32 %v4900_v22, %v6797_v24  ;;  %v2839_v14 = vmul.f32 %v6864_v62, %v6864_v62 }
 0x6cd   : > { %v4904_v16 = vpop.eup %4903  ;;  %v2643_v10 = vadd.f32 %v6737_v3, %v2642_v9  ;;  %v4368_v0 = vpop.f32.mrb[46].mxu0  ;;  %v6901_v17 = vmul.f32 %v4902_v48, %v6801_v57  ;;  %v2837_v63 = vmul.f32 %v6894_v25, %v6894_v25 }
 0x6ce   : > { %v4906_v23 = vpop.eup %4905  ;;  %v2731_v31 = vadd.f32 1.0, %v4904_v16  ;;  %v6889_v24 = vadd.f32 %v2651_v39, %v6868_v59  ;;  %v2654_v27 = vadd.f32 %v4368_v0, %v6737_v3  ;;  %v2645_v50 = vpop.f32.mrb[47].mxu0  ;;  %2799 = vadd.xlane.f32.xlu1 %v6873_v53  ;;  %v2840_v55 = vmul.f32 %v6873_v53, %v6873_v53 }
 0x6cf   : > { %v4908_v1 = vpop.eup %4907  ;;  %v2729_v8 = vadd.f32 1.0, %v4906_v23  ;;  %v6897_v2 = vadd.f32 %v2643_v10, %v6877_v52  ;;  %v2646_v5 = vadd.f32 %v6737_v3, %v2645_v50  ;;  %v4535_v3 = vld [vmem:[%s7536_s3 + $0xc0] sm:$0xff]   ;;  %v2838_v51 = vmul.f32 %v6901_v17, %v6901_v17  ;;  %v4538_v10 = vld [vmem:[%s7536_s3 + $0xd8] sm:$0xff]  }
 0x6d0   : > { %v4910_v46 = vpop.eup %4909  ;;  %4911 = vrcp.f32 %v2731_v31  ;;  %v2732_v4 = vadd.f32 1.0, %v4908_v1  ;;  %v4034_v32 = vmul.f32 -1.442695, %v6889_v24  ;;  %v6905_v19 = vadd.f32 %v2654_v27, %v6882_v34  ;;  %2793 = vadd.xlane.f32.xlu0 %v6894_v25  ;;  %4369 = vmatprep.subr.bf16.mxu1 %v4535_v3  ;;  %v4539_v1 = vld [vmem:[%s7536_s3 + $0xe0] sm:$0xff]  }
 0x6d1   : > { %4913 = vrcp.f32 %v2729_v8  ;;  %v2730_v7 = vadd.f32 1.0, %v4910_v46  ;;  %v4032_v33 = vmul.f32 -1.442695, %v6897_v2  ;;  %v6910_v43 = vadd.f32 %v2646_v5, %v6886_v12  ;;  %4370 = vmatpush3.bf16.msra.mxu1 %v4535_v3  ;;  %v4540_v5 = vld [vmem:[%s7536_s3 + $0xe8] sm:$0xff]  }
 0x6d2   : > { %4915 = vrcp.f32 %v2732_v4  ;;  %v4035_v57 = vmul.f32 -1.442695, %v6905_v19  ;;  %2795 = vadd.xlane.f32.xlu1 %v6901_v17  ;;  %4371 = vmatprep.subr.bf16.mxu1 %v4536_v29 }
 0x6d3   : > { %4917 = vrcp.f32 %v2730_v7  ;;  %v4033_v40 = vmul.f32 -1.442695, %v6910_v43 }
 0x6d4   : > { %4919 = vpow2.f32 %v4034_v32  ;;  %2861 = vadd.xlane.f32.xlu0 %v2839_v14  ;;  %v4541_v32 = vld [vmem:[%s7536_s3 + $0xf0] sm:$0xff]  }
 0x6d5   : > { %4921 = vpow2.f32 %v4032_v33  ;;  %4372 = vmatpush3.bf16.msra.mxu1 %v4536_v29 }
 0x6d6   : > { %4923 = vpow2.f32 %v4035_v57  ;;  %2863 = vadd.xlane.f32.xlu1 %v2840_v55  ;;  %4373 = vmatprep.subr.bf16.mxu1 %v4537_v38 }
 0x6d7   : > { %4925 = vpow2.f32 %v4033_v40  ;;  %v4542_v40 = vld [vmem:[%s7536_s3 + $0xf8] sm:$0xff]  }
 0x6d8   : > { %2857 = vadd.xlane.f32.xlu0 %v2837_v63 }
 0x6d9   : > { %4374 = vmatpush3.bf16.msra.mxu1 %v4537_v38 }
 0x6da   : > { %v4912_v28 = vpop.eup %4911  ;;  %2859 = vadd.xlane.f32.xlu1 %v2838_v51  ;;  %4375 = vmatprep.subr.bf16.mxu1 %v4538_v10 }
 0x6db   : > { %v4914_v36 = vpop.eup %4913  ;;  %v6930_v18 = vmul.f32 %v4912_v28, %v6836_v47 }
 0x6dc   : > { %v4916_v22 = vpop.eup %4915  ;;  %v6941_v47 = vmul.f32 %v4914_v36, %v6841_v35 }
 0x6dd   : > { %v4918_v21 = vpop.eup %4917  ;;  %2805 = vadd.xlane.f32.xlu0 %v6930_v18  ;;  %v6937_v48 = vmul.f32 %v4916_v22, %v6846_v30  ;;  %4376 = vmatpush3.bf16.msra.mxu1 %v4538_v10  ;;  %v2843_v35 = vmul.f32 %v6930_v18, %v6930_v18 }
 0x6de   : > { %v4920_v39 = vpop.eup %4919  ;;  %v6948_v27 = vmul.f32 %v4918_v21, %v6853_v54  ;;  %4377 = vmatprep.subr.bf16.mxu1 %v4539_v1  ;;  %v2841_v8 = vmul.f32 %v6941_v47, %v6941_v47 }
 0x6df   : > { %v4922_v9 = vpop.eup %4921  ;;  %v2735_v16 = vadd.f32 1.0, %v4920_v39  ;;  %2807 = vadd.xlane.f32.xlu1 %v6937_v48  ;;  %v2844_v54 = vmul.f32 %v6937_v48, %v6937_v48 }
 0x6e0   : > { %v4924_v0 = vpop.eup %4923  ;;  %v2733_v23 = vadd.f32 1.0, %v4922_v9  ;;  %v2842_v46 = vmul.f32 %v6948_v27, %v6948_v27 }
 0x6e1   : > { %v4926_v31 = vpop.eup %4925  ;;  %4927 = vrcp.f32 %v2735_v16  ;;  %v2736_v30 = vadd.f32 1.0, %v4924_v0  ;;  %2801 = vadd.xlane.f32.xlu0 %v6941_v47  ;;  %4378 = vmatpush3.bf16.msra.mxu1 %v4539_v1 }
 0x6e2   : > { %4929 = vrcp.f32 %v2733_v23  ;;  %v2734_v50 = vadd.f32 1.0, %v4926_v31  ;;  %4379 = vmatprep.subr.bf16.mxu1 %v4540_v5 }
 0x6e3   : > { %4931 = vrcp.f32 %v2736_v30  ;;  %2803 = vadd.xlane.f32.xlu1 %v6948_v27 }
 0x6e4   : > { %4933 = vrcp.f32 %v2734_v50 }
 0x6e5   : > { %2869 = vadd.xlane.f32.xlu0 %v2843_v35  ;;  %4380 = vmatpush3.bf16.msra.mxu1 %v4540_v5 }
 0x6e6   : > { %4381 = vmatprep.subr.bf16.mxu1 %v4541_v32 }
 0x6e7   : > { %2871 = vadd.xlane.f32.xlu1 %v2844_v54 }
 0x6e9   : > { %2865 = vadd.xlane.f32.xlu0 %v2841_v8  ;;  %4382 = vmatpush3.bf16.msra.mxu1 %v4541_v32 }
 0x6ea   : > { %4383 = vmatprep.subr.bf16.mxu1 %v4542_v40 }
 0x6eb   : > { %v4928_v4 = vpop.eup %4927  ;;  %2867 = vadd.xlane.f32.xlu1 %v2842_v46 }
 0x6ec   : > { %v4930_v7 = vpop.eup %4929  ;;  %v6969_v33 = vmul.f32 %v4928_v4, %v6889_v24 }
 0x6ed   : > { %v4932_v3 = vpop.eup %4931  ;;  %v6980_v55 = vmul.f32 %v4930_v7, %v6897_v2  ;;  %4384 = vmatpush3.bf16.msra.mxu1 %v4542_v40 }
 0x6ee   : > { %2813 = vadd.xlane.f32.xlu0 %v6969_v33  ;;  %v6973_v57 = vmul.f32 %v4932_v3, %v6905_v19  ;;  %v4934_v14 = vpop.eup %4933  ;;  %v2847_v2 = vmul.f32 %v6969_v33, %v6969_v33 }
 0x6ef   : > { %v6984_v24 = vmul.f32 %v4934_v14, %v6910_v43  ;;  %v2845_v19 = vmul.f32 %v6980_v55, %v6980_v55 }
 0x6f0   : > { %2815 = vadd.xlane.f32.xlu1 %v6973_v57  ;;  %v2848_v29 = vmul.f32 %v6973_v57, %v6973_v57 }
 0x6f1   : > { %v2846_v63 = vmul.f32 %v6984_v24, %v6984_v24 }
 0x6f2   : > { %2809 = vadd.xlane.f32.xlu0 %v6980_v55 }
 0x6f4   : > { %2811 = vadd.xlane.f32.xlu1 %v6984_v24 }
 0x6f6   : > { %2873 = vadd.xlane.f32.xlu0 %v2845_v19 }
 0x6f8   : > { %2875 = vadd.xlane.f32.xlu1 %v2846_v63 }
 0x6fa   : > { %2877 = vadd.xlane.f32.xlu0 %v2847_v2 }
 0x6fc   : > { %2879 = vadd.xlane.f32.xlu1 %v2848_v29 }
 0x748   : > { %v2790_v43 = vpop.xlane.xlu0 %2789 }
 0x749   : > { %v2819_v36 = vmul.f32 0.0078125, %v2790_v43 }
 0x74a   : > { %v2792_v51 = vpop.xlane.xlu1 %2791 }
 0x74b   : > { %v2820_v22 = vmul.f32 0.0078125, %v2792_v51  ;;  %v2899_v39 = vmul.f32 %v2819_v36, %v2819_v36 }
 0x74c   : > { %v2786_v28 = vpop.xlane.xlu0 %2785 }
 0x74d   : > { %v2817_v9 = vmul.f32 0.0078125, %v2786_v28  ;;  %v2900_v0 = vmul.f32 %v2820_v22, %v2820_v22 }
 0x74e   : > { %v2788_v38 = vpop.xlane.xlu1 %2787 }
 0x74f   : > { %v2818_v23 = vmul.f32 0.0078125, %v2788_v38  ;;  %v2897_v35 = vmul.f32 %v2817_v9, %v2817_v9 }
 0x750   : > { %v2854_v21 = vpop.xlane.xlu0 %2853 }
 0x751   : > { %v2883_v16 = vmul.f32 0.0078125, %v2854_v21  ;;  %v2898_v46 = vmul.f32 %v2818_v23, %v2818_v23 }
 0x752   : > { %v2856_v10 = vpop.xlane.xlu1 %2855 }
 0x753   : > { %v2915_v31 = vsub.f32 %v2883_v16, %v2899_v39  ;;  %v2884_v30 = vmul.f32 0.0078125, %v2856_v10  ;;  %v2932_v39 = vsub.f32 %v6808_v56, %v2820_v22 }
 0x754   : > { %v2850_v50 = vpop.xlane.xlu0 %2849 }
 0x755   : > { %v2947_v1 = vadd.f32 0.1, %v2915_v31  ;;  %v2916_v54 = vsub.f32 %v2884_v30, %v2900_v0  ;;  %v2881_v8 = vmul.f32 0.0078125, %v2850_v50  ;;  %v2931_v31 = vsub.f32 %v6805_v44, %v2819_v36 }
 0x756   : > { %v2852_v5 = vpop.xlane.xlu1 %2851  ;;  %v2929_v30 = vsub.f32 %v6825_v58, %v2817_v9  ;;  %v2930_v9 = vsub.f32 %v6833_v26, %v2818_v23 }
 0x757   : > { %v2948_v4 = vadd.f32 0.1, %v2916_v54  ;;  %v2913_v32 = vsub.f32 %v2881_v8, %v2897_v35  ;;  %v2882_v7 = vmul.f32 0.0078125, %v2852_v5  ;;  %4935 = vrsqrt.f32 %v2947_v1 }
 0x759   : > { %4937 = vrsqrt.f32 %v2948_v4  ;;  %v2945_v3 = vadd.f32 0.1, %v2913_v32  ;;  %v2914_v14 = vsub.f32 %v2882_v7, %v2898_v46  ;;  %v2798_v40 = vpop.xlane.xlu0 %2797 }
 0x75a   : > { %v6995_v29 = vmul.f32 0.0078125, %v2798_v40  ;;  %v7018_v40 = vld [vmem:[%s7538_s5 + $0x3] ss:$0 sm:$0xff] }
 0x75b   : > { %4939 = vrsqrt.f32 %v2945_v3  ;;  %v2946_v19 = vadd.f32 0.1, %v2914_v14  ;;  %v2800_v63 = vpop.xlane.xlu1 %2799 }
 0x75c   : > { %v6997_v51 = vmul.f32 0.0078125, %v2800_v63  ;;  %v2903_v16 = vmul.f32 %v6995_v29, %v6995_v29 }
 0x75d   : > { %4941 = vrsqrt.f32 %v2946_v19  ;;  %v2794_v2 = vpop.xlane.xlu0 %2793 }
 0x75e   : > { %v6999_v28 = vmul.f32 0.0078125, %v2794_v2  ;;  %v2904_v54 = vmul.f32 %v6997_v51, %v6997_v51 }
 0x75f   : > { %v2796_v43 = vpop.xlane.xlu1 %2795 }
 0x760   : > { %v7006_v50 = vmul.f32 0.0078125, %v2796_v43  ;;  %v2901_v22 = vmul.f32 %v6999_v28, %v6999_v28 }
 0x761   : > { %v2862_v38 = vpop.xlane.xlu0 %2861  ;;  %v4936_v21 = vpop.eup %4935 }
 0x762   : > { %v2887_v10 = vmul.f32 0.0078125, %v2862_v38  ;;  %v2979_v56 = vmul.f32 %v4936_v21, %v2931_v31  ;;  %v2902_v3 = vmul.f32 %v7006_v50, %v7006_v50 }
 0x763   : > { %v4938_v0 = vpop.eup %4937  ;;  %v2864_v35 = vpop.xlane.xlu1 %2863 }
 0x764   : > { %v2980_v1 = vmul.f32 %v4938_v0, %v2932_v39  ;;  %v2919_v8 = vsub.f32 %v2887_v10, %v2903_v16  ;;  %v2888_v5 = vmul.f32 0.0078125, %v2864_v35  ;;  %v3000_v16 = vmul.f32 %v7018_v40, %v2979_v56  ;;  %v7027_v0 = vld [vmem:[%s7539_s6 + $0x3] ss:$0 sm:$0xff] }
 0x765   : > { %v4940_v46 = vpop.eup %4939  ;;  %v2858_v4 = vpop.xlane.xlu0 %2857 }
 0x766   : > { %v2951_v32 = vadd.f32 0.1, %v2919_v8  ;;  %v2920_v7 = vsub.f32 %v2888_v5, %v2904_v54  ;;  %v2885_v44 = vmul.f32 0.0078125, %v2858_v4  ;;  %v2977_v36 = vmul.f32 %v4940_v46, %v2929_v30 }
 0x767   : > { %v4942_v58 = vpop.eup %4941  ;;  %v2860_v14 = vpop.xlane.xlu1 %2859  ;;  %v3001_v43 = vmul.f32 %v7018_v40, %v2980_v1  ;;  %v7039_v5 = vadd.f32 %v7027_v0, %v3000_v16 }
 0x768   : > { %v2952_v19 = vadd.f32 0.1, %v2920_v7  ;;  %v2917_v63 = vsub.f32 %v2885_v44, %v2901_v22  ;;  %v2886_v2 = vmul.f32 0.0078125, %v2860_v14  ;;  %4943 = vrsqrt.f32 %v2951_v32 }
 0x769   : > { %v2978_v38 = vmul.f32 %v4942_v58, %v2930_v9  ;;  %v2998_v21 = vmul.f32 %v7018_v40, %v2977_v36  ;;  %v7030_v35 = vadd.f32 %v7027_v0, %v3001_v43  ;;  %v2936_v58 = vsub.f32 %v6873_v53, %v6997_v51 }
 0x76a   : > { %4945 = vrsqrt.f32 %v2952_v19  ;;  %v2949_v26 = vadd.f32 0.1, %v2917_v63  ;;  %v2918_v23 = vsub.f32 %v2886_v2, %v2902_v3  ;;  %v2806_v39 = vpop.xlane.xlu0 %2805  ;;  %v2935_v19 = vsub.f32 %v6864_v62, %v6995_v29 }
 0x76b   : > { %v2999_v10 = vmul.f32 %v7018_v40, %v2978_v38  ;;  %v7033_v1 = vadd.f32 %v7027_v0, %v2998_v21  ;;  %v7041_v46 = vmul.f32 0.0078125, %v2806_v39  ;;  %v3052_v4 = vpack.c.bf16 %v7030_v35, %v7039_v5 }
 0x76c   : > { %4947 = vrsqrt.f32 %v2949_v26  ;;  %v2950_v31 = vadd.f32 0.1, %v2918_v23  ;;  %v2808_v30 = vpop.xlane.xlu1 %2807  ;;  %v2933_v63 = vsub.f32 %v6894_v25, %v6999_v28  ;;  %v2934_v28 = vsub.f32 %v6901_v17, %v7006_v50 }
 0x76d   : > { %v7036_v54 = vadd.f32 %v7027_v0, %v2999_v10  ;;  %v7047_v32 = vmul.f32 0.0078125, %v2808_v30  ;;  %v2907_v9 = vmul.f32 %v7041_v46, %v7041_v46 }
 0x76e   : > { %4949 = vrsqrt.f32 %v2950_v31  ;;  %v2802_v8 = vpop.xlane.xlu0 %2801 }
 0x76f   : > { %v3051_v56 = vpack.c.bf16 %v7036_v54, %v7033_v1  ;;  %v7049_v7 = vmul.f32 0.0078125, %v2802_v8  ;;  %v2908_v38 = vmul.f32 %v7047_v32, %v7047_v32 }
 0x770   : > { %v2804_v22 = vpop.xlane.xlu1 %2803 }
 0x771   : > { %4385 = vmatprep.mubr.bf16.mxu1 %v3051_v56  ;;  %v7059_v2 = vmul.f32 0.0078125, %v2804_v22  ;;  %v2905_v23 = vmul.f32 %v7049_v7, %v7049_v7 }
 0x772   : > { %v2870_v44 = vpop.xlane.xlu0 %2869  ;;  %4386 = vmatmul.mubr.bf16.vlgmr.msra.gmra.mrb[48].mxu1 %v3052_v4  ;;  %v4944_v36 = vpop.eup %4943 }
 0x773   : > { %v2891_v3 = vmul.f32 0.0078125, %v2870_v44  ;;  %v2983_v16 = vmul.f32 %v4944_v36, %v2935_v19  ;;  %v2906_v30 = vmul.f32 %v7059_v2, %v7059_v2 }
 0x774   : > { %v4946_v14 = vpop.eup %4945  ;;  %v2872_v43 = vpop.xlane.xlu1 %2871 }
 0x775   : > { %v2923_v21 = vsub.f32 %v2891_v3, %v2907_v9  ;;  %v2892_v26 = vmul.f32 0.0078125, %v2872_v43  ;;  %v2984_v53 = vmul.f32 %v4946_v14, %v2936_v58  ;;  %v3004_v19 = vmul.f32 %v7018_v40, %v2983_v16 }
 0x776   : > { %v4948_v51 = vpop.eup %4947  ;;  %v2866_v39 = vpop.xlane.xlu0 %2865 }
 0x777   : > { %v2955_v10 = vadd.f32 0.1, %v2923_v21  ;;  %v2924_v62 = vsub.f32 %v2892_v26, %v2908_v38  ;;  %v2889_v29 = vmul.f32 0.0078125, %v2866_v39  ;;  %v2981_v31 = vmul.f32 %v4948_v51, %v2933_v63 }
 0x778   : > { %v4950_v25 = vpop.eup %4949  ;;  %v2868_v8 = vpop.xlane.xlu1 %2867  ;;  %v3005_v44 = vmul.f32 %v7018_v40, %v2984_v53  ;;  %v7083_v53 = vadd.f32 %v7027_v0, %v3004_v19 }
 0x779   : > { %v2956_v56 = vadd.f32 0.1, %v2924_v62  ;;  %v2921_v22 = vsub.f32 %v2889_v29, %v2905_v23  ;;  %v2890_v4 = vmul.f32 0.0078125, %v2868_v8  ;;  %4951 = vrsqrt.f32 %v2955_v10 }
 0x77a   : > { %v2982_v58 = vmul.f32 %v4950_v25, %v2934_v28  ;;  %v3002_v36 = vmul.f32 %v7018_v40, %v2981_v31  ;;  %v7074_v43 = vadd.f32 %v7027_v0, %v3005_v44  ;;  %v2940_v25 = vsub.f32 %v6937_v48, %v7047_v32 }
 0x77b   : > { %4953 = vrsqrt.f32 %v2956_v56  ;;  %v2953_v9 = vadd.f32 0.1, %v2921_v22  ;;  %v2922_v3 = vsub.f32 %v2890_v4, %v2906_v30  ;;  %v2814_v14 = vpop.xlane.xlu0 %2813  ;;  %v2939_v56 = vsub.f32 %v6930_v18, %v7041_v46 }
 0x77c   : > { %v3003_v17 = vmul.f32 %v7018_v40, %v2982_v58  ;;  %v7077_v38 = vadd.f32 %v7027_v0, %v3002_v36  ;;  %v3054_v16 = vpack.c.bf16 %v7074_v43, %v7083_v53  ;;  %v7089_v62 = vmul.f32 0.0078125, %v2814_v14 }
 0x77d   : > { %4955 = vrsqrt.f32 %v2953_v9  ;;  %v2954_v50 = vadd.f32 0.1, %v2922_v3  ;;  %v2816_v63 = vpop.xlane.xlu1 %2815  ;;  %v2937_v22 = vsub.f32 %v6941_v47, %v7049_v7  ;;  %v2938_v47 = vsub.f32 %v6948_v27, %v7059_v2 }
 0x77e   : > { %v7080_v21 = vadd.f32 %v7027_v0, %v3003_v17  ;;  %v2832_v4 = vmul.f32 0.0078125, %v2816_v63  ;;  %v2911_v19 = vmul.f32 %v7089_v62, %v7089_v62 }
 0x77f   : > { %4957 = vrsqrt.f32 %v2954_v50  ;;  %v2810_v26 = vpop.xlane.xlu0 %2809 }
 0x780   : > { %v2829_v51 = vmul.f32 0.0078125, %v2810_v26  ;;  %v3053_v23 = vpack.c.bf16 %v7080_v21, %v7077_v38  ;;  %v2912_v46 = vmul.f32 %v2832_v4, %v2832_v4 }
 0x781   : > { %v2812_v39 = vpop.xlane.xlu1 %2811 }
 0x782   : > { %v2830_v10 = vmul.f32 0.0078125, %v2812_v39  ;;  %4389 = vmatprep.mubr.bf16.mxu1 %v3053_v23  ;;  %v2909_v28 = vmul.f32 %v2829_v51, %v2829_v51 }
 0x783   : > { %v2874_v29 = vpop.xlane.xlu0 %2873  ;;  %4390 = vmatmul.mubr.bf16.gmra.mrb[52].mxu1 %v3054_v16  ;;  %v4952_v31 = vpop.eup %4951 }
 0x784   : > { %v2893_v30 = vmul.f32 0.0078125, %v2874_v29  ;;  %v2910_v58 = vmul.f32 %v2830_v10, %v2830_v10  ;;  %v2987_v32 = vmul.f32 %v4952_v31, %v2939_v56 }
 0x785   : > { %v4954_v8 = vpop.eup %4953  ;;  %v2876_v44 = vpop.xlane.xlu1 %2875 }
 0x786   : > { %v2925_v36 = vsub.f32 %v2893_v30, %v2909_v28  ;;  %v2894_v9 = vmul.f32 0.0078125, %v2876_v44  ;;  %v2988_v3 = vmul.f32 %v4954_v8, %v2940_v25  ;;  %v3008_v8 = vmul.f32 %v7018_v40, %v2987_v32 }
 0x787   : > { %v4956_v14 = vpop.eup %4955  ;;  %v2878_v48 = vpop.xlane.xlu0 %2877 }
 0x788   : > { %v2957_v17 = vadd.f32 0.1, %v2925_v36  ;;  %v2926_v50 = vsub.f32 %v2894_v9, %v2910_v58  ;;  %v2895_v26 = vmul.f32 0.0078125, %v2878_v48  ;;  %v2985_v23 = vmul.f32 %v4956_v14, %v2937_v22 }
 0x789   : > { %v4958_v18 = vpop.eup %4957  ;;  %v2880_v7 = vpop.xlane.xlu1 %2879  ;;  %v3009_v63 = vmul.f32 %v7018_v40, %v2988_v3  ;;  %v7115_v58 = vadd.f32 %v7027_v0, %v3008_v8  ;;  %v2941_v3 = vsub.f32 %v6980_v55, %v2829_v51  ;;  %v3038_v8 = vadd.f32 %v7030_v35, %v6752_v41 }
 0x78a   : > { %4959 = vrsqrt.f32 %v2957_v17  ;;  %v2958_v39 = vadd.f32 0.1, %v2926_v50  ;;  %v2927_v16 = vsub.f32 %v2895_v26, %v2911_v19  ;;  %v2896_v29 = vmul.f32 0.0078125, %v2880_v7 }
 0x78b   : > { %v2986_v25 = vmul.f32 %v4958_v18, %v2938_v47  ;;  %v3006_v28 = vmul.f32 %v7018_v40, %v2985_v23  ;;  %v7106_v2 = vadd.f32 %v7027_v0, %v3009_v63  ;;  %v2942_v19 = vsub.f32 %v6984_v24, %v2830_v10 }
 0x78c   : > { %4961 = vrsqrt.f32 %v2958_v39  ;;  %v2959_v31 = vadd.f32 0.1, %v2927_v16  ;;  %v2928_v30 = vsub.f32 %v2896_v29, %v2912_v46  ;;  %v2943_v17 = vsub.f32 %v6969_v33, %v7089_v62  ;;  %v7149_v39 = vld [vmem:[%s7537_s4 + $0x3] ss:$0 sm:$0xff] }
 0x78d   : > { %v3007_v56 = vmul.f32 %v7018_v40, %v2986_v25  ;;  %v7109_v22 = vadd.f32 %v7027_v0, %v3006_v28  ;;  %v3056_v9 = vpack.c.bf16 %v7106_v2, %v7115_v58  ;;  %v2944_v18 = vsub.f32 %v6973_v57, %v2832_v4 }
 0x78e   : > { %4963 = vrsqrt.f32 %v2959_v31  ;;  %v2960_v27 = vadd.f32 0.1, %v2928_v30 }
 0x78f   : > { %v7112_v44 = vadd.f32 %v7027_v0, %v3007_v56 }
 0x790   : > { %4965 = vrsqrt.f32 %v2960_v27 }
 0x791   : > { %v3055_v36 = vpack.c.bf16 %v7112_v44, %v7109_v22 }
 0x793   : > { %4393 = vmatprep.mubr.bf16.mxu1 %v3055_v36 }
 0x794   : > { %v4960_v14 = vpop.eup %4959  ;;  %4394 = vmatmul.mubr.bf16.gmra.mrb[56].mxu1 %v3056_v9 }
 0x795   : > { %v2989_v48 = vmul.f32 %v4960_v14, %v2941_v3 }
 0x796   : > { %v4962_v32 = vpop.eup %4961 }
 0x797   : > { %v2990_v50 = vmul.f32 %v4962_v32, %v2942_v19  ;;  %v3010_v26 = vmul.f32 %v7018_v40, %v2989_v48 }
 0x798   : > { %v4964_v23 = vpop.eup %4963 }
 0x799   : > { %v3011_v47 = vmul.f32 %v7018_v40, %v2990_v50  ;;  %v2991_v46 = vmul.f32 %v4964_v23, %v2943_v17  ;;  %v7129_v51 = vadd.f32 %v7027_v0, %v3010_v26  ;;  %v3042_v50 = vadd.f32 %v7074_v43, %v6776_v45 }
 0x79a   : > { %v4966_v55 = vpop.eup %4965 }
 0x79b   : > { %v7132_v24 = vadd.f32 %v7027_v0, %v3011_v47  ;;  %v2992_v10 = vmul.f32 %v4966_v55, %v2944_v18  ;;  %v3012_v7 = vmul.f32 %v7018_v40, %v2991_v46  ;;  %v3039_v18 = vadd.f32 %v7077_v38, %v6780_v20 }
 0x79c   : > { %v3040_v55 = vadd.f32 %v7080_v21, %v6785_v15 }
 0x79d   : > { %v3057_v33 = vpack.c.bf16 %v7132_v24, %v7129_v51  ;;  %v3013_v62 = vmul.f32 %v7018_v40, %v2992_v10  ;;  %v7139_v57 = vadd.f32 %v7027_v0, %v3012_v7  ;;  %v3037_v40 = vadd.f32 %v7039_v5, %v6741_v60 }
 0x79e   : > { %v3036_v60 = vadd.f32 %v7036_v54, %v6760_v11  ;;  %v3041_v11 = vadd.f32 %v7083_v53, %v6771_v61 }
 0x79f   : > { %4397 = vmatprep.mubr.bf16.mxu1 %v3057_v33  ;;  %v7142_v4 = vadd.f32 %v7027_v0, %v3013_v62  ;;  %v3035_v0 = vadd.f32 %v7033_v1, %v6746_v37 }
 0x7a1   : > { %v3058_v63 = vpack.c.bf16 %v7142_v4, %v7139_v57 }
 0x7a3   : > { %4398 = vmatmul.mubr.bf16.gmra.mrb[60].mxu1 %v3058_v63 }
 0x845   : > { %v4387_v16 = vpop.f32.mrb[48].mxu1 }
 0x846   : > { %v3172_v29 = vadd.f32 %v4387_v16, %v7149_v39  ;;  %v3163_v25 = vpop.f32.mrb[49].mxu1 }
 0x847   : > { %v3164_v28 = vadd.f32 %v7149_v39, %v3163_v25  ;;  %v4388_v31 = vpop.f32.mrb[50].mxu1 }
 0x848   : > { %v3228_v30 = vadd.f32 %v3172_v29, %v3037_v40  ;;  %v3175_v56 = vadd.f32 %v4388_v31, %v7149_v39  ;;  %v3166_v27 = vpop.f32.mrb[51].mxu1 }
 0x849   : > { %v7160_v36 = vadd.f32 %v3164_v28, %v3035_v0  ;;  %v3167_v5 = vadd.f32 %v7149_v39, %v3166_v27 }
 0x84a   : > { %v4065_v9 = vmul.f32 -1.442695, %v3228_v30  ;;  %v3229_v3 = vadd.f32 %v3175_v56, %v3038_v8  ;;  %v3045_v56 = vadd.f32 %v7115_v58, %v6812_v49 }
 0x84b   : > { %v4063_v37 = vmul.f32 -1.442695, %v7160_v36  ;;  %v7166_v1 = vadd.f32 %v3167_v5, %v3036_v60  ;;  %v3046_v60 = vadd.f32 %v7106_v2, %v6816_v42  ;;  %v3044_v42 = vadd.f32 %v7112_v44, %v6830_v6 }
 0x84c   : > { %4967 = vpow2.f32 %v4065_v9  ;;  %v4066_v14 = vmul.f32 -1.442695, %v3229_v3 }
 0x84d   : > { %4969 = vpow2.f32 %v4063_v37  ;;  %v4064_v41 = vmul.f32 -1.442695, %v7166_v1 }
 0x84e   : > { %4971 = vpow2.f32 %v4066_v14 }
 0x84f   : > { %4973 = vpow2.f32 %v4064_v41 }
 0x856   : > { %v4968_v35 = vpop.eup %4967  ;;  %v4391_v19 = vpop.f32.mrb[52].mxu1 }
 0x857   : > { %v4970_v48 = vpop.eup %4969  ;;  %v3292_v32 = vadd.f32 1.0, %v4968_v35  ;;  %v3188_v54 = vadd.f32 %v4391_v19, %v7149_v39  ;;  %v3179_v17 = vpop.f32.mrb[53].mxu1 }
 0x858   : > { %v4972_v26 = vpop.eup %4971  ;;  %v3290_v23 = vadd.f32 1.0, %v4970_v48  ;;  %v3180_v47 = vadd.f32 %v7149_v39, %v3179_v17  ;;  %v4392_v46 = vpop.f32.mrb[54].mxu1 }
 0x859   : > { %v4974_v10 = vpop.eup %4973  ;;  %4975 = vrcp.f32 %v3292_v32  ;;  %v3293_v61 = vadd.f32 1.0, %v4972_v26  ;;  %v7179_v53 = vadd.f32 %v3188_v54, %v3041_v11  ;;  %v3191_v7 = vadd.f32 %v4392_v46, %v7149_v39  ;;  %v3182_v33 = vpop.f32.mrb[55].mxu1 }
 0x85a   : > { %4977 = vrcp.f32 %v3290_v23  ;;  %v3291_v45 = vadd.f32 1.0, %v4974_v10  ;;  %v7182_v43 = vadd.f32 %v3180_v47, %v3039_v18  ;;  %v3183_v20 = vadd.f32 %v7149_v39, %v3182_v33 }
 0x85b   : > { %4979 = vrcp.f32 %v3293_v61  ;;  %v4069_v38 = vmul.f32 -1.442695, %v7179_v53  ;;  %v7186_v62 = vadd.f32 %v3191_v7, %v3042_v50 }
 0x85c   : > { %4981 = vrcp.f32 %v3291_v45  ;;  %v4067_v15 = vmul.f32 -1.442695, %v7182_v43  ;;  %v7189_v21 = vadd.f32 %v3183_v20, %v3040_v55  ;;  %v3049_v20 = vadd.f32 %v7139_v57, %v6868_v59 }
 0x85d   : > { %4983 = vpow2.f32 %v4069_v38  ;;  %v4070_v63 = vmul.f32 -1.442695, %v7186_v62  ;;  %v3048_v59 = vadd.f32 %v7132_v24, %v6886_v12 }
 0x85e   : > { %4985 = vpow2.f32 %v4067_v15  ;;  %v4068_v16 = vmul.f32 -1.442695, %v7189_v21 }
 0x85f   : > { %4987 = vpow2.f32 %v4070_v63 }
 0x860   : > { %4989 = vpow2.f32 %v4068_v16 }
 0x863   : > { %v4976_v40 = vpop.eup %4975 }
 0x864   : > { %v4978_v29 = vpop.eup %4977  ;;  %v7193_v25 = vmul.f32 %v4976_v40, %v3228_v30  ;;  %v3043_v30 = vadd.f32 %v7109_v22, %v6821_v13  ;;  %v3047_v40 = vadd.f32 %v7129_v51, %v6877_v52 }
 0x865   : > { %v4980_v0 = vpop.eup %4979 }
 0x866   : > { %v4982_v28 = vpop.eup %4981  ;;  %3358 = vadd.xlane.f32.xlu0 %v7193_v25  ;;  %v7196_v31 = vmul.f32 %v4980_v0, %v3229_v3  ;;  %v7207_v3 = vmul.f32 %v4978_v29, %v7160_v36  ;;  %v3050_v29 = vadd.f32 %v7142_v4, %v6882_v34 }
 0x867   : > { %v4984_v8 = vpop.eup %4983  ;;  %v4395_v27 = vpop.f32.mrb[56].mxu1  ;;  %v7213_v2 = vmul.f32 %v4982_v28, %v7166_v1  ;;  %v3404_v1 = vmul.f32 %v7193_v25, %v7193_v25 }
 0x868   : > { %v4986_v5 = vpop.eup %4985  ;;  %v3296_v9 = vadd.f32 1.0, %v4984_v8  ;;  %v3204_v37 = vadd.f32 %v4395_v27, %v7149_v39  ;;  %v3195_v14 = vpop.f32.mrb[57].mxu1  ;;  %3360 = vadd.xlane.f32.xlu1 %v7196_v31  ;;  %v3405_v23 = vmul.f32 %v7196_v31, %v7196_v31  ;;  %v3402_v47 = vmul.f32 %v7207_v3, %v7207_v3 }
 0x869   : > { %v4988_v41 = vpop.eup %4987  ;;  %v3294_v35 = vadd.f32 1.0, %v4986_v5  ;;  %v3196_v49 = vadd.f32 %v7149_v39, %v3195_v14  ;;  %v4396_v58 = vpop.f32.mrb[58].mxu1  ;;  %v3403_v46 = vmul.f32 %v7213_v2, %v7213_v2 }
 0x86a   : > { %v4990_v19 = vpop.eup %4989  ;;  %4991 = vrcp.f32 %v3296_v9  ;;  %v3297_v13 = vadd.f32 1.0, %v4988_v41  ;;  %v7215_v22 = vadd.f32 %v3204_v37, %v3045_v56  ;;  %v3207_v48 = vadd.f32 %v4396_v58, %v7149_v39  ;;  %v3198_v36 = vpop.f32.mrb[59].mxu1  ;;  %3354 = vadd.xlane.f32.xlu0 %v7207_v3  ;;  %v4543_v41 = vld [vmem:[%s7540_s7] sm:$0xff]   ;;  %v4544_v58 = vld [vmem:[%s7540_s7 + $0x8] sm:$0xff]  }
 0x86b   : > { %4993 = vrcp.f32 %v3294_v35  ;;  %v3295_v32 = vadd.f32 1.0, %v4990_v19  ;;  %v7219_v11 = vadd.f32 %v3196_v49, %v3043_v30  ;;  %v3199_v54 = vadd.f32 %v7149_v39, %v3198_v36  ;;  %4401 = vmatprep.subr.bf16.mxu0 %v4543_v41  ;;  %4433 = vmatprep.subr.bf16.mxu1 %v4543_v41  ;;  %v4545_v36 = vld [vmem:[%s7540_s7 + $0x10] sm:$0xff]  }
 0x86c   : > { %4995 = vrcp.f32 %v3297_v13  ;;  %v4073_v6 = vmul.f32 -1.442695, %v7215_v22  ;;  %v7223_v44 = vadd.f32 %v3207_v48, %v3046_v60  ;;  %3356 = vadd.xlane.f32.xlu1 %v7213_v2  ;;  %4402 = vmatpush3.bf16.msra.mxu0 %v4543_v41 }
 0x86d   : > { %4997 = vrcp.f32 %v3295_v32  ;;  %v4071_v17 = vmul.f32 -1.442695, %v7219_v11  ;;  %v7229_v50 = vadd.f32 %v3199_v54, %v3044_v42  ;;  %4441 = vmatpush3.bf16.msra.mxu1 %v4543_v41  ;;  %4403 = vmatprep.subr.bf16.mxu0 %v4544_v58 }
 0x86e   : > { %4999 = vpow2.f32 %v4073_v6  ;;  %v4074_v26 = vmul.f32 -1.442695, %v7223_v44  ;;  %3422 = vadd.xlane.f32.xlu0 %v3404_v1  ;;  %4434 = vmatprep.subr.bf16.mxu1 %v4544_v58 }
 0x86f   : > { %5001 = vpow2.f32 %v4071_v17  ;;  %v4072_v18 = vmul.f32 -1.442695, %v7229_v50 }
 0x870   : > { %5003 = vpow2.f32 %v4074_v26  ;;  %3424 = vadd.xlane.f32.xlu1 %v3405_v23  ;;  %4404 = vmatpush3.bf16.msra.mxu0 %v4544_v58  ;;  %v4546_v23 = vld [vmem:[%s7540_s7 + $0x18] sm:$0xff]  }
 0x871   : > { %5005 = vpow2.f32 %v4072_v18  ;;  %4442 = vmatpush3.bf16.msra.mxu1 %v4544_v58  ;;  %4405 = vmatprep.subr.bf16.mxu0 %v4545_v36 }
 0x872   : > { %3418 = vadd.xlane.f32.xlu0 %v3402_v47  ;;  %4435 = vmatprep.subr.bf16.mxu1 %v4545_v36 }
 0x874   : > { %v4992_v55 = vpop.eup %4991  ;;  %3420 = vadd.xlane.f32.xlu1 %v3403_v46  ;;  %4406 = vmatpush3.bf16.msra.mxu0 %v4545_v36 }
 0x875   : > { %v4994_v10 = vpop.eup %4993  ;;  %v7240_v61 = vmul.f32 %v4992_v55, %v7179_v53  ;;  %4443 = vmatpush3.bf16.msra.mxu1 %v4545_v36  ;;  %4407 = vmatprep.subr.bf16.mxu0 %v4546_v23 }
 0x876   : > { %v4996_v7 = vpop.eup %4995  ;;  %v4399_v33 = vpop.f32.mrb[60].mxu1  ;;  %v7261_v52 = vmul.f32 %v4994_v10, %v7182_v43  ;;  %4436 = vmatprep.subr.bf16.mxu1 %v4546_v23 }
 0x877   : > { %v4998_v45 = vpop.eup %4997  ;;  %v3220_v38 = vadd.f32 %v4399_v33, %v7149_v39  ;;  %v3211_v15 = vpop.f32.mrb[61].mxu1  ;;  %3366 = vadd.xlane.f32.xlu0 %v7240_v61  ;;  %v7247_v63 = vmul.f32 %v4996_v7, %v7186_v62  ;;  %v4547_v7 = vld [vmem:[%s7540_s7 + $0x20] sm:$0xff]  }
 0x878   : > { %v5000_v16 = vpop.eup %4999  ;;  %v3212_v53 = vadd.f32 %v7149_v39, %v3211_v15  ;;  %v4400_v0 = vpop.f32.mrb[62].mxu1  ;;  %v7267_v12 = vmul.f32 %v4998_v45, %v7189_v21  ;;  %v3408_v21 = vmul.f32 %v7240_v61, %v7240_v61  ;;  %v3406_v49 = vmul.f32 %v7261_v52, %v7261_v52  ;;  %4408 = vmatpush3.bf16.msra.mxu0 %v4546_v23  ;;  %v4548_v45 = vld [vmem:[%s7540_s7 + $0x28] sm:$0xff]   ;;  %v4549_v15 = vld [vmem:[%s7540_s7 + $0x30] sm:$0xff]  }
 0x879   : > { %v5002_v57 = vpop.eup %5001  ;;  %v3300_v28 = vadd.f32 1.0, %v5000_v16  ;;  %v7256_v8 = vadd.f32 %v3220_v38, %v3049_v20  ;;  %v3223_v62 = vadd.f32 %v4400_v0, %v7149_v39  ;;  %v3214_v56 = vpop.f32.mrb[63].mxu1  ;;  %3368 = vadd.xlane.f32.xlu1 %v7247_v63  ;;  %v3409_v35 = vmul.f32 %v7247_v63, %v7247_v63  ;;  %4444 = vmatpush3.bf16.msra.mxu1 %v4546_v23 }
 0x87a   : > { %v5004_v51 = vpop.eup %5003  ;;  %v3298_v27 = vadd.f32 1.0, %v5002_v57  ;;  %v7263_v60 = vadd.f32 %v3212_v53, %v3047_v40  ;;  %v3215_v34 = vadd.f32 %v7149_v39, %v3214_v56  ;;  %v3407_v42 = vmul.f32 %v7267_v12, %v7267_v12  ;;  %4409 = vmatprep.subr.bf16.mxu0 %v4547_v7  ;;  %4437 = vmatprep.subr.bf16.mxu1 %v4547_v7 }
 0x87b   : > { %v5006_v24 = vpop.eup %5005  ;;  %5007 = vrcp.f32 %v3300_v28  ;;  %v3301_v4 = vadd.f32 1.0, %v5004_v51  ;;  %v4077_v5 = vmul.f32 -1.442695, %v7256_v8  ;;  %v7270_v9 = vadd.f32 %v3223_v62, %v3050_v29  ;;  %3362 = vadd.xlane.f32.xlu0 %v7261_v52 }
 0x87c   : > { %5009 = vrcp.f32 %v3298_v27  ;;  %v3299_v43 = vadd.f32 1.0, %v5006_v24  ;;  %v4075_v37 = vmul.f32 -1.442695, %v7263_v60  ;;  %v7274_v30 = vadd.f32 %v3215_v34, %v3048_v59  ;;  %4410 = vmatpush3.bf16.msra.mxu0 %v4547_v7  ;;  %v4550_v59 = vld [vmem:[%s7540_s7 + $0x38] sm:$0xff]  }
 0x87d   : > { %5011 = vrcp.f32 %v3301_v4  ;;  %v4078_v39 = vmul.f32 -1.442695, %v7270_v9  ;;  %3364 = vadd.xlane.f32.xlu1 %v7267_v12  ;;  %4445 = vmatpush3.bf16.msra.mxu1 %v4547_v7 }
 0x87e   : > { %5013 = vrcp.f32 %v3299_v43  ;;  %v4076_v14 = vmul.f32 -1.442695, %v7274_v30  ;;  %4411 = vmatprep.subr.bf16.mxu0 %v4548_v45  ;;  %4438 = vmatprep.subr.bf16.mxu1 %v4548_v45 }
 0x87f   : > { %5015 = vpow2.f32 %v4077_v5  ;;  %3430 = vadd.xlane.f32.xlu0 %v3408_v21 }
 0x880   : > { %5017 = vpow2.f32 %v4075_v37  ;;  %4412 = vmatpush3.bf16.msra.mxu0 %v4548_v45 }
 0x881   : > { %5019 = vpow2.f32 %v4078_v39  ;;  %3432 = vadd.xlane.f32.xlu1 %v3409_v35  ;;  %4446 = vmatpush3.bf16.msra.mxu1 %v4548_v45 }
 0x882   : > { %5021 = vpow2.f32 %v4076_v14  ;;  %4413 = vmatprep.subr.bf16.mxu0 %v4549_v15  ;;  %4439 = vmatprep.subr.bf16.mxu1 %v4549_v15 }
 0x883   : > { %3426 = vadd.xlane.f32.xlu0 %v3406_v49 }
 0x884   : > { %4414 = vmatpush3.bf16.msra.mxu0 %v4549_v15 }
 0x885   : > { %v5008_v19 = vpop.eup %5007  ;;  %3428 = vadd.xlane.f32.xlu1 %v3407_v42  ;;  %4447 = vmatpush3.bf16.msra.mxu1 %v4549_v15 }
 0x886   : > { %v5010_v13 = vpop.eup %5009  ;;  %v7294_v48 = vmul.f32 %v5008_v19, %v7215_v22  ;;  %4415 = vmatprep.subr.bf16.mxu0 %v4550_v59  ;;  %4440 = vmatprep.subr.bf16.mxu1 %v4550_v59 }
 0x887   : > { %v5012_v32 = vpop.eup %5011  ;;  %v7305_v22 = vmul.f32 %v5010_v13, %v7219_v11 }
 0x888   : > { %v5014_v54 = vpop.eup %5013  ;;  %3374 = vadd.xlane.f32.xlu0 %v7294_v48  ;;  %v7301_v6 = vmul.f32 %v5012_v32, %v7223_v44  ;;  %v3412_v11 = vmul.f32 %v7294_v48, %v7294_v48  ;;  %4416 = vmatpush3.bf16.msra.mxu0 %v4550_v59 }
 0x889   : > { %v5016_v1 = vpop.eup %5015  ;;  %v7312_v55 = vmul.f32 %v5014_v54, %v7229_v50  ;;  %v3410_v33 = vmul.f32 %v7305_v22, %v7305_v22  ;;  %4448 = vmatpush3.bf16.msra.mxu1 %v4550_v59 }
 0x88a   : > { %v5018_v17 = vpop.eup %5017  ;;  %v3304_v26 = vadd.f32 1.0, %v5016_v1  ;;  %3376 = vadd.xlane.f32.xlu1 %v7301_v6  ;;  %v3413_v50 = vmul.f32 %v7301_v6, %v7301_v6 }
 0x88b   : > { %v5020_v18 = vpop.eup %5019  ;;  %v3302_v47 = vadd.f32 1.0, %v5018_v17  ;;  %v3411_v20 = vmul.f32 %v7312_v55, %v7312_v55 }
 0x88c   : > { %v5022_v44 = vpop.eup %5021  ;;  %5023 = vrcp.f32 %v3304_v26  ;;  %v3305_v46 = vadd.f32 1.0, %v5020_v18  ;;  %3370 = vadd.xlane.f32.xlu0 %v7305_v22 }
 0x88d   : > { %5025 = vrcp.f32 %v3302_v47  ;;  %v3303_v10 = vadd.f32 1.0, %v5022_v44 }
 0x88e   : > { %5027 = vrcp.f32 %v3305_v46  ;;  %3372 = vadd.xlane.f32.xlu1 %v7312_v55 }
 0x88f   : > { %5029 = vrcp.f32 %v3303_v10 }
 0x890   : > { %3438 = vadd.xlane.f32.xlu0 %v3412_v11 }
 0x892   : > { %3440 = vadd.xlane.f32.xlu1 %v3413_v50 }
 0x894   : > { %3434 = vadd.xlane.f32.xlu0 %v3410_v33 }
 0x896   : > { %v5024_v38 = vpop.eup %5023  ;;  %3436 = vadd.xlane.f32.xlu1 %v3411_v20 }
 0x897   : > { %v5026_v16 = vpop.eup %5025  ;;  %v7333_v40 = vmul.f32 %v5024_v38, %v7256_v8 }
 0x898   : > { %v5028_v53 = vpop.eup %5027  ;;  %v7344_v57 = vmul.f32 %v5026_v16, %v7263_v60 }
 0x899   : > { %3382 = vadd.xlane.f32.xlu0 %v7333_v40  ;;  %v7337_v29 = vmul.f32 %v5028_v53, %v7270_v9  ;;  %v5030_v0 = vpop.eup %5029  ;;  %v3416_v56 = vmul.f32 %v7333_v40, %v7333_v40 }
 0x89a   : > { %v7348_v28 = vmul.f32 %v5030_v0, %v7274_v30  ;;  %v3414_v8 = vmul.f32 %v7344_v57, %v7344_v57 }
 0x89b   : > { %3384 = vadd.xlane.f32.xlu1 %v7337_v29  ;;  %v3417_v51 = vmul.f32 %v7337_v29, %v7337_v29 }
 0x89c   : > { %v3415_v62 = vmul.f32 %v7348_v28, %v7348_v28 }
 0x89d   : > { %3378 = vadd.xlane.f32.xlu0 %v7344_v57 }
 0x89f   : > { %3380 = vadd.xlane.f32.xlu1 %v7348_v28 }
 0x8a1   : > { %3442 = vadd.xlane.f32.xlu0 %v3414_v8 }
 0x8a3   : > { %3444 = vadd.xlane.f32.xlu1 %v3415_v62 }
 0x8a5   : > { %3446 = vadd.xlane.f32.xlu0 %v3416_v56 }
 0x8a7   : > { %3448 = vadd.xlane.f32.xlu1 %v3417_v51 }
 0x8f3   : > { %v3359_v27 = vpop.xlane.xlu0 %3358 }
 0x8f4   : > { %v3388_v24 = vmul.f32 0.0078125, %v3359_v27 }
 0x8f5   : > { %v3361_v60 = vpop.xlane.xlu1 %3360 }
 0x8f6   : > { %v3389_v5 = vmul.f32 0.0078125, %v3361_v60  ;;  %v3468_v43 = vmul.f32 %v3388_v24, %v3388_v24  ;;  %v3500_v53 = vsub.f32 %v7193_v25, %v3388_v24 }
 0x8f7   : > { %v3355_v34 = vpop.xlane.xlu0 %3354 }
 0x8f8   : > { %v3386_v37 = vmul.f32 0.0078125, %v3355_v34  ;;  %v3469_v21 = vmul.f32 %v3389_v5, %v3389_v5  ;;  %v3501_v20 = vsub.f32 %v7196_v31, %v3389_v5 }
 0x8f9   : > { %v3357_v4 = vpop.xlane.xlu1 %3356 }
 0x8fa   : > { %v3387_v14 = vmul.f32 0.0078125, %v3357_v4  ;;  %v3466_v58 = vmul.f32 %v3386_v37, %v3386_v37  ;;  %v3498_v0 = vsub.f32 %v7207_v3, %v3386_v37 }
 0x8fb   : > { %v3423_v9 = vpop.xlane.xlu0 %3422 }
 0x8fc   : > { %v3452_v30 = vmul.f32 0.0078125, %v3423_v9  ;;  %v3467_v32 = vmul.f32 %v3387_v14, %v3387_v14 }
 0x8fd   : > { %v3425_v39 = vpop.xlane.xlu1 %3424 }
 0x8fe   : > { %v3484_v41 = vsub.f32 %v3452_v30, %v3468_v43  ;;  %v3453_v35 = vmul.f32 0.0078125, %v3425_v39  ;;  %v3499_v43 = vsub.f32 %v7213_v2, %v3387_v14  ;;  %v7382_v39 = vld [vmem:[%s7538_s5 + $0x4] ss:$0 sm:$0xff] }
 0x8ff   : > { %v3419_v49 = vpop.xlane.xlu0 %3418 }
 0x900   : > { %v3516_v42 = vadd.f32 0.1, %v3484_v41  ;;  %v3485_v19 = vsub.f32 %v3453_v35, %v3469_v21  ;;  %v3450_v13 = vmul.f32 0.0078125, %v3419_v49 }
 0x901   : > { %v3421_v36 = vpop.xlane.xlu1 %3420 }
 0x902   : > { %v3517_v54 = vadd.f32 0.1, %v3485_v19  ;;  %v3482_v1 = vsub.f32 %v3450_v13, %v3466_v58  ;;  %v3451_v17 = vmul.f32 0.0078125, %v3421_v36  ;;  %5031 = vrsqrt.f32 %v3516_v42 }
 0x904   : > { %5033 = vrsqrt.f32 %v3517_v54  ;;  %v3514_v26 = vadd.f32 0.1, %v3482_v1  ;;  %v3483_v23 = vsub.f32 %v3451_v17, %v3467_v32  ;;  %v3367_v18 = vpop.xlane.xlu0 %3366  ;;  %v7391_v32 = vld [vmem:[%s7539_s6 + $0x4] ss:$0 sm:$0xff] }
 0x905   : > { %v7359_v10 = vmul.f32 0.0078125, %v3367_v18 }
 0x906   : > { %5035 = vrsqrt.f32 %v3514_v26  ;;  %v3515_v47 = vadd.f32 0.1, %v3483_v23  ;;  %v3369_v44 = vpop.xlane.xlu1 %3368 }
 0x907   : > { %v7361_v7 = vmul.f32 0.0078125, %v3369_v44  ;;  %v3472_v38 = vmul.f32 %v7359_v10, %v7359_v10 }
 0x908   : > { %5037 = vrsqrt.f32 %v3515_v47  ;;  %v3363_v46 = vpop.xlane.xlu0 %3362 }
 0x909   : > { %v7363_v50 = vmul.f32 0.0078125, %v3363_v46  ;;  %v3473_v56 = vmul.f32 %v7361_v7, %v7361_v7 }
 0x90a   : > { %v3365_v11 = vpop.xlane.xlu1 %3364 }
 0x90b   : > { %v7370_v59 = vmul.f32 0.0078125, %v3365_v11  ;;  %v3470_v34 = vmul.f32 %v7363_v50, %v7363_v50 }
 0x90c   : > { %v3431_v33 = vpop.xlane.xlu0 %3430  ;;  %v5032_v45 = vpop.eup %5031 }
 0x90d   : > { %v3456_v15 = vmul.f32 0.0078125, %v3431_v33  ;;  %v3548_v31 = vmul.f32 %v5032_v45, %v3500_v53  ;;  %v3471_v37 = vmul.f32 %v7370_v59, %v7370_v59 }
 0x90e   : > { %v5034_v16 = vpop.eup %5033  ;;  %v3433_v8 = vpop.xlane.xlu1 %3432 }
 0x90f   : > { %v3549_v62 = vmul.f32 %v5034_v16, %v3501_v20  ;;  %v3488_v51 = vsub.f32 %v3456_v15, %v3472_v38  ;;  %v3457_v27 = vmul.f32 0.0078125, %v3433_v8  ;;  %v3569_v13 = vmul.f32 %v7382_v39, %v3548_v31 }
 0x910   : > { %v5036_v60 = vpop.eup %5035  ;;  %v3427_v4 = vpop.xlane.xlu0 %3426  ;;  %v3505_v16 = vsub.f32 %v7247_v63, %v7361_v7 }
 0x911   : > { %v3520_v5 = vadd.f32 0.1, %v3488_v51  ;;  %v3489_v9 = vsub.f32 %v3457_v27, %v3473_v56  ;;  %v3454_v25 = vmul.f32 0.0078125, %v3427_v4  ;;  %v3546_v24 = vmul.f32 %v5036_v60, %v3498_v0 }
 0x912   : > { %v5038_v3 = vpop.eup %5037  ;;  %v3429_v30 = vpop.xlane.xlu1 %3428  ;;  %v3570_v49 = vmul.f32 %v7382_v39, %v3549_v62  ;;  %v3590_v47 = vadd.f32 %v7391_v32, %v3569_v13  ;;  %v3504_v62 = vsub.f32 %v7240_v61, %v7359_v10  ;;  %v3502_v56 = vsub.f32 %v7261_v52, %v7363_v50 }
 0x913   : > { %v3521_v21 = vadd.f32 0.1, %v3489_v9  ;;  %v3486_v41 = vsub.f32 %v3454_v25, %v3470_v34  ;;  %v3455_v35 = vmul.f32 0.0078125, %v3429_v30  ;;  %5039 = vrsqrt.f32 %v3520_v5 }
 0x914   : > { %v3547_v58 = vmul.f32 %v5038_v3, %v3499_v43  ;;  %v3567_v42 = vmul.f32 %v7382_v39, %v3546_v24  ;;  %v3591_v17 = vadd.f32 %v7391_v32, %v3570_v49  ;;  %v3503_v50 = vsub.f32 %v7267_v12, %v7370_v59 }
 0x915   : > { %5041 = vrsqrt.f32 %v3521_v21  ;;  %v3518_v2 = vadd.f32 0.1, %v3486_v41  ;;  %v3487_v14 = vsub.f32 %v3455_v35, %v3471_v37  ;;  %v3375_v19 = vpop.xlane.xlu0 %3374 }
 0x916   : > { %v3568_v36 = vmul.f32 %v7382_v39, %v3547_v58  ;;  %v3588_v26 = vadd.f32 %v7391_v32, %v3567_v42  ;;  %v7397_v44 = vmul.f32 0.0078125, %v3375_v19  ;;  %v3605_v33 = vpack.c.bf16 %v3591_v17, %v3590_v47 }
 0x917   : > { %5043 = vrsqrt.f32 %v3518_v2  ;;  %v3519_v54 = vadd.f32 0.1, %v3487_v14  ;;  %v3377_v1 = vpop.xlane.xlu1 %3376 }
 0x918   : > { %v3589_v23 = vadd.f32 %v7391_v32, %v3568_v36  ;;  %v7399_v45 = vmul.f32 0.0078125, %v3377_v1  ;;  %v3476_v53 = vmul.f32 %v7397_v44, %v7397_v44 }
 0x919   : > { %5045 = vrsqrt.f32 %v3519_v54  ;;  %v3371_v18 = vpop.xlane.xlu0 %3370 }
 0x91a   : > { %v3604_v46 = vpack.c.bf16 %v3589_v23, %v3588_v26  ;;  %v7401_v20 = vmul.f32 0.0078125, %v3371_v18  ;;  %v3477_v60 = vmul.f32 %v7399_v45, %v7399_v45 }
 0x91b   : > { %v3373_v11 = vpop.xlane.xlu1 %3372 }
 0x91c   : > { %4417 = vmatprep.mubr.bf16.mxu0 %v3604_v46  ;;  %v7411_v51 = vmul.f32 0.0078125, %v3373_v11  ;;  %v3474_v4 = vmul.f32 %v7401_v20, %v7401_v20 }
 0x91d   : > { %v3439_v38 = vpop.xlane.xlu0 %3438  ;;  %4418 = vmatmul.mubr.bf16.vlgmr.msra.gmra.mrb[48].mxu0 %v3605_v33  ;;  %v5040_v15 = vpop.eup %5039 }
 0x91e   : > { %v3460_v0 = vmul.f32 0.0078125, %v3439_v38  ;;  %v3552_v9 = vmul.f32 %v5040_v15, %v3504_v62  ;;  %v3475_v3 = vmul.f32 %v7411_v51, %v7411_v51  ;;  %v3509_v15 = vsub.f32 %v7301_v6, %v7399_v45 }
 0x91f   : > { %v5042_v8 = vpop.eup %5041  ;;  %v3441_v27 = vpop.xlane.xlu1 %3440  ;;  %v3506_v62 = vsub.f32 %v7305_v22, %v7401_v20 }
 0x920   : > { %v3492_v31 = vsub.f32 %v3460_v0, %v3476_v53  ;;  %v3461_v34 = vmul.f32 0.0078125, %v3441_v27  ;;  %v3553_v63 = vmul.f32 %v5042_v8, %v3505_v16  ;;  %v3573_v14 = vmul.f32 %v7382_v39, %v3552_v9 }
 0x921   : > { %v5044_v7 = vpop.eup %5043  ;;  %v3435_v5 = vpop.xlane.xlu0 %3434  ;;  %v3508_v8 = vsub.f32 %v7294_v48, %v7397_v44  ;;  %v3507_v48 = vsub.f32 %v7312_v55, %v7411_v51 }
 0x922   : > { %v3524_v25 = vadd.f32 0.1, %v3492_v31  ;;  %v3493_v61 = vsub.f32 %v3461_v34, %v3477_v60  ;;  %v3458_v10 = vmul.f32 0.0078125, %v3435_v5  ;;  %v3550_v24 = vmul.f32 %v5044_v7, %v3502_v56 }
 0x923   : > { %v5046_v52 = vpop.eup %5045  ;;  %v3437_v43 = vpop.xlane.xlu1 %3436  ;;  %v3574_v41 = vmul.f32 %v7382_v39, %v3553_v63  ;;  %v3594_v17 = vadd.f32 %v7391_v32, %v3573_v14 }
 0x924   : > { %v3525_v37 = vadd.f32 0.1, %v3493_v61  ;;  %v3490_v30 = vsub.f32 %v3458_v10, %v3474_v4  ;;  %v3459_v21 = vmul.f32 0.0078125, %v3437_v43  ;;  %5047 = vrsqrt.f32 %v3524_v25 }
 0x925   : > { %v3551_v35 = vmul.f32 %v5046_v52, %v3503_v50  ;;  %v3571_v49 = vmul.f32 %v7382_v39, %v3550_v24  ;;  %v3595_v13 = vadd.f32 %v7391_v32, %v3574_v41 }
 0x926   : > { %5049 = vrsqrt.f32 %v3525_v37  ;;  %v3522_v58 = vadd.f32 0.1, %v3490_v30  ;;  %v3491_v42 = vsub.f32 %v3459_v21, %v3475_v3  ;;  %v3383_v2 = vpop.xlane.xlu0 %3382 }
 0x927   : > { %v3572_v12 = vmul.f32 %v7382_v39, %v3551_v35  ;;  %v3592_v36 = vadd.f32 %v7391_v32, %v3571_v49  ;;  %v3607_v47 = vpack.c.bf16 %v3595_v13, %v3594_v17  ;;  %v3400_v11 = vmul.f32 0.0078125, %v3383_v2 }
 0x928   : > { %5051 = vrsqrt.f32 %v3522_v58  ;;  %v3523_v59 = vadd.f32 0.1, %v3491_v42  ;;  %v3385_v19 = vpop.xlane.xlu1 %3384 }
 0x929   : > { %v3593_v54 = vadd.f32 %v7391_v32, %v3572_v12  ;;  %v3401_v56 = vmul.f32 0.0078125, %v3385_v19  ;;  %v3480_v4 = vmul.f32 %v3400_v11, %v3400_v11 }
 0x92a   : > { %5053 = vrsqrt.f32 %v3523_v59  ;;  %v3379_v1 = vpop.xlane.xlu0 %3378 }
 0x92b   : > { %v3398_v26 = vmul.f32 0.0078125, %v3379_v1  ;;  %v3606_v23 = vpack.c.bf16 %v3593_v54, %v3592_v36  ;;  %v3481_v44 = vmul.f32 %v3401_v56, %v3401_v56  ;;  %v3512_v36 = vsub.f32 %v7333_v40, %v3400_v11 }
 0x92c   : > { %v3381_v18 = vpop.xlane.xlu1 %3380 }
 0x92d   : > { %v3399_v46 = vmul.f32 0.0078125, %v3381_v18  ;;  %4421 = vmatprep.mubr.bf16.mxu0 %v3606_v23  ;;  %v3478_v16 = vmul.f32 %v3398_v26, %v3398_v26  ;;  %v3510_v14 = vsub.f32 %v7344_v57, %v3398_v26  ;;  %v3513_v23 = vsub.f32 %v7337_v29, %v3401_v56 }
 0x92e   : > { %v3443_v33 = vpop.xlane.xlu0 %3442  ;;  %4422 = vmatmul.mubr.bf16.gmra.mrb[52].mxu0 %v3607_v47  ;;  %v5048_v38 = vpop.eup %5047 }
 0x92f   : > { %v3462_v53 = vmul.f32 0.0078125, %v3443_v33  ;;  %v3479_v60 = vmul.f32 %v3399_v46, %v3399_v46  ;;  %v3556_v9 = vmul.f32 %v5048_v38, %v3508_v8  ;;  %v3511_v59 = vsub.f32 %v7348_v28, %v3399_v46 }
 0x930   : > { %v5050_v0 = vpop.eup %5049  ;;  %v3445_v27 = vpop.xlane.xlu1 %3444 }
 0x931   : > { %v3494_v31 = vsub.f32 %v3462_v53, %v3478_v16  ;;  %v3463_v34 = vmul.f32 0.0078125, %v3445_v27  ;;  %v3557_v63 = vmul.f32 %v5050_v0, %v3509_v15  ;;  %v3577_v21 = vmul.f32 %v7382_v39, %v3556_v9  ;;  %v4081_v16 = vld [vmem:[%s7541_s8] ss:$0 sm:$0xff] }
 0x932   : > { %v5052_v7 = vpop.eup %5051  ;;  %v3447_v5 = vpop.xlane.xlu0 %3446 }
 0x933   : > { %v3526_v6 = vadd.f32 0.1, %v3494_v31  ;;  %v3495_v45 = vsub.f32 %v3463_v34, %v3479_v60  ;;  %v3464_v25 = vmul.f32 0.0078125, %v3447_v5  ;;  %v3554_v61 = vmul.f32 %v5052_v7, %v3506_v62 }
 0x934   : > { %v5054_v10 = vpop.eup %5053  ;;  %v3449_v22 = vpop.xlane.xlu1 %3448  ;;  %v3578_v20 = vmul.f32 %v7382_v39, %v3557_v63  ;;  %v3598_v58 = vadd.f32 %v7391_v32, %v3577_v21 }
 0x935   : > { %5055 = vrsqrt.f32 %v3526_v6  ;;  %v3527_v24 = vadd.f32 0.1, %v3495_v45  ;;  %v3496_v52 = vsub.f32 %v3464_v25, %v3480_v4  ;;  %v3465_v50 = vmul.f32 0.0078125, %v3449_v22 }
 0x936   : > { %v3555_v3 = vmul.f32 %v5054_v10, %v3507_v48  ;;  %v3575_v43 = vmul.f32 %v7382_v39, %v3554_v61  ;;  %v3599_v51 = vadd.f32 %v7391_v32, %v3578_v20 }
 0x937   : > { %5057 = vrsqrt.f32 %v3527_v24  ;;  %v3528_v37 = vadd.f32 0.1, %v3496_v52  ;;  %v3497_v30 = vsub.f32 %v3465_v50, %v3481_v44 }
 0x938   : > { %v3576_v41 = vmul.f32 %v7382_v39, %v3555_v3  ;;  %v3596_v35 = vadd.f32 %v7391_v32, %v3575_v43  ;;  %v3609_v2 = vpack.c.bf16 %v3599_v51, %v3598_v58 }
 0x939   : > { %5059 = vrsqrt.f32 %v3528_v37  ;;  %v3529_v55 = vadd.f32 0.1, %v3497_v30 }
 0x93a   : > { %v3597_v49 = vadd.f32 %v7391_v32, %v3576_v41 }
 0x93b   : > { %5061 = vrsqrt.f32 %v3529_v55 }
 0x93c   : > { %v3608_v42 = vpack.c.bf16 %v3597_v49, %v3596_v35 }
 0x93e   : > { %4425 = vmatprep.mubr.bf16.mxu0 %v3608_v42 }
 0x93f   : > { %v5056_v12 = vpop.eup %5055  ;;  %4426 = vmatmul.mubr.bf16.gmra.mrb[56].mxu0 %v3609_v2 }
 0x940   : > { %v3558_v19 = vmul.f32 %v5056_v12, %v3510_v14 }
 0x941   : > { %v5058_v13 = vpop.eup %5057 }
 0x942   : > { %v3559_v54 = vmul.f32 %v5058_v13, %v3511_v59  ;;  %v3579_v1 = vmul.f32 %v7382_v39, %v3558_v19 }
 0x943   : > { %v5060_v17 = vpop.eup %5059 }
 0x944   : > { %v3560_v18 = vmul.f32 %v5060_v17, %v3512_v36  ;;  %v3580_v57 = vmul.f32 %v7382_v39, %v3559_v54  ;;  %v3600_v28 = vadd.f32 %v7391_v32, %v3579_v1 }
 0x945   : > { %v5062_v26 = vpop.eup %5061 }
 0x946   : > { %v3581_v47 = vmul.f32 %v7382_v39, %v3560_v18  ;;  %v3561_v33 = vmul.f32 %v5062_v26, %v3513_v23  ;;  %v3601_v46 = vadd.f32 %v7391_v32, %v3580_v57 }
 0x948   : > { %v3582_v40 = vmul.f32 %v7382_v39, %v3561_v33  ;;  %v3610_v11 = vpack.c.bf16 %v3601_v46, %v3600_v28  ;;  %v3602_v38 = vadd.f32 %v7391_v32, %v3581_v47 }
 0x94a   : > { %4429 = vmatprep.mubr.bf16.mxu1 %v3610_v11  ;;  %v3603_v29 = vadd.f32 %v7391_v32, %v3582_v40 }
 0x94c   : > { %v3611_v15 = vpack.c.bf16 %v3603_v29, %v3602_v38 }
 0x94e   : > { %4430 = vmatmul.mubr.bf16.vlgmr.msra.gmra.mrb[64].mxu1 %v3611_v15 }
 0x9f0   : > { %v4419_v53 = vpop.f32.mrb[48].mxu0 }
 0x9f1   : > { %v3726_v0 = vadd.f32 %v4419_v53, %v4081_v16  ;;  %v3717_v8 = vpop.f32.mrb[49].mxu0 }
 0x9f2   : > { %v3718_v62 = vadd.f32 %v4081_v16, %v3717_v8  ;;  %v4420_v39 = vpop.f32.mrb[50].mxu0 }
 0x9f3   : > { %3782 = vst [vmem:[%s7463_s23 + $0x10] sm:$0xff] %v3726_v0  ;;  %v3729_v32 = vadd.f32 %v4420_v39, %v4081_v16  ;;  %v3720_v56 = vpop.f32.mrb[51].mxu0 }
 0x9f4   : > { %3780 = vst [vmem:[%s7463_s23] sm:$0xff] %v3718_v62  ;;  %v3721_v27 = vadd.f32 %v4081_v16, %v3720_v56 }
 0x9f5   : > { %3783 = vst [vmem:[%s7463_s23 + $0x18] sm:$0xff] %v3729_v32 }
 0x9f6   : > { %3781 = vst [vmem:[%s7463_s23 + $0x8] sm:$0xff] %v3721_v27 }
 0xa01   : > { %v4423_v60 = vpop.f32.mrb[52].mxu0 }
 0xa02   : > { %v3742_v31 = vadd.f32 %v4423_v60, %v4081_v16  ;;  %v3733_v34 = vpop.f32.mrb[53].mxu0 }
 0xa03   : > { %v3734_v63 = vadd.f32 %v4081_v16, %v3733_v34  ;;  %v4424_v7 = vpop.f32.mrb[54].mxu0 }
 0xa04   : > { %3786 = vst [vmem:[%s7463_s23 + $0x30] sm:$0xff] %v3742_v31  ;;  %v3745_v4 = vadd.f32 %v4424_v7, %v4081_v16  ;;  %v3736_v5 = vpop.f32.mrb[55].mxu0 }
 0xa05   : > { %3784 = vst [vmem:[%s7463_s23 + $0x20] sm:$0xff] %v3734_v63  ;;  %v3737_v9 = vadd.f32 %v4081_v16, %v3736_v5 }
 0xa06   : > { %3787 = vst [vmem:[%s7463_s23 + $0x38] sm:$0xff] %v3745_v4 }
 0xa07   : > { %3785 = vst [vmem:[%s7463_s23 + $0x28] sm:$0xff] %v3737_v9 }
 0xa12   : > { %v4427_v6 = vpop.f32.mrb[56].mxu0 }
 0xa13   : > { %v3758_v45 = vadd.f32 %v4427_v6, %v4081_v16  ;;  %v3749_v25 = vpop.f32.mrb[57].mxu0 }
 0xa14   : > { %v3750_v61 = vadd.f32 %v4081_v16, %v3749_v25  ;;  %v4428_v10 = vpop.f32.mrb[58].mxu0 }
 0xa15   : > { %3790 = vst [vmem:[%s7463_s23 + $0x50] sm:$0xff] %v3758_v45  ;;  %v3761_v48 = vadd.f32 %v4428_v10, %v4081_v16  ;;  %v3752_v44 = vpop.f32.mrb[59].mxu0 }
 0xa16   : > { %3788 = vst [vmem:[%s7463_s23 + $0x40] sm:$0xff] %v3750_v61  ;;  %v3753_v22 = vadd.f32 %v4081_v16, %v3752_v44 }
 0xa17   : > { %3791 = vst [vmem:[%s7463_s23 + $0x58] sm:$0xff] %v3761_v48 }
 0xa18   : > { %3789 = vst [vmem:[%s7463_s23 + $0x48] sm:$0xff] %v3753_v22 }
 0xa21   : > { %v4431_v20 = vpop.f32.mrb[64].mxu1 }
 0xa22   : > { %v3774_v24 = vadd.f32 %v4431_v20, %v4081_v16  ;;  %v3765_v52 = vpop.f32.mrb[65].mxu1 }
 0xa23   : > { %v3766_v50 = vadd.f32 %v4081_v16, %v3765_v52  ;;  %v4432_v3 = vpop.f32.mrb[66].mxu1 }
 0xa24   : > { %3794 = vst [vmem:[%s7463_s23 + $0x70] sm:$0xff] %v3774_v24  ;;  %v3777_v43 = vadd.f32 %v4432_v3, %v4081_v16  ;;  %v3768_v37 = vpop.f32.mrb[67].mxu1 }
 0xa25   : > { %3792 = vst [vmem:[%s7463_s23 + $0x60] sm:$0xff] %v3766_v50  ;;  %v3769_v30 = vadd.f32 %v4081_v16, %v3768_v37 }
 0xa26   : > { %3795 = vst [vmem:[%s7463_s23 + $0x78] sm:$0xff] %v3777_v43 }
 0xa27   : > { %3793 = vst [vmem:[%s7463_s23 + $0x68] sm:$0xff] %v3769_v30 }
 0xa28   : > { %5076 = shalt.err (!%p5073_p3)
}
 0xa29   : > { %s5077_s14 = scalar_lea.hbm %s7483_s27, 2048  ;;  %s5081_s24 = scalar_lea.hbm %s7542_s9, 4096 }
 0xa2a   : > { %p5078_p4 = scmp.ne.s32.totalorder %s7483_s27, %s5077_s14  ;;  %p5082_p9 = scmp.lt.u32.totalorder %s7483_s27, %s7542_s9 }
 0xa2b   : > { %p5083_p10 = scmp.lt.u32.totalorder %s5081_s24, %s5077_s14  ;;  %p5085_p12 = scmp.lt.u32.totalorder %s5077_s14, %s7483_s27 }
 0xa2c   : > { %p5079_p7 = pnand %p5078_p4, %p5218_p5 }
 0xa2d   : > { %p5084_p11 = por %p5083_p10, %p5082_p9 }
 0xa2e   : > { %p5080_p8 = pneg %p5079_p7 }
 0xa2f   : > { %p5086_p13 = por %p5085_p12, %p5084_p11 }
 0xa31   : > { %p5087_p0 = pnand %p5086_p13, %p5080_p8 }
 0xa33   : > { %5090 = shalt.err (!%p5087_p0)
}
 0xa34   : > { %s5128_s28 = smov 128   ;;  %s5129_s29 = smov 8  }
 0xa35   : > { %4451 = dma.vmem_to_hbm [thread:$0]  (%p5218_p5), %s7485_s25, 2048, %s7483_s27, %s7492_s13, %s5128_s28, %s5128_s28, %s5129_s29  }
 0xa36 PF: > { %p4457_p1 = scmp.ge.s32.totalorder %s5125_s12, 2  ;;  %s3825_s16 = sand.u32 1, %s5113_s30  }
 0xa37   : > { %s3826_s17 = scalar_lea.sflag [#allocation3], %s3825_s16 }
 0xa38   : > { %p4454_p2 = pnand %p4457_p1, %p5222_p6 }
 0xa3a   : > { %5108 = dma.done.wait (!%p4454_p2), %s3826_s17, 2048  }
 0xa3b   : > { %5110 = vsyncadd (!%p4454_p2), %s3826_s17, 4294965248  ;;  %p19_p3 = scmp.ge.s32.totalorder %s5205_s15, 4   ;;  %s7566_s30 = smov %s5117_s10 }
 0xa3c   : > { %s7567_s10 = smov %s5121_s11  ;;  %s7568_s11 = smov %s5216_s18 }
 0xa3d   : > { %s7569_s12 = smov %s5205_s15  ;;  %21 = sbr.rel (!%p19_p3) target bundleno = 3 (0x3), region = 94 }
 0xa44   :  { %3831 = vsyncpa [#allocation3], 1 }
 0xa45   :  { %3833 = vsyncpa [#allocation3 + $0x1], 1 }

</bundles_post_ra>
